<compile_context>
chip_gen: v7x
topology: tpu7x:2x2x1
jax: 0.10.0
libtpu: 0.0.40
codegen_flags: <defaults>
</compile_context>

<pallas_src>
import jax
import jax.numpy as jnp
import numpy as np
from jax.experimental import pallas as pl
from jax.experimental.pallas import tpu as pltpu

IN_F = 64          # logical flattened feature count (nn.Linear(64, 512))
IN_F_PAD = 128     # lane-dense padded K for layer 1
HID = 512
OUT_F = 1


def _round_up(n, m):
    return (n + m - 1) // m * m


def _tpu_plan():
    """(max_batch_tile, tensorcores_per_chip) from the detected TPU generation.

    Defaults are safe for any generation if detection fails."""
    max_tile, cores = 1024, 1
    try:
        kind = jax.devices()[0].device_kind.lower()
    except Exception:
        kind = ""
    if "v5 lite" in kind or "v5lite" in kind or "v5e" in kind:
        # v5e: 16 MiB scoped-VMEM default and grid overhead is already only
        # ~20% of the per-step MXU work at bt=512 -- don't copy the v6e tile.
        max_tile = 512
    if "v7" in kind:
        cores = 2  # 2 TensorCores/chip: keep >= 2 grid steps for large B.
    return max_tile, cores


def _pick_batch_tile(B, max_tile, cores):
    """Adaptive batch tile: minimal padded waste, MXU-filling, megacore-aware."""
    steps = pl.cdiv(B, max_tile)
    if cores > 1 and B >= 512:
        # Round step count up to a multiple of the core count for load balance.
        steps = _round_up(max(steps, cores), cores)
    bt = _round_up(pl.cdiv(B, steps), 16)   # 16: bf16 sublane packing
    return min(bt, max_tile)


def mlp_kernel(x_ref, w1_ref, b1_ref, w2_ref, b2_ref, w3_ref, b3_ref,
               w4_ref, b4_ref, o_ref):
    # Layer 1: (bt, 128) @ (128, 512) + (1, 512), ReLU.  bf16 in, f32 acc.
    h = jnp.dot(x_ref[...], w1_ref[...], preferred_element_type=jnp.float32)
    h = jnp.maximum(h + b1_ref[...], 0.0)
    # Layer 2: (bt, 512) @ (512, 512) + (1, 512), ReLU.
    h = jnp.dot(h.astype(jnp.bfloat16), w2_ref[...],
                preferred_element_type=jnp.float32)
    h = jnp.maximum(h + b2_ref[...], 0.0)
    # Layer 3: (bt, 512) @ (512, 512) + (1, 512), ReLU.
    h = jnp.dot(h.astype(jnp.bfloat16), w3_ref[...],
                preferred_element_type=jnp.float32)
    h = jnp.maximum(h + b3_ref[...], 0.0)
    # Output layer as a VPU multiply + lane reduction (avoids an N=1 matmul).
    # w4_ref is the (1, 512) weight row; b4_ref is (1, 1).
    out = jnp.sum(h * w4_ref[...], axis=-1, keepdims=True) + b4_ref[...]
    o_ref[...] = out.astype(o_ref.dtype)


def classifier_forward(x, params):
    """x: (B, ...) with prod(trailing dims) == 64.  Returns (B, 1) f32 logits."""
    w1, b1, w2, b2, w3, b3, w4, b4 = params
    x = x.reshape(x.shape[0], -1)                       # nn.Flatten()
    B, F = x.shape
    assert F == IN_F, f"expected {IN_F} flattened features, got {F}"

    max_tile, cores = _tpu_plan()
    bt = _pick_batch_tile(B, max_tile, cores)
    Bp = _round_up(B, bt)

    # Pad batch rows (sliced off at the end) and the K dim 64 -> 128 with zeros.
    x = jnp.pad(x, ((0, Bp - B), (0, IN_F_PAD - IN_F)))
    w1p = jnp.pad(w1, ((0, IN_F_PAD - IN_F), (0, 0)))

    # bf16 MXU inputs; accumulation stays f32 in-kernel. Biases/output stay f32.
    xb = x.astype(jnp.bfloat16)
    w1b = w1p.astype(jnp.bfloat16)
    w2b = w2.astype(jnp.bfloat16)
    w3b = w3.astype(jnp.bfloat16)

    grid = (Bp // bt,)
    flops = int(2 * Bp * (IN_F_PAD * HID + HID * HID + HID * HID + HID))
    bytes_accessed = int(
        xb.size * 2 + w1b.size * 2 + w2b.size * 2 + w3b.size * 2
        + (b1.size + b2.size + b3.size + w4.size + b4.size) * 4
        + Bp * OUT_F * 4)

    def build(single_buffer_weights):
        def resident(shape):
            # Full-array block, resident across the whole grid.
            if single_buffer_weights:
                return pl.BlockSpec(shape, lambda i: (0, 0),
                                    pipeline_mode=pl.Buffered(1))
            return pl.BlockSpec(shape, lambda i: (0, 0))

        return pl.pallas_call(
            mlp_kernel,
            out_shape=jax.ShapeDtypeStruct((Bp, OUT_F), jnp.float32),
            grid_spec=pltpu.PrefetchScalarGridSpec(
                num_scalar_prefetch=0,
                grid=grid,
                in_specs=[
                    pl.BlockSpec((bt, IN_F_PAD), lambda i: (i, 0)),  # x tile
                    resident((IN_F_PAD, HID)), resident((1, HID)),   # layer 1
                    resident((HID, HID)), resident((1, HID)),        # layer 2
                    resident((HID, HID)), resident((1, HID)),        # layer 3
                    resident((1, HID)), resident((1, OUT_F)),        # layer 4
                ],
                out_specs=pl.BlockSpec((bt, OUT_F), lambda i: (i, 0)),
            ),
            compiler_params=pltpu.CompilerParams(
                dimension_semantics=("parallel",)),
            cost_estimate=pl.CostEstimate(flops=flops, transcendentals=0,
                                          bytes_accessed=bytes_accessed),
        )

    args = (xb, w1b, b1, w2b, b2, w3b, b3, w4, b4)
    try:
        out = build(True)(*args)
    except Exception:
        # pipeline_mode=pl.Buffered(1) unsupported on this jax version/path;
        # default double-buffered weights are still only ~2.3 MiB of VMEM.
        out = build(False)(*args)

    return out[:B]


def init_params(key):
    """Mirror PyTorch nn.Linear default init (uniform +/- 1/sqrt(fan_in)).
    Layers 1-3 stored pre-transposed as (in, out); layer 4 as a (1, 512) row."""
    dims = [(IN_F, HID), (HID, HID), (HID, HID), (HID, OUT_F)]
    params = []
    for li, (fan_in, fan_out) in enumerate(dims):
        key, kw, kb = jax.random.split(key, 3)
        bound = 1.0 / np.sqrt(fan_in)
        if li < 3:
            w = jax.random.uniform(kw, (fan_in, fan_out), jnp.float32,
                                   -bound, bound)
        else:
            w = jax.random.uniform(kw, (fan_out, fan_in), jnp.float32,
                                   -bound, bound)          # (1, 512)
        b = jax.random.uniform(kb, (1, fan_out), jnp.float32, -bound, bound)
        params.extend([w, b])
    return tuple(params)


def reference_forward(x, params):
    """Pure-JAX reference matching the kernel's precision policy
    (bf16 matmul inputs, f32 accumulation, f32 biases and output).
    Note: intentionally diverges from a pure-f32 PyTorch forward by ~bf16
    rounding; expect up to ~1e-2 relative error against an f32 reference."""
    w1, b1, w2, b2, w3, b3, w4, b4 = params
    h = jnp.dot(x.astype(jnp.bfloat16), w1.astype(jnp.bfloat16),
                preferred_element_type=jnp.float32)
    h = jnp.maximum(h + b1, 0.0)
    h = jnp.dot(h.astype(jnp.bfloat16), w2.astype(jnp.bfloat16),
                preferred_element_type=jnp.float32)
    h = jnp.maximum(h + b2, 0.0)
    h = jnp.dot(h.astype(jnp.bfloat16), w3.astype(jnp.bfloat16),
                preferred_element_type=jnp.float32)
    h = jnp.maximum(h + b3, 0.0)
    return jnp.sum(h * w4, axis=-1, keepdims=True) + b4


if __name__ == "__main__":
    key = jax.random.PRNGKey(0)
    params = init_params(key)

    # 1) Small example consistent with the module: batch=8, input (8, 8, 8),
    #    which nn.Flatten() turns into (8, 64).
    key, kx = jax.random.split(key)
    x_small = jax.random.normal(kx, (8, 8, 8), jnp.float32)
    out_small = jax.block_until_ready(classifier_forward(x_small, params))
    ref_small = reference_forward(x_small.reshape(8, -1), params)
    np.testing.assert_allclose(np.asarray(out_small), np.asarray(ref_small),
                               rtol=2e-3, atol=2e-3)
    assert out_small.shape == (8, 1)

    # 2) Awkward batch (exercises the adaptive tile / minimal-padding path).
    key, kx = jax.random.split(key)
    x_mid = jax.random.normal(kx, (300, 4, 16), jnp.float32)
    out_mid = jax.block_until_ready(classifier_forward(x_mid, params))
    ref_mid = reference_forward(x_mid.reshape(300, -1), params)
    np.testing.assert_allclose(np.asarray(out_mid), np.asarray(ref_mid),
                               rtol=2e-3, atol=2e-3)
    assert out_mid.shape == (300, 1)

    # 3) Batch large enough to exercise a multi-step grid on every generation.
    key, kx = jax.random.split(key)
    x_big = jax.random.normal(kx, (1500, 64), jnp.float32)
    out_big = jax.block_until_ready(classifier_forward(x_big, params))
    ref_big = reference_forward(x_big, params)
    np.testing.assert_allclose(np.asarray(out_big), np.asarray(ref_big),
                               rtol=2e-3, atol=2e-3)
    assert out_big.shape == (1500, 1)

    print("KERNEL_OK")
</pallas_src>

<mosaic_0001>
module attributes {stable_mosaic.version = 11 : i64} {
  func.func @mlp_kernel(%arg0: i32, %arg1: memref<16x128xbf16, #tpu.memory_space<vmem>>, %arg2: memref<128x512xbf16, #tpu.memory_space<vmem>>, %arg3: memref<1x512xf32, #tpu.memory_space<vmem>>, %arg4: memref<512x512xbf16, #tpu.memory_space<vmem>>, %arg5: memref<1x512xf32, #tpu.memory_space<vmem>>, %arg6: memref<512x512xbf16, #tpu.memory_space<vmem>>, %arg7: memref<1x512xf32, #tpu.memory_space<vmem>>, %arg8: memref<1x512xf32, #tpu.memory_space<vmem>>, %arg9: memref<1x1xf32, #tpu.memory_space<vmem>>, %arg10: memref<16x1xf32, #tpu.memory_space<vmem>>) attributes {dimension_semantics = [#tpu.dimension_semantics<parallel>], iteration_bounds = array<i64: 1>, scalar_prefetch = 0 : i64, scratch_operands = 0 : i64, tpu.core_type = #tpu.core_type<tc>, window_params = [{transform_indices = @transform_0, window_bounds = array<i64: 16, 128>}, {pipeline_mode = #tpu.pipeline_mode<synchronous>, transform_indices = @transform_1, window_bounds = array<i64: 128, 512>}, {pipeline_mode = #tpu.pipeline_mode<synchronous>, transform_indices = @transform_2, window_bounds = array<i64: 1, 512>}, {pipeline_mode = #tpu.pipeline_mode<synchronous>, transform_indices = @transform_3, window_bounds = array<i64: 512, 512>}, {pipeline_mode = #tpu.pipeline_mode<synchronous>, transform_indices = @transform_4, window_bounds = array<i64: 1, 512>}, {pipeline_mode = #tpu.pipeline_mode<synchronous>, transform_indices = @transform_5, window_bounds = array<i64: 512, 512>}, {pipeline_mode = #tpu.pipeline_mode<synchronous>, transform_indices = @transform_6, window_bounds = array<i64: 1, 512>}, {pipeline_mode = #tpu.pipeline_mode<synchronous>, transform_indices = @transform_7, window_bounds = array<i64: 1, 512>}, {pipeline_mode = #tpu.pipeline_mode<synchronous>, transform_indices = @transform_8, window_bounds = array<i64: 1, 1>}, {transform_indices = @transform_9, window_bounds = array<i64: 16, 1>}]} {
    %c0 = arith.constant 0 : index
    %c0_0 = arith.constant 0 : index
    %0 = vector.load %arg1[%c0, %c0_0] : memref<16x128xbf16, #tpu.memory_space<vmem>>, vector<16x128xbf16>
    %c0_1 = arith.constant 0 : index
    %c0_2 = arith.constant 0 : index
    %1 = vector.load %arg2[%c0_1, %c0_2] : memref<128x512xbf16, #tpu.memory_space<vmem>>, vector<128x512xbf16>
    %cst = arith.constant dense<0.000000e+00> : vector<16x512xf32>
    %2 = tpu.matmul %0, %1, %cst {dimension_numbers = #tpu.dot_dimension_numbers<[1], [0], [0], [1], [0, 0, 1, 1], [], []>} : vector<16x128xbf16>, vector<128x512xbf16>, vector<16x512xf32> -> vector<16x512xf32>
    %c0_3 = arith.constant 0 : index
    %c0_4 = arith.constant 0 : index
    %3 = vector.load %arg3[%c0_3, %c0_4] : memref<1x512xf32, #tpu.memory_space<vmem>>, vector<1x512xf32>
    %4 = vector.broadcast %3 : vector<1x512xf32> to vector<16x512xf32>
    %5 = arith.addf %2, %4 : vector<16x512xf32>
    %cst_5 = arith.constant 0.000000e+00 : f32
    %6 = vector.broadcast %cst_5 : f32 to vector<16x512xf32>
    %7 = arith.maximumf %5, %6 : vector<16x512xf32>
    %8 = arith.truncf %7 : vector<16x512xf32> to vector<16x512xbf16>
    %c0_6 = arith.constant 0 : index
    %c0_7 = arith.constant 0 : index
    %9 = vector.load %arg4[%c0_6, %c0_7] : memref<512x512xbf16, #tpu.memory_space<vmem>>, vector<512x512xbf16>
    %cst_8 = arith.constant dense<0.000000e+00> : vector<16x512xf32>
    %10 = tpu.matmul %8, %9, %cst_8 {dimension_numbers = #tpu.dot_dimension_numbers<[1], [0], [0], [1], [0, 0, 1, 1], [], []>} : vector<16x512xbf16>, vector<512x512xbf16>, vector<16x512xf32> -> vector<16x512xf32>
    %c0_9 = arith.constant 0 : index
    %c0_10 = arith.constant 0 : index
    %11 = vector.load %arg5[%c0_9, %c0_10] : memref<1x512xf32, #tpu.memory_space<vmem>>, vector<1x512xf32>
    %12 = vector.broadcast %11 : vector<1x512xf32> to vector<16x512xf32>
    %13 = arith.addf %10, %12 : vector<16x512xf32>
    %cst_11 = arith.constant 0.000000e+00 : f32
    %14 = vector.broadcast %cst_11 : f32 to vector<16x512xf32>
    %15 = arith.maximumf %13, %14 : vector<16x512xf32>
    %16 = arith.truncf %15 : vector<16x512xf32> to vector<16x512xbf16>
    %c0_12 = arith.constant 0 : index
    %c0_13 = arith.constant 0 : index
    %17 = vector.load %arg6[%c0_12, %c0_13] : memref<512x512xbf16, #tpu.memory_space<vmem>>, vector<512x512xbf16>
    %cst_14 = arith.constant dense<0.000000e+00> : vector<16x512xf32>
    %18 = tpu.matmul %16, %17, %cst_14 {dimension_numbers = #tpu.dot_dimension_numbers<[1], [0], [0], [1], [0, 0, 1, 1], [], []>} : vector<16x512xbf16>, vector<512x512xbf16>, vector<16x512xf32> -> vector<16x512xf32>
    %c0_15 = arith.constant 0 : index
    %c0_16 = arith.constant 0 : index
    %19 = vector.load %arg7[%c0_15, %c0_16] : memref<1x512xf32, #tpu.memory_space<vmem>>, vector<1x512xf32>
    %20 = vector.broadcast %19 : vector<1x512xf32> to vector<16x512xf32>
    %21 = arith.addf %18, %20 : vector<16x512xf32>
    %cst_17 = arith.constant 0.000000e+00 : f32
    %22 = vector.broadcast %cst_17 : f32 to vector<16x512xf32>
    %23 = arith.maximumf %21, %22 : vector<16x512xf32>
    %c0_18 = arith.constant 0 : index
    %c0_19 = arith.constant 0 : index
    %24 = vector.load %arg8[%c0_18, %c0_19] : memref<1x512xf32, #tpu.memory_space<vmem>>, vector<1x512xf32>
    %25 = vector.broadcast %24 : vector<1x512xf32> to vector<16x512xf32>
    %26 = arith.mulf %23, %25 : vector<16x512xf32>
    %cst_20 = arith.constant dense<0.000000e+00> : vector<16xf32>
    %27 = vector.multi_reduction <add>, %26, %cst_20 [1] : vector<16x512xf32> to vector<16xf32>
    %28 = vector.shape_cast %27 : vector<16xf32> to vector<16x1xf32>
    %c0_21 = arith.constant 0 : index
    %c0_22 = arith.constant 0 : index
    %29 = vector.load %arg9[%c0_21, %c0_22] : memref<1x1xf32, #tpu.memory_space<vmem>>, vector<1x1xf32>
    %30 = vector.broadcast %29 : vector<1x1xf32> to vector<16x1xf32>
    %31 = arith.addf %28, %30 : vector<16x1xf32>
    %c0_23 = arith.constant 0 : index
    %c0_24 = arith.constant 0 : index
    %32 = vector.load %arg10[%c0_23, %c0_24] : memref<16x1xf32, #tpu.memory_space<vmem>>, vector<16x1xf32>
    tpu.vector_store %arg10[%c0_23, %c0_24], %31 {strides = array<i32>} : memref<16x1xf32, #tpu.memory_space<vmem>>, vector<16x1xf32>,
    return
  }
  func.func @transform_0(%arg0: i32) -> (i32, i32) {
    %c0_i32 = arith.constant 0 : i32
    %c0_i32_0 = arith.constant 0 : i32
    return %arg0, %c0_i32 : i32, i32
  }
  func.func @transform_1(%arg0: i32) -> (i32, i32) {
    %c0_i32 = arith.constant 0 : i32
    %c0_i32_0 = arith.constant 0 : i32
    %c0_i32_1 = arith.constant 0 : i32
    return %c0_i32, %c0_i32_0 : i32, i32
  }
  func.func @transform_2(%arg0: i32) -> (i32, i32) {
    %c0_i32 = arith.constant 0 : i32
    %c0_i32_0 = arith.constant 0 : i32
    %c0_i32_1 = arith.constant 0 : i32
    return %c0_i32, %c0_i32_0 : i32, i32
  }
  func.func @transform_3(%arg0: i32) -> (i32, i32) {
    %c0_i32 = arith.constant 0 : i32
    %c0_i32_0 = arith.constant 0 : i32
    %c0_i32_1 = arith.constant 0 : i32
    return %c0_i32, %c0_i32_0 : i32, i32
  }
  func.func @transform_4(%arg0: i32) -> (i32, i32) {
    %c0_i32 = arith.constant 0 : i32
    %c0_i32_0 = arith.constant 0 : i32
    %c0_i32_1 = arith.constant 0 : i32
    return %c0_i32, %c0_i32_0 : i32, i32
  }
  func.func @transform_5(%arg0: i32) -> (i32, i32) {
    %c0_i32 = arith.constant 0 : i32
    %c0_i32_0 = arith.constant 0 : i32
    %c0_i32_1 = arith.constant 0 : i32
    return %c0_i32, %c0_i32_0 : i32, i32
  }
  func.func @transform_6(%arg0: i32) -> (i32, i32) {
    %c0_i32 = arith.constant 0 : i32
    %c0_i32_0 = arith.constant 0 : i32
    %c0_i32_1 = arith.constant 0 : i32
    return %c0_i32, %c0_i32_0 : i32, i32
  }
  func.func @transform_7(%arg0: i32) -> (i32, i32) {
    %c0_i32 = arith.constant 0 : i32
    %c0_i32_0 = arith.constant 0 : i32
    %c0_i32_1 = arith.constant 0 : i32
    return %c0_i32, %c0_i32_0 : i32, i32
  }
  func.func @transform_8(%arg0: i32) -> (i32, i32) {
    %c0_i32 = arith.constant 0 : i32
    %c0_i32_0 = arith.constant 0 : i32
    %c0_i32_1 = arith.constant 0 : i32
    return %c0_i32, %c0_i32_0 : i32, i32
  }
  func.func @transform_9(%arg0: i32) -> (i32, i32) {
    %c0_i32 = arith.constant 0 : i32
    %c0_i32_0 = arith.constant 0 : i32
    return %arg0, %c0_i32 : i32, i32
  }
}

module attributes {stable_mosaic.version = 11 : i64} {
  func.func @mlp_kernel(%arg0: i32, %arg1: memref<16x128xbf16, #tpu.memory_space<vmem>>, %arg2: memref<128x512xbf16, #tpu.memory_space<vmem>>, %arg3: memref<1x512xf32, #tpu.memory_space<vmem>>, %arg4: memref<512x512xbf16, #tpu.memory_space<vmem>>, %arg5: memref<1x512xf32, #tpu.memory_space<vmem>>, %arg6: memref<512x512xbf16, #tpu.memory_space<vmem>>, %arg7: memref<1x512xf32, #tpu.memory_space<vmem>>, %arg8: memref<1x512xf32, #tpu.memory_space<vmem>>, %arg9: memref<1x1xf32, #tpu.memory_space<vmem>>, %arg10: memref<16x1xf32, #tpu.memory_space<vmem>>) attributes {dimension_semantics = [#tpu.dimension_semantics<parallel>], iteration_bounds = array<i64: 1>, scalar_prefetch = 0 : i64, scratch_operands = 0 : i64, tpu.core_type = #tpu.core_type<tc>, window_params = [{transform_indices = @transform_0, window_bounds = array<i64: 16, 128>}, {pipeline_mode = #tpu.pipeline_mode<synchronous>, transform_indices = @transform_1, window_bounds = array<i64: 128, 512>}, {pipeline_mode = #tpu.pipeline_mode<synchronous>, transform_indices = @transform_2, window_bounds = array<i64: 1, 512>}, {pipeline_mode = #tpu.pipeline_mode<synchronous>, transform_indices = @transform_3, window_bounds = array<i64: 512, 512>}, {pipeline_mode = #tpu.pipeline_mode<synchronous>, transform_indices = @transform_4, window_bounds = array<i64: 1, 512>}, {pipeline_mode = #tpu.pipeline_mode<synchronous>, transform_indices = @transform_5, window_bounds = array<i64: 512, 512>}, {pipeline_mode = #tpu.pipeline_mode<synchronous>, transform_indices = @transform_6, window_bounds = array<i64: 1, 512>}, {pipeline_mode = #tpu.pipeline_mode<synchronous>, transform_indices = @transform_7, window_bounds = array<i64: 1, 512>}, {pipeline_mode = #tpu.pipeline_mode<synchronous>, transform_indices = @transform_8, window_bounds = array<i64: 1, 1>}, {transform_indices = @transform_9, window_bounds = array<i64: 16, 1>}]} {
    %c0 = arith.constant 0 : index
    %c0_0 = arith.constant 0 : index
    %0 = vector.load %arg1[%c0, %c0_0] : memref<16x128xbf16, #tpu.memory_space<vmem>>, vector<16x128xbf16>
    %c0_1 = arith.constant 0 : index
    %c0_2 = arith.constant 0 : index
    %1 = vector.load %arg2[%c0_1, %c0_2] : memref<128x512xbf16, #tpu.memory_space<vmem>>, vector<128x512xbf16>
    %cst = arith.constant dense<0.000000e+00> : vector<16x512xf32>
    %2 = tpu.matmul %0, %1, %cst {dimension_numbers = #tpu.dot_dimension_numbers<[1], [0], [0], [1], [0, 0, 1, 1], [], []>} : vector<16x128xbf16>, vector<128x512xbf16>, vector<16x512xf32> -> vector<16x512xf32>
    %c0_3 = arith.constant 0 : index
    %c0_4 = arith.constant 0 : index
    %3 = vector.load %arg3[%c0_3, %c0_4] : memref<1x512xf32, #tpu.memory_space<vmem>>, vector<1x512xf32>
    %4 = vector.broadcast %3 : vector<1x512xf32> to vector<16x512xf32>
    %5 = arith.addf %2, %4 : vector<16x512xf32>
    %cst_5 = arith.constant 0.000000e+00 : f32
    %6 = vector.broadcast %cst_5 : f32 to vector<16x512xf32>
    %7 = arith.maximumf %5, %6 : vector<16x512xf32>
    %8 = arith.truncf %7 : vector<16x512xf32> to vector<16x512xbf16>
    %c0_6 = arith.constant 0 : index
    %c0_7 = arith.constant 0 : index
    %9 = vector.load %arg4[%c0_6, %c0_7] : memref<512x512xbf16, #tpu.memory_space<vmem>>, vector<512x512xbf16>
    %cst_8 = arith.constant dense<0.000000e+00> : vector<16x512xf32>
    %10 = tpu.matmul %8, %9, %cst_8 {dimension_numbers = #tpu.dot_dimension_numbers<[1], [0], [0], [1], [0, 0, 1, 1], [], []>} : vector<16x512xbf16>, vector<512x512xbf16>, vector<16x512xf32> -> vector<16x512xf32>
    %c0_9 = arith.constant 0 : index
    %c0_10 = arith.constant 0 : index
    %11 = vector.load %arg5[%c0_9, %c0_10] : memref<1x512xf32, #tpu.memory_space<vmem>>, vector<1x512xf32>
    %12 = vector.broadcast %11 : vector<1x512xf32> to vector<16x512xf32>
    %13 = arith.addf %10, %12 : vector<16x512xf32>
    %cst_11 = arith.constant 0.000000e+00 : f32
    %14 = vector.broadcast %cst_11 : f32 to vector<16x512xf32>
    %15 = arith.maximumf %13, %14 : vector<16x512xf32>
    %16 = arith.truncf %15 : vector<16x512xf32> to vector<16x512xbf16>
    %c0_12 = arith.constant 0 : index
    %c0_13 = arith.constant 0 : index
    %17 = vector.load %arg6[%c0_12, %c0_13] : memref<512x512xbf16, #tpu.memory_space<vmem>>, vector<512x512xbf16>
    %cst_14 = arith.constant dense<0.000000e+00> : vector<16x512xf32>
    %18 = tpu.matmul %16, %17, %cst_14 {dimension_numbers = #tpu.dot_dimension_numbers<[1], [0], [0], [1], [0, 0, 1, 1], [], []>} : vector<16x512xbf16>, vector<512x512xbf16>, vector<16x512xf32> -> vector<16x512xf32>
    %c0_15 = arith.constant 0 : index
    %c0_16 = arith.constant 0 : index
    %19 = vector.load %arg7[%c0_15, %c0_16] : memref<1x512xf32, #tpu.memory_space<vmem>>, vector<1x512xf32>
    %20 = vector.broadcast %19 : vector<1x512xf32> to vector<16x512xf32>
    %21 = arith.addf %18, %20 : vector<16x512xf32>
    %cst_17 = arith.constant 0.000000e+00 : f32
    %22 = vector.broadcast %cst_17 : f32 to vector<16x512xf32>
    %23 = arith.maximumf %21, %22 : vector<16x512xf32>
    %c0_18 = arith.constant 0 : index
    %c0_19 = arith.constant 0 : index
    %24 = vector.load %arg8[%c0_18, %c0_19] : memref<1x512xf32, #tpu.memory_space<vmem>>, vector<1x512xf32>
    %25 = vector.broadcast %24 : vector<1x512xf32> to vector<16x512xf32>
    %26 = arith.mulf %23, %25 : vector<16x512xf32>
    %cst_20 = arith.constant dense<0.000000e+00> : vector<16xf32>
    %27 = vector.multi_reduction <add>, %26, %cst_20 [1] : vector<16x512xf32> to vector<16xf32>
    %28 = vector.shape_cast %27 : vector<16xf32> to vector<16x1xf32>
    %c0_21 = arith.constant 0 : index
    %c0_22 = arith.constant 0 : index
    %29 = vector.load %arg9[%c0_21, %c0_22] : memref<1x1xf32, #tpu.memory_space<vmem>>, vector<1x1xf32>
    %30 = vector.broadcast %29 : vector<1x1xf32> to vector<16x1xf32>
    %31 = arith.addf %28, %30 : vector<16x1xf32>
    %c0_23 = arith.constant 0 : index
    %c0_24 = arith.constant 0 : index
    %32 = vector.load %arg10[%c0_23, %c0_24] : memref<16x1xf32, #tpu.memory_space<vmem>>, vector<16x1xf32>
    tpu.vector_store %arg10[%c0_23, %c0_24], %31 {strides = array<i32>} : memref<16x1xf32, #tpu.memory_space<vmem>>, vector<16x1xf32>,
    return
  }
  func.func @transform_0(%arg0: i32) -> (i32, i32) {
    %c0_i32 = arith.constant 0 : i32
    %c0_i32_0 = arith.constant 0 : i32
    return %arg0, %c0_i32 : i32, i32
  }
  func.func @transform_1(%arg0: i32) -> (i32, i32) {
    %c0_i32 = arith.constant 0 : i32
    %c0_i32_0 = arith.constant 0 : i32
    %c0_i32_1 = arith.constant 0 : i32
    return %c0_i32, %c0_i32_0 : i32, i32
  }
  func.func @transform_2(%arg0: i32) -> (i32, i32) {
    %c0_i32 = arith.constant 0 : i32
    %c0_i32_0 = arith.constant 0 : i32
    %c0_i32_1 = arith.constant 0 : i32
    return %c0_i32, %c0_i32_0 : i32, i32
  }
  func.func @transform_3(%arg0: i32) -> (i32, i32) {
    %c0_i32 = arith.constant 0 : i32
    %c0_i32_0 = arith.constant 0 : i32
    %c0_i32_1 = arith.constant 0 : i32
    return %c0_i32, %c0_i32_0 : i32, i32
  }
  func.func @transform_4(%arg0: i32) -> (i32, i32) {
    %c0_i32 = arith.constant 0 : i32
    %c0_i32_0 = arith.constant 0 : i32
    %c0_i32_1 = arith.constant 0 : i32
    return %c0_i32, %c0_i32_0 : i32, i32
  }
  func.func @transform_5(%arg0: i32) -> (i32, i32) {
    %c0_i32 = arith.constant 0 : i32
    %c0_i32_0 = arith.constant 0 : i32
    %c0_i32_1 = arith.constant 0 : i32
    return %c0_i32, %c0_i32_0 : i32, i32
  }
  func.func @transform_6(%arg0: i32) -> (i32, i32) {
    %c0_i32 = arith.constant 0 : i32
    %c0_i32_0 = arith.constant 0 : i32
    %c0_i32_1 = arith.constant 0 : i32
    return %c0_i32, %c0_i32_0 : i32, i32
  }
  func.func @transform_7(%arg0: i32) -> (i32, i32) {
    %c0_i32 = arith.constant 0 : i32
    %c0_i32_0 = arith.constant 0 : i32
    %c0_i32_1 = arith.constant 0 : i32
    return %c0_i32, %c0_i32_0 : i32, i32
  }
  func.func @transform_8(%arg0: i32) -> (i32, i32) {
    %c0_i32 = arith.constant 0 : i32
    %c0_i32_0 = arith.constant 0 : i32
    %c0_i32_1 = arith.constant 0 : i32
    return %c0_i32, %c0_i32_0 : i32, i32
  }
  func.func @transform_9(%arg0: i32) -> (i32, i32) {
    %c0_i32 = arith.constant 0 : i32
    %c0_i32_0 = arith.constant 0 : i32
    return %arg0, %c0_i32 : i32, i32
  }
}

</mosaic_0001>

<bundles_post_ra>
// kernel: tpu_custom_call.1
= control target key start
LH: loop header
LB: loop body
LE: loop exit
PB: predicated region body
PF: predicated region fallthrough
CT: control target
= control target key end

     0   :  { %s3447_s0 = inlined_call_operand.hbm [shape: bf16[16,128], index: 0, kind: input, shape index: {}]   ;;  %s3448_s1 = inlined_call_operand.hbm [shape: bf16[128,512], index: 1, kind: input, shape index: {}]   ;;  %s3449_s2 = inlined_call_operand.vmem [shape: f32[1,512], index: 2, kind: input, shape index: {}]   ;;  %s3450_s3 = inlined_call_operand.hbm [shape: bf16[512,512], index: 3, kind: input, shape index: {}]   ;;  %s3451_s4 = inlined_call_operand.vmem [shape: f32[1,512], index: 4, kind: input, shape index: {}]   ;;  %s3452_s5 = inlined_call_operand.hbm [shape: bf16[512,512], index: 5, kind: input, shape index: {}]   ;;  %s3453_s6 = inlined_call_operand.vmem [shape: f32[1,512], index: 6, kind: input, shape index: {}]   ;;  %s3454_s7 = inlined_call_operand.vmem [shape: f32[1,512], index: 7, kind: input, shape index: {}]   ;;  %s3455_s8 = inlined_call_operand.<no memory space> [shape: f32[1,1], index: 8, kind: input, shape index: {}]   ;;  %s3456_s9 = inlined_call_operand.vmem [shape: f32[16,1], index: 9, kind: output, shape index: {}]  }
   0x1   :  { %v14_v0 = vstv %s3455_s8 }
   0x2   :  { %15 = vst [vmem:[#allocation2] sm:$0x1] %v14_v0 }
   0x3   :  { %16 = vsyncpa [#allocation4], 0 }
   0x4   :  { %17 = vsyncpa [#allocation6], 0 }
   0x5   :  { %18 = vsyncpa [#allocation9], 0  ;;  %s3271_s11 = smov [#allocation5]   ;;  %s3177_s15 = scalar_lea.hbm %s3448_s1, 4096 }
   0x6   :  { %s36_s12 = sshll.u32 %s3271_s11, 4  ;;  %p3178_p0 = scmp.ne.s32.totalorder %s3448_s1, %s3177_s15  ;;  %s37_s12 = int_to_ptr.vmem [resolvable:$true] %s36_s12 }
   0x7   :  { %p3181_p1 = scmp.lt.u32.totalorder %s3177_s15, %s3448_s1 }
   0x9   :  { %p3183_p2 = pnand %p3181_p1, %p3178_p0 }
   0xb   :  { %3186 = shalt.err (!%p3183_p2)
}
   0xc   :  { %s3187_s8 = scalar_lea.vmem %s37_s12, 4096  ;;  %p3192_p4 = scmp.lt.s32.totalorder %s37_s12, %s37_s12 }
   0xd   :  { %p3188_p3 = scmp.ne.s32.totalorder %s37_s12, %s3187_s8  ;;  %p3193_p5 = scmp.lt.s32.totalorder %s3187_s8, %s3187_s8 }
   0xf   :  { %p3194_p6 = por %p3193_p5, %p3192_p4 }
  0x11   :  { %p3195_p7 = pnand %p3194_p6, %p3188_p3 }
  0x13   :  { %3198 = shalt.err (!%p3195_p7)
}
  0x14   :  { %s3272_s20 = smov 256   ;;  %s3273_s21 = smov 16  }
  0x15   :  { %42 = dma.hbm_to_vmem [thread:$0]  %s3448_s1, 4096, %s37_s12, [#allocation6], %s3272_s20, %s3272_s20, %s3273_s21  }
  0x16   :  { %s3274_s24 = smov [#allocation3]   ;;  %s3199_s28 = scalar_lea.hbm %s3447_s0, 128 }
  0x17   :  { %s24_s25 = sshll.u32 %s3274_s24, 4  ;;  %p3200_p8 = scmp.ne.s32.totalorder %s3447_s0, %s3199_s28  ;;  %s25_s25 = int_to_ptr.vmem [resolvable:$true] %s24_s25 }
  0x18   :  { %p3203_p9 = scmp.lt.u32.totalorder %s3199_s28, %s3447_s0 }
  0x1a   :  { %p3205_p10 = pnand %p3203_p9, %p3200_p8 }
  0x1c   :  { %3208 = shalt.err (!%p3205_p10)
}
  0x1d   :  { %s3209_s13 = scalar_lea.vmem %s25_s25, 128  ;;  %p3214_p12 = scmp.lt.s32.totalorder %s25_s25, %s25_s25 }
  0x1e   :  { %p3210_p11 = scmp.ne.s32.totalorder %s25_s25, %s3209_s13  ;;  %p3215_p13 = scmp.lt.s32.totalorder %s3209_s13, %s3209_s13 }
  0x20   :  { %p3216_p0 = por %p3215_p13, %p3214_p12 }
  0x22   :  { %p3217_p1 = pnand %p3216_p0, %p3210_p11 }
  0x24   :  { %3220 = shalt.err (!%p3217_p1)
}
  0x25   :  { %s3275_s1 = smov 64   ;;  %s3276_s12 = smov 4  }
  0x26   :  { %30 = dma.hbm_to_vmem [thread:$0]  %s3447_s0, 128, %s25_s25, [#allocation4], %s3275_s1, %s3275_s1, %s3276_s12  }
  0x27   :  { %s3277_s16 = smov [#allocation7]   ;;  %s3278_s18 = smov [#allocation8]  }
  0x28   :  { %s50_s17 = sshll.u32 %s3277_s16, 4  ;;  %s64_s19 = sshll.u32 %s3278_s18, 4  ;;  %s51_s17 = int_to_ptr.vmem [resolvable:$true] %s50_s17  ;;  %s3360_s19 = int_to_ptr.vmem [resolvable:$true] %s64_s19 }
  0x29   :  { %s3221_s23 = scalar_lea.hbm %s3450_s3, 16384 }
  0x2a   :  { %p3222_p2 = scmp.ne.s32.totalorder %s3450_s3, %s3221_s23  ;;  %p3225_p3 = scmp.lt.u32.totalorder %s3221_s23, %s3450_s3 }
  0x2c   :  { %p3227_p4 = pnand %p3225_p3, %p3222_p2 }
  0x2e   :  { %3230 = shalt.err (!%p3227_p4)
}
  0x2f   :  { %s3231_s0 = scalar_lea.vmem %s51_s17, 16384  ;;  %p3236_p6 = scmp.lt.s32.totalorder %s51_s17, %s51_s17 }
  0x30   :  { %p3232_p5 = scmp.ne.s32.totalorder %s51_s17, %s3231_s0  ;;  %p3237_p7 = scmp.lt.s32.totalorder %s3231_s0, %s3231_s0 }
  0x32   :  { %p3238_p8 = por %p3237_p7, %p3236_p6 }
  0x34   :  { %p3239_p9 = pnand %p3238_p8, %p3232_p5 }
  0x36   :  { %3242 = shalt.err (!%p3239_p9)
}
  0x37   :  { %56 = dma.hbm_to_vmem [thread:$0]  %s3450_s3, 16384, %s51_s17, [#allocation6], %s3272_s20, %s3272_s20, %s3273_s21  }
  0x38   :  { %s3243_s11 = scalar_lea.hbm %s3452_s5, 16384 }
  0x39   :  { %p3244_p10 = scmp.ne.s32.totalorder %s3452_s5, %s3243_s11  ;;  %p3247_p11 = scmp.lt.u32.totalorder %s3243_s11, %s3452_s5 }
  0x3b   :  { %p3249_p12 = pnand %p3247_p11, %p3244_p10 }
  0x3d   :  { %3252 = shalt.err (!%p3249_p12)
}
  0x3e   :  { %s3253_s15 = scalar_lea.vmem %s3360_s19, 16384  ;;  %p3258_p0 = scmp.lt.s32.totalorder %s3360_s19, %s3360_s19 }
  0x3f   :  { %p3254_p13 = scmp.ne.s32.totalorder %s3360_s19, %s3253_s15  ;;  %p3259_p1 = scmp.lt.s32.totalorder %s3253_s15, %s3253_s15 }
  0x41   :  { %p3260_p2 = por %p3259_p1, %p3258_p0 }
  0x43   :  { %p3261_p3 = pnand %p3260_p2, %p3254_p13 }
  0x45   :  { %3264 = shalt.err (!%p3261_p3)
}
  0x46   :  { %70 = dma.hbm_to_vmem [thread:$0]  %s3452_s5, 16384, %s3360_s19, [#allocation9], %s3272_s20, %s3272_s20, %s3273_s21  }
  0x47   :  { %3265 = dma.done.wait [#allocation4], 128  }
  0x48   :  { %3266 = vsyncadd [#allocation4], 4294967168 }
  0x49   :  { %3267 = dma.done.wait [#allocation6], 20480  }
  0x4a   :  { %3268 = vsyncadd [#allocation6], 4294946816 }
  0x4b   :  { %3269 = dma.done.wait [#allocation9], 16384  }
  0x4c   :  { %3270 = vsyncadd [#allocation9], 4294950912  ;;  %v3279_v1 = vmov 0   ;;  %v2744_v2 = vld [vmem:[#allocation5 + $0x4] ss:$16 sps:$4 sm:$0xff]   ;;  %v2768_v30 = vld [vmem:[#allocation3] sm:$0xff]  }
  0x4d   :  { %344 = vmatprep.mubr.bf16.mxu0 %v3279_v1  ;;  %387 = vmatprep.mubr.bf16.mxu1 %v3279_v1  ;;  %v2746_v3 = vld [vmem:[#allocation5] ss:$16 sps:$4 sm:$0xff]   ;;  %v2747_v4 = vld [vmem:[#allocation5 + $0x24] ss:$16 sps:$4 sm:$0xff]   ;;  %v2769_v11 = vld [vmem:[#allocation5 + $0xc] ss:$16 sps:$4 sm:$0xff]  }
  0x4e   :  { %312 = vmatprep.subr.bf16.mxu0 %v2744_v2  ;;  %v2749_v5 = vld [vmem:[#allocation5 + $0x20] ss:$16 sps:$4 sm:$0xff]   ;;  %v2750_v6 = vld [vmem:[#allocation5 + $0x44] ss:$16 sps:$4 sm:$0xff]   ;;  %v2771_v12 = vld [vmem:[#allocation5 + $0x8] ss:$16 sps:$4 sm:$0xff]   ;;  %355 = vmatprep.subr.bf16.mxu1 %v2769_v11 }
  0x4f   :  { %313 = vmatpush1.bf16.msra.mxu0 %v2746_v3  ;;  %v2752_v7 = vld [vmem:[#allocation5 + $0x40] ss:$16 sps:$4 sm:$0xff]   ;;  %v2753_v8 = vld [vmem:[#allocation5 + $0x64] ss:$16 sps:$4 sm:$0xff]   ;;  %v2772_v13 = vld [vmem:[#allocation5 + $0x2c] ss:$16 sps:$4 sm:$0xff]   ;;  %356 = vmatpush1.bf16.msra.mxu1 %v2771_v12 }
  0x50   :  { %314 = vmatprep.subr.bf16.mxu0 %v2747_v4  ;;  %v2755_v9 = vld [vmem:[#allocation5 + $0x60] ss:$16 sps:$4 sm:$0xff]   ;;  %v2756_v10 = vld [vmem:[#allocation5 + $0x84] ss:$16 sps:$4 sm:$0xff]   ;;  %v2774_v15 = vld [vmem:[#allocation5 + $0x28] ss:$16 sps:$4 sm:$0xff]   ;;  %357 = vmatprep.subr.bf16.mxu1 %v2772_v13 }
  0x51   :  { %v2758_v14 = vld [vmem:[#allocation5 + $0x80] ss:$16 sps:$4 sm:$0xff]   ;;  %v2759_v16 = vld [vmem:[#allocation5 + $0xa4] ss:$16 sps:$4 sm:$0xff]   ;;  %v2775_v17 = vld [vmem:[#allocation5 + $0x4c] ss:$16 sps:$4 sm:$0xff]  }
  0x52   :  { %v2761_v18 = vld [vmem:[#allocation5 + $0xa0] ss:$16 sps:$4 sm:$0xff]   ;;  %v2777_v19 = vld [vmem:[#allocation5 + $0x48] ss:$16 sps:$4 sm:$0xff]   ;;  %v2762_v20 = vld [vmem:[#allocation5 + $0xc4] ss:$16 sps:$4 sm:$0xff]  }
  0x53   :  { %315 = vmatpush1.bf16.msra.mxu0 %v2749_v5  ;;  %358 = vmatpush1.bf16.msra.mxu1 %v2774_v15  ;;  %v2778_v21 = vld [vmem:[#allocation5 + $0x6c] ss:$16 sps:$4 sm:$0xff]   ;;  %v2764_v22 = vld [vmem:[#allocation5 + $0xc0] ss:$16 sps:$4 sm:$0xff]   ;;  %v2780_v23 = vld [vmem:[#allocation5 + $0x68] ss:$16 sps:$4 sm:$0xff]  }
  0x54   :  { %316 = vmatprep.subr.bf16.mxu0 %v2750_v6  ;;  %359 = vmatprep.subr.bf16.mxu1 %v2775_v17  ;;  %v2765_v24 = vld [vmem:[#allocation5 + $0xe4] ss:$16 sps:$4 sm:$0xff]   ;;  %v2781_v25 = vld [vmem:[#allocation5 + $0x8c] ss:$16 sps:$4 sm:$0xff]   ;;  %v2767_v26 = vld [vmem:[#allocation5 + $0xe0] ss:$16 sps:$4 sm:$0xff]  }
  0x55   :  { %v2783_v27 = vld [vmem:[#allocation5 + $0x88] ss:$16 sps:$4 sm:$0xff]   ;;  %v2784_v28 = vld [vmem:[#allocation5 + $0xac] ss:$16 sps:$4 sm:$0xff]   ;;  %v2795_v29 = vld [vmem:[#allocation7 + $0x4] ss:$16 sps:$4 sm:$0xff]  }
  0x56   :  { %v2786_v31 = vld [vmem:[#allocation5 + $0xa8] ss:$16 sps:$4 sm:$0xff]   ;;  %v2793_v32 = vld [vmem:[#allocation7] ss:$16 sps:$4 sm:$0xff]   ;;  %v2787_v33 = vld [vmem:[#allocation5 + $0xcc] ss:$16 sps:$4 sm:$0xff]  }
  0x57   :  { %317 = vmatpush1.bf16.msra.mxu0 %v2752_v7  ;;  %360 = vmatpush1.bf16.msra.mxu1 %v2777_v19  ;;  %v2801_v34 = vld [vmem:[#allocation7 + $0x24] ss:$16 sps:$4 sm:$0xff]   ;;  %v2789_v35 = vld [vmem:[#allocation5 + $0xc8] ss:$16 sps:$4 sm:$0xff]   ;;  %v2799_v36 = vld [vmem:[#allocation7 + $0x20] ss:$16 sps:$4 sm:$0xff]  }
  0x58   :  { %318 = vmatprep.subr.bf16.mxu0 %v2753_v8  ;;  %361 = vmatprep.subr.bf16.mxu1 %v2778_v21  ;;  %v2790_v37 = vld [vmem:[#allocation5 + $0xec] ss:$16 sps:$4 sm:$0xff]   ;;  %v2807_v38 = vld [vmem:[#allocation7 + $0x44] ss:$16 sps:$4 sm:$0xff]   ;;  %v2792_v39 = vld [vmem:[#allocation5 + $0xe8] ss:$16 sps:$4 sm:$0xff]  }
  0x59   :  { %v2805_v40 = vld [vmem:[#allocation7 + $0x40] ss:$16 sps:$4 sm:$0xff]   ;;  %v2798_v41 = vld [vmem:[#allocation7 + $0xc] ss:$16 sps:$4 sm:$0xff]   ;;  %v2813_v42 = vld [vmem:[#allocation7 + $0x64] ss:$16 sps:$4 sm:$0xff]  }
  0x5a   :  { %v2796_v43 = vld [vmem:[#allocation7 + $0x8] ss:$16 sps:$4 sm:$0xff]   ;;  %v2811_v44 = vld [vmem:[#allocation7 + $0x60] ss:$16 sps:$4 sm:$0xff]   ;;  %v2804_v45 = vld [vmem:[#allocation7 + $0x2c] ss:$16 sps:$4 sm:$0xff]  }
  0x5b   :  { %319 = vmatpush1.bf16.msra.mxu0 %v2755_v9  ;;  %362 = vmatpush1.bf16.msra.mxu1 %v2780_v23  ;;  %v2819_v46 = vld [vmem:[#allocation7 + $0x84] ss:$16 sps:$4 sm:$0xff]   ;;  %v2802_v47 = vld [vmem:[#allocation7 + $0x28] ss:$16 sps:$4 sm:$0xff]   ;;  %v2817_v48 = vld [vmem:[#allocation7 + $0x80] ss:$16 sps:$4 sm:$0xff]  }
  0x5c   :  { %320 = vmatprep.subr.bf16.mxu0 %v2756_v10  ;;  %363 = vmatprep.subr.bf16.mxu1 %v2781_v25  ;;  %v2810_v49 = vld [vmem:[#allocation7 + $0x4c] ss:$16 sps:$4 sm:$0xff]   ;;  %v2825_v50 = vld [vmem:[#allocation7 + $0xa4] ss:$16 sps:$4 sm:$0xff]   ;;  %v2808_v51 = vld [vmem:[#allocation7 + $0x48] ss:$16 sps:$4 sm:$0xff]  }
  0x5d   :  { %v2823_v52 = vld [vmem:[#allocation7 + $0xa0] ss:$16 sps:$4 sm:$0xff]   ;;  %v2816_v53 = vld [vmem:[#allocation7 + $0x6c] ss:$16 sps:$4 sm:$0xff]   ;;  %v2831_v54 = vld [vmem:[#allocation7 + $0xc4] ss:$16 sps:$4 sm:$0xff]  }
  0x5e   :  { %v2814_v55 = vld [vmem:[#allocation7 + $0x68] ss:$16 sps:$4 sm:$0xff]   ;;  %v2829_v56 = vld [vmem:[#allocation7 + $0xc0] ss:$16 sps:$4 sm:$0xff]   ;;  %v2822_v57 = vld [vmem:[#allocation7 + $0x8c] ss:$16 sps:$4 sm:$0xff]  }
  0x5f   :  { %321 = vmatpush1.bf16.msra.mxu0 %v2758_v14  ;;  %364 = vmatpush1.bf16.msra.mxu1 %v2783_v27  ;;  %v2837_v58 = vld [vmem:[#allocation7 + $0xe4] ss:$16 sps:$4 sm:$0xff]   ;;  %v2820_v59 = vld [vmem:[#allocation7 + $0x88] ss:$16 sps:$4 sm:$0xff]   ;;  %v2828_v60 = vld [vmem:[#allocation7 + $0xac] ss:$16 sps:$4 sm:$0xff]  }
  0x60   :  { %322 = vmatprep.subr.bf16.mxu0 %v2759_v16  ;;  %365 = vmatprep.subr.bf16.mxu1 %v2784_v28  ;;  %v2835_v61 = vld [vmem:[#allocation7 + $0xe0] ss:$16 sps:$4 sm:$0xff]   ;;  %v2843_v62 = vld [vmem:[#allocation7 + $0x104] ss:$16 sps:$4 sm:$0xff]   ;;  %v2826_v63 = vld [vmem:[#allocation7 + $0xa8] ss:$16 sps:$4 sm:$0xff]  }
  0x61   :  { %v2841_v0 = vld [vmem:[#allocation7 + $0x100] ss:$16 sps:$4 sm:$0xff]   ;;  %v2834_v1 = vld [vmem:[#allocation7 + $0xcc] ss:$16 sps:$4 sm:$0xff]   ;;  %v2849_v2 = vld [vmem:[#allocation7 + $0x124] ss:$16 sps:$4 sm:$0xff]  }
  0x62   :  { %v2832_v3 = vld [vmem:[#allocation7 + $0xc8] ss:$16 sps:$4 sm:$0xff]   ;;  %v2847_v4 = vld [vmem:[#allocation7 + $0x120] ss:$16 sps:$4 sm:$0xff]   ;;  %v2840_v5 = vld [vmem:[#allocation7 + $0xec] ss:$16 sps:$4 sm:$0xff]  }
  0x63   :  { %323 = vmatpush1.bf16.msra.mxu0 %v2761_v18  ;;  %366 = vmatpush1.bf16.msra.mxu1 %v2786_v31  ;;  %v2855_v6 = vld [vmem:[#allocation7 + $0x144] ss:$16 sps:$4 sm:$0xff]   ;;  %v2838_v7 = vld [vmem:[#allocation7 + $0xe8] ss:$16 sps:$4 sm:$0xff]   ;;  %v2853_v8 = vld [vmem:[#allocation7 + $0x140] ss:$16 sps:$4 sm:$0xff]  }
  0x64   :  { %324 = vmatprep.subr.bf16.mxu0 %v2762_v20  ;;  %367 = vmatprep.subr.bf16.mxu1 %v2787_v33  ;;  %v2846_v9 = vld [vmem:[#allocation7 + $0x10c] ss:$16 sps:$4 sm:$0xff]   ;;  %v2861_v10 = vld [vmem:[#allocation7 + $0x164] ss:$16 sps:$4 sm:$0xff]   ;;  %v2844_v11 = vld [vmem:[#allocation7 + $0x108] ss:$16 sps:$4 sm:$0xff]  }
  0x65   :  { %v2859_v12 = vld [vmem:[#allocation7 + $0x160] ss:$16 sps:$4 sm:$0xff]   ;;  %v2852_v13 = vld [vmem:[#allocation7 + $0x12c] ss:$16 sps:$4 sm:$0xff]   ;;  %v2867_v14 = vld [vmem:[#allocation7 + $0x184] ss:$16 sps:$4 sm:$0xff]  }
  0x66   :  { %v2850_v15 = vld [vmem:[#allocation7 + $0x128] ss:$16 sps:$4 sm:$0xff]   ;;  %v2865_v16 = vld [vmem:[#allocation7 + $0x180] ss:$16 sps:$4 sm:$0xff]   ;;  %v2858_v17 = vld [vmem:[#allocation7 + $0x14c] ss:$16 sps:$4 sm:$0xff]  }
  0x67   :  { %325 = vmatpush1.bf16.msra.mxu0 %v2764_v22  ;;  %368 = vmatpush1.bf16.msra.mxu1 %v2789_v35  ;;  %v2873_v18 = vld [vmem:[#allocation7 + $0x1a4] ss:$16 sps:$4 sm:$0xff]   ;;  %v2856_v19 = vld [vmem:[#allocation7 + $0x148] ss:$16 sps:$4 sm:$0xff]   ;;  %v2871_v20 = vld [vmem:[#allocation7 + $0x1a0] ss:$16 sps:$4 sm:$0xff]  }
  0x68   :  { %326 = vmatprep.subr.bf16.mxu0 %v2765_v24  ;;  %369 = vmatprep.subr.bf16.mxu1 %v2790_v37  ;;  %v2864_v21 = vld [vmem:[#allocation7 + $0x16c] ss:$16 sps:$4 sm:$0xff]   ;;  %v2862_v22 = vld [vmem:[#allocation7 + $0x168] ss:$16 sps:$4 sm:$0xff]   ;;  %v2879_v27 = vld [vmem:[#allocation7 + $0x1c4] ss:$16 sps:$4 sm:$0xff]   ;;  %v126_v37 = vlaneseq }
  0x69   :  { %v2870_v23 = vld [vmem:[#allocation7 + $0x18c] ss:$16 sps:$4 sm:$0xff]   ;;  %v2868_v24 = vld [vmem:[#allocation7 + $0x188] ss:$16 sps:$4 sm:$0xff]   ;;  %v2885_v31 = vld [vmem:[#allocation7 + $0x1e4] ss:$16 sps:$4 sm:$0xff]  }
  0x6a   :  { %v2876_v25 = vld [vmem:[#allocation7 + $0x1ac] ss:$16 sps:$4 sm:$0xff]   ;;  %v2883_v33 = vld [vmem:[#allocation7 + $0x1e0] ss:$16 sps:$4 sm:$0xff]   ;;  %v2891_v35 = vld [vmem:[#allocation7 + $0x204] ss:$16 sps:$4 sm:$0xff]  }
  0x6b   :  { %327 = vmatpush1.bf16.msra.mxu0 %v2767_v26  ;;  %370 = vmatpush1.bf16.msra.mxu1 %v2792_v39  ;;  %v2874_v26 = vld [vmem:[#allocation7 + $0x1a8] ss:$16 sps:$4 sm:$0xff]   ;;  %v2882_v28 = vld [vmem:[#allocation7 + $0x1cc] ss:$16 sps:$4 sm:$0xff]   ;;  %vm2403_vm0 = vcmask 7168  }
  0x6c   :  { %1200 = vmatprep.subr.bf16.mxu0 %v2795_v29  ;;  %1286 = vmatprep.subr.bf16.mxu1 %v2798_v41  ;;  %v2877_v29 = vld [vmem:[#allocation7 + $0x1c0] ss:$16 sps:$4 sm:$0xff]  }
  0x6e   :  { %345 = vmatmul.mubr.bf16.vlgmr.msra.gmra.mrb[0].mxu0 %v2768_v30  ;;  %388 = vmatmul.mubr.bf16.vlgmr.msra.gmra.mrb[0].mxu1 %v2768_v30  ;;  %v2880_v30 = vld [vmem:[#allocation7 + $0x1c8] ss:$16 sps:$4 sm:$0xff]  }
  0x6f   :  { %1201 = vmatpush1.bf16.msra.mxu0 %v2793_v32  ;;  %1287 = vmatpush1.bf16.msra.mxu1 %v2796_v43  ;;  %v2888_v32 = vld [vmem:[#allocation7 + $0x1ec] ss:$16 sps:$4 sm:$0xff]  }
  0x70   :  { %1202 = vmatprep.subr.bf16.mxu0 %v2801_v34  ;;  %1288 = vmatprep.subr.bf16.mxu1 %v2804_v45  ;;  %v2886_v34 = vld [vmem:[#allocation7 + $0x1e8] ss:$16 sps:$4 sm:$0xff]  }
  0x73   :  { %1203 = vmatpush1.bf16.msra.mxu0 %v2799_v36  ;;  %1289 = vmatpush1.bf16.msra.mxu1 %v2802_v47  ;;  %v2894_v36 = vld [vmem:[#allocation7 + $0x20c] ss:$16 sps:$4 sm:$0xff]  }
  0x74   :  { %1204 = vmatprep.subr.bf16.mxu0 %v2807_v38  ;;  %1290 = vmatprep.subr.bf16.mxu1 %v2810_v49  ;;  %v127_v38 = vshrl.u32 %v126_v37, 7  ;;  %v2928_v37 = vld [vmem:[#allocation7 + $0x2c8] ss:$16 sps:$4 sm:$0xff]  }
  0x76   :  { %v3397_v39 = vsub.s32 0, %v127_v38  ;;  %v3402_v41 = vsub.s32 1, %v127_v38 }
  0x77   :  { %1205 = vmatpush1.bf16.msra.mxu0 %v2805_v40  ;;  %1291 = vmatpush1.bf16.msra.mxu1 %v2808_v51  ;;  %v124_v40 = vld [vmem:[%s3449_s2] sm:$0xf] }
  0x78   :  { %1206 = vmatprep.subr.bf16.mxu0 %v2813_v42  ;;  %1292 = vmatprep.subr.bf16.mxu1 %v2816_v53  ;;  %v129_v42 = vrot.slane %v124_v40, %v3397_v39  ;;  %v133_v43 = vrot.slane %v124_v40, %v3402_v41 }
  0x7b   :  { %1207 = vmatpush1.bf16.msra.mxu0 %v2811_v44  ;;  %1293 = vmatpush1.bf16.msra.mxu1 %v2814_v55 }
  0x7c   :  { %1208 = vmatprep.subr.bf16.mxu0 %v2819_v46  ;;  %1294 = vmatprep.subr.bf16.mxu1 %v2822_v57  ;;  %v3408_v57 = vsub.s32 3, %v127_v38 }
  0x7f   :  { %1209 = vmatpush1.bf16.msra.mxu0 %v2817_v48  ;;  %1295 = vmatpush1.bf16.msra.mxu1 %v2820_v59 }
  0x80   :  { %1210 = vmatprep.subr.bf16.mxu0 %v2825_v50  ;;  %1296 = vmatprep.subr.bf16.mxu1 %v2828_v60  ;;  %v2889_v60 = vld [vmem:[#allocation7 + $0x200] ss:$16 sps:$4 sm:$0xff]  }
  0x83   :  { %1211 = vmatpush1.bf16.msra.mxu0 %v2823_v52  ;;  %1297 = vmatpush1.bf16.msra.mxu1 %v2826_v63  ;;  %v2900_v63 = vld [vmem:[#allocation7 + $0x22c] ss:$16 sps:$4 sm:$0xff]  }
  0x84   :  { %1212 = vmatprep.subr.bf16.mxu0 %v2831_v54  ;;  %1298 = vmatprep.subr.bf16.mxu1 %v2834_v1  ;;  %v3406_v54 = vsub.s32 2, %v127_v38  ;;  %v141_v1 = vrot.slane %v124_v40, %v3408_v57  ;;  %v2933_v38 = vld [vmem:[#allocation7 + $0x2e4] ss:$16 sps:$4 sm:$0xff]  }
  0x87   :  { %1213 = vmatpush1.bf16.msra.mxu0 %v2829_v56  ;;  %1299 = vmatpush1.bf16.msra.mxu1 %v2832_v3  ;;  %v2898_v3 = vld [vmem:[#allocation7 + $0x228] ss:$16 sps:$4 sm:$0xff]  }
  0x88   :  { %1214 = vmatprep.subr.bf16.mxu0 %v2837_v58  ;;  %1300 = vmatprep.subr.bf16.mxu1 %v2840_v5  ;;  %v2903_v5 = vld [vmem:[#allocation7 + $0x244] ss:$16 sps:$4 sm:$0xff]  }
  0x8b   :  { %1215 = vmatpush1.bf16.msra.mxu0 %v2835_v61  ;;  %1301 = vmatpush1.bf16.msra.mxu1 %v2838_v7  ;;  %v2892_v61 = vld [vmem:[#allocation7 + $0x208] ss:$16 sps:$4 sm:$0xff]  }
  0x8c   :  { %1216 = vmatprep.subr.bf16.mxu0 %v2843_v62  ;;  %1302 = vmatprep.subr.bf16.mxu1 %v2846_v9  ;;  %v2897_v62 = vld [vmem:[#allocation7 + $0x224] ss:$16 sps:$4 sm:$0xff]  }
  0x8f   :  { %1217 = vmatpush1.bf16.msra.mxu0 %v2841_v0  ;;  %1303 = vmatpush1.bf16.msra.mxu1 %v2844_v11  ;;  %v137_v0 = vrot.slane %v124_v40, %v3406_v54  ;;  %v2936_v40 = vld [vmem:[#allocation7 + $0x2ec] ss:$16 sps:$4 sm:$0xff]  }
  0x90   :  { %1218 = vmatprep.subr.bf16.mxu0 %v2849_v2  ;;  %1304 = vmatprep.subr.bf16.mxu1 %v2852_v13  ;;  %v2895_v2 = vld [vmem:[#allocation7 + $0x220] ss:$16 sps:$4 sm:$0xff]  }
  0x93   :  { %1219 = vmatpush1.bf16.msra.mxu0 %v2847_v4  ;;  %1305 = vmatpush1.bf16.msra.mxu1 %v2850_v15  ;;  %v2904_v15 = vld [vmem:[#allocation7 + $0x248] ss:$16 sps:$4 sm:$0xff]  }
  0x94   :  { %1220 = vmatprep.subr.bf16.mxu0 %v2855_v6  ;;  %1306 = vmatprep.subr.bf16.mxu1 %v2858_v17  ;;  %v2906_v6 = vld [vmem:[#allocation7 + $0x24c] ss:$16 sps:$4 sm:$0xff]  }
  0x97   :  { %1221 = vmatpush1.bf16.msra.mxu0 %v2853_v8  ;;  %1307 = vmatpush1.bf16.msra.mxu1 %v2856_v19  ;;  %v2912_v19 = vld [vmem:[#allocation7 + $0x26c] ss:$16 sps:$4 sm:$0xff]  }
  0x98   :  { %1222 = vmatprep.subr.bf16.mxu0 %v2861_v10  ;;  %1308 = vmatprep.subr.bf16.mxu1 %v2864_v21 }
  0x9b   :  { %1223 = vmatpush1.bf16.msra.mxu0 %v2859_v12  ;;  %1309 = vmatpush1.bf16.msra.mxu1 %v2862_v22 }
  0x9c   :  { %1224 = vmatprep.subr.bf16.mxu0 %v2867_v14  ;;  %1310 = vmatprep.subr.bf16.mxu1 %v2870_v23  ;;  %v2901_v14 = vld [vmem:[#allocation7 + $0x240] ss:$16 sps:$4 sm:$0xff]  }
  0x9d   :  { %v2907_v23 = vld [vmem:[#allocation7 + $0x260] ss:$16 sps:$4 sm:$0xff]  }
  0x9f   :  { %1225 = vmatpush1.bf16.msra.mxu0 %v2865_v16  ;;  %1311 = vmatpush1.bf16.msra.mxu1 %v2868_v24  ;;  %v2910_v24 = vld [vmem:[#allocation7 + $0x268] ss:$16 sps:$4 sm:$0xff]  }
  0xa0   :  { %1226 = vmatprep.subr.bf16.mxu0 %v2873_v18  ;;  %1312 = vmatprep.subr.bf16.mxu1 %v2876_v25  ;;  %v2909_v18 = vld [vmem:[#allocation7 + $0x264] ss:$16 sps:$4 sm:$0xff]  }
  0xa3   :  { %1227 = vmatpush1.bf16.msra.mxu0 %v2871_v20  ;;  %1313 = vmatpush1.bf16.msra.mxu1 %v2874_v26  ;;  %v2915_v26 = vld [vmem:[#allocation7 + $0x284] ss:$16 sps:$4 sm:$0xff]  }
  0xa4   :  { %1228 = vmatprep.subr.bf16.mxu0 %v2879_v27  ;;  %1314 = vmatprep.subr.bf16.mxu1 %v2882_v28  ;;  %v2918_v27 = vld [vmem:[#allocation7 + $0x28c] ss:$16 sps:$4 sm:$0xff]   ;;  %v2913_v28 = vld [vmem:[#allocation7 + $0x280] ss:$16 sps:$4 sm:$0xff]  }
  0xa7   :  { %1229 = vmatpush1.bf16.msra.mxu0 %v2877_v29  ;;  %1315 = vmatpush1.bf16.msra.mxu1 %v2880_v30  ;;  %v2916_v29 = vld [vmem:[#allocation7 + $0x288] ss:$16 sps:$4 sm:$0xff]   ;;  %v2921_v30 = vld [vmem:[#allocation7 + $0x2a4] ss:$16 sps:$4 sm:$0xff]  }
  0xa8   :  { %1230 = vmatprep.subr.bf16.mxu0 %v2885_v31  ;;  %1316 = vmatprep.subr.bf16.mxu1 %v2888_v32  ;;  %v2924_v31 = vld [vmem:[#allocation7 + $0x2ac] ss:$16 sps:$4 sm:$0xff]   ;;  %v2919_v32 = vld [vmem:[#allocation7 + $0x2a0] ss:$16 sps:$4 sm:$0xff]  }
  0xab   :  { %1231 = vmatpush1.bf16.msra.mxu0 %v2883_v33  ;;  %1317 = vmatpush1.bf16.msra.mxu1 %v2886_v34  ;;  %v2922_v33 = vld [vmem:[#allocation7 + $0x2a8] ss:$16 sps:$4 sm:$0xff]   ;;  %v2927_v34 = vld [vmem:[#allocation7 + $0x2c4] ss:$16 sps:$4 sm:$0xff]  }
  0xac   :  { %1243 = vmatprep.subr.bf16.mxu0 %v2891_v35  ;;  %1329 = vmatprep.subr.bf16.mxu1 %v2894_v36  ;;  %v2930_v35 = vld [vmem:[#allocation7 + $0x2cc] ss:$16 sps:$4 sm:$0xff]   ;;  %v2925_v36 = vld [vmem:[#allocation7 + $0x2c0] ss:$16 sps:$4 sm:$0xff]  }
 0x141   :  { %v346_v44 = vpop.f32.mrb[0].mxu0  ;;  %v389_v4 = vpop.f32.mrb[0].mxu1 }
 0x142   :  { %v347_v45 = vadd.f32 %v346_v44, %v129_v42  ;;  %v348_v46 = vpop.f32.mrb[1].mxu0  ;;  %v390_v7 = vadd.f32 %v389_v4, %v137_v0  ;;  %v391_v8 = vpop.f32.mrb[1].mxu1  ;;  %v2939_v44 = vld [vmem:[#allocation7 + $0x304] ss:$16 sps:$4 sm:$0xff]   ;;  %v2967_v4 = vld [vmem:[#allocation7 + $0x3a0] ss:$16 sps:$4 sm:$0xff]  }
 0x143   :  { %v349_v47 = vadd.f32 %v348_v46, %v133_v43  ;;  %v350_v48 = vpop.f32.mrb[2].mxu0  ;;  %v392_v9 = vadd.f32 %v391_v8, %v141_v1  ;;  %v393_v10 = vpop.f32.mrb[2].mxu1  ;;  %v2937_v46 = vld [vmem:[#allocation7 + $0x300] ss:$16 sps:$4 sm:$0xff]  }
 0x144   :  { %v351_v49 = vadd.f32 %v350_v48, %v129_v42  ;;  %v352_v50 = vpop.f32.mrb[3].mxu0  ;;  %v398_v52 = vmax.f32 %v347_v45, 0.0  ;;  %v400_v11 = vmax.f32 %v390_v7, 0.0  ;;  %v394_v12 = vadd.f32 %v393_v10, %v137_v0  ;;  %v395_v13 = vpop.f32.mrb[3].mxu1  ;;  %v2931_v42 = vld [vmem:[#allocation7 + $0x2e0] ss:$16 sps:$4 sm:$0xff]  }
 0x145   :  { %v353_v51 = vadd.f32 %v352_v50, %v133_v43  ;;  %v399_v55 = vmax.f32 %v349_v47, 0.0  ;;  %v401_v16 = vmax.f32 %v392_v9, 0.0  ;;  %v396_v17 = vadd.f32 %v395_v13, %v141_v1  ;;  %v2934_v43 = vld [vmem:[#allocation7 + $0x2e8] ss:$16 sps:$4 sm:$0xff]   ;;  %v2942_v45 = vld [vmem:[#allocation7 + $0x30c] ss:$16 sps:$4 sm:$0xff]  }
 0x146   :  { %v402_v53 = vmax.f32 %v351_v49, 0.0  ;;  %v404_v20 = vmax.f32 %v394_v12, 0.0  ;;  %v2940_v47 = vld [vmem:[#allocation7 + $0x308] ss:$16 sps:$4 sm:$0xff]   ;;  %v2945_v48 = vld [vmem:[#allocation7 + $0x324] ss:$16 sps:$4 sm:$0xff]  }
 0x147   :  { %v403_v56 = vmax.f32 %v353_v51, 0.0  ;;  %v405_v21 = vmax.f32 %v396_v17, 0.0  ;;  %v2948_v49 = vld [vmem:[#allocation7 + $0x32c] ss:$16 sps:$4 sm:$0xff]   ;;  %v2943_v50 = vld [vmem:[#allocation7 + $0x320] ss:$16 sps:$4 sm:$0xff]  }
 0x148   :  { %v406_v58 = vpack.c.bf16 %v402_v53, %v398_v52  ;;  %v3412_v22 = vpack.c.bf16 %v404_v20, %v400_v11  ;;  %v2946_v51 = vld [vmem:[#allocation7 + $0x328] ss:$16 sps:$4 sm:$0xff]   ;;  %v2951_v52 = vld [vmem:[#allocation7 + $0x344] ss:$16 sps:$4 sm:$0xff]   ;;  %v2954_v53 = vld [vmem:[#allocation7 + $0x34c] ss:$16 sps:$4 sm:$0xff]  }
 0x149   :  { %v407_v59 = vpack.c.bf16 %v403_v56, %v399_v55  ;;  %v409_v25 = vpack.c.bf16 %v405_v21, %v401_v16  ;;  %v2949_v55 = vld [vmem:[#allocation7 + $0x340] ss:$16 sps:$4 sm:$0xff]   ;;  %v2952_v56 = vld [vmem:[#allocation7 + $0x348] ss:$16 sps:$4 sm:$0xff]   ;;  %v2978_v7 = vld [vmem:[#allocation7 + $0x3cc] ss:$16 sps:$4 sm:$0xff]  }
 0x14a   :  { %v2961_v0 = vld [vmem:[#allocation7 + $0x380] ss:$16 sps:$4 sm:$0xff]   ;;  %v2964_v1 = vld [vmem:[#allocation7 + $0x388] ss:$16 sps:$4 sm:$0xff]   ;;  %v2981_v10 = vld [vmem:[#allocation7 + $0x3e4] ss:$16 sps:$4 sm:$0xff]  }
 0x14b   :  { %1232 = vmatprep.mubr.bf16.mxu0 %v407_v59  ;;  %1318 = vmatprep.mubr.bf16.mxu1 %v407_v59  ;;  %v2960_v59 = vld [vmem:[#allocation7 + $0x36c] ss:$16 sps:$4 sm:$0xff]   ;;  %v2973_v8 = vld [vmem:[#allocation7 + $0x3c0] ss:$16 sps:$4 sm:$0xff]   ;;  %v2976_v9 = vld [vmem:[#allocation7 + $0x3c8] ss:$16 sps:$4 sm:$0xff]  }
 0x14c   :  { %1233 = vmatmul.mubr.bf16.vlgmr.msra.gmra.mrb[4].mxu0 %v406_v58  ;;  %1319 = vmatmul.mubr.bf16.vlgmr.msra.gmra.mrb[4].mxu1 %v406_v58  ;;  %v2957_v58 = vld [vmem:[#allocation7 + $0x364] ss:$16 sps:$4 sm:$0xff]   ;;  %v2984_v11 = vld [vmem:[#allocation7 + $0x3ec] ss:$16 sps:$4 sm:$0xff]   ;;  %v2979_v12 = vld [vmem:[#allocation7 + $0x3e0] ss:$16 sps:$4 sm:$0xff]  }
 0x14d   :  { %1244 = vmatpush1.bf16.msra.mxu0 %v2889_v60  ;;  %1330 = vmatpush1.bf16.msra.mxu1 %v2892_v61  ;;  %v2955_v60 = vld [vmem:[#allocation7 + $0x360] ss:$16 sps:$4 sm:$0xff]   ;;  %v2958_v61 = vld [vmem:[#allocation7 + $0x368] ss:$16 sps:$4 sm:$0xff]  }
 0x14e   :  { %1245 = vmatprep.subr.bf16.mxu0 %v2897_v62  ;;  %1331 = vmatprep.subr.bf16.mxu1 %v2900_v63  ;;  %v2963_v62 = vld [vmem:[#allocation7 + $0x384] ss:$16 sps:$4 sm:$0xff]   ;;  %v2966_v63 = vld [vmem:[#allocation7 + $0x38c] ss:$16 sps:$4 sm:$0xff]   ;;  %v2982_v13 = vld [vmem:[#allocation7 + $0x3e8] ss:$16 sps:$4 sm:$0xff]  }
 0x14f   :  { %1275 = vmatprep.mubr.bf16.mxu0 %v409_v25  ;;  %1361 = vmatprep.mubr.bf16.mxu1 %v409_v25  ;;  %v2985_v16 = vld [vmem:[#allocation8] ss:$16 sps:$4 sm:$0xff]   ;;  %v2988_v17 = vld [vmem:[#allocation8 + $0x8] ss:$16 sps:$4 sm:$0xff]  }
 0x150   :  { %v2991_v20 = vld [vmem:[#allocation8 + $0x20] ss:$16 sps:$4 sm:$0xff]   ;;  %v2994_v21 = vld [vmem:[#allocation8 + $0x28] ss:$16 sps:$4 sm:$0xff]  }
 0x151   :  { %1246 = vmatpush1.bf16.msra.mxu0 %v2895_v2  ;;  %1332 = vmatpush1.bf16.msra.mxu1 %v2898_v3  ;;  %v2969_v2 = vld [vmem:[#allocation7 + $0x3a4] ss:$16 sps:$4 sm:$0xff]   ;;  %v2972_v3 = vld [vmem:[#allocation7 + $0x3ac] ss:$16 sps:$4 sm:$0xff]   ;;  %v2997_v25 = vld [vmem:[#allocation8 + $0x40] ss:$16 sps:$4 sm:$0xff]  }
 0x152   :  { %1247 = vmatprep.subr.bf16.mxu0 %v2903_v5  ;;  %1333 = vmatprep.subr.bf16.mxu1 %v2906_v6  ;;  %v2970_v5 = vld [vmem:[#allocation7 + $0x3a8] ss:$16 sps:$4 sm:$0xff]   ;;  %v2975_v6 = vld [vmem:[#allocation7 + $0x3c4] ss:$16 sps:$4 sm:$0xff]  }
 0x155   :  { %1248 = vmatpush1.bf16.msra.mxu0 %v2901_v14  ;;  %1334 = vmatpush1.bf16.msra.mxu1 %v2904_v15  ;;  %v2987_v14 = vld [vmem:[#allocation8 + $0x4] ss:$16 sps:$4 sm:$0xff]   ;;  %v2990_v15 = vld [vmem:[#allocation8 + $0xc] ss:$16 sps:$4 sm:$0xff]  }
 0x156   :  { %1249 = vmatprep.subr.bf16.mxu0 %v2909_v18  ;;  %1335 = vmatprep.subr.bf16.mxu1 %v2912_v19  ;;  %v2993_v18 = vld [vmem:[#allocation8 + $0x24] ss:$16 sps:$4 sm:$0xff]   ;;  %v2996_v19 = vld [vmem:[#allocation8 + $0x2c] ss:$16 sps:$4 sm:$0xff]  }
 0x159   :  { %1250 = vmatpush1.bf16.msra.mxu0 %v2907_v23  ;;  %1336 = vmatpush1.bf16.msra.mxu1 %v2910_v24  ;;  %v2999_v23 = vld [vmem:[#allocation8 + $0x44] ss:$16 sps:$4 sm:$0xff]   ;;  %v3002_v24 = vld [vmem:[#allocation8 + $0x4c] ss:$16 sps:$4 sm:$0xff]  }
 0x15a   :  { %1251 = vmatprep.subr.bf16.mxu0 %v2915_v26  ;;  %1337 = vmatprep.subr.bf16.mxu1 %v2918_v27  ;;  %v3000_v26 = vld [vmem:[#allocation8 + $0x48] ss:$16 sps:$4 sm:$0xff]   ;;  %v3005_v27 = vld [vmem:[#allocation8 + $0x64] ss:$16 sps:$4 sm:$0xff]  }
 0x15d   :  { %1252 = vmatpush1.bf16.msra.mxu0 %v2913_v28  ;;  %1338 = vmatpush1.bf16.msra.mxu1 %v2916_v29  ;;  %v3008_v28 = vld [vmem:[#allocation8 + $0x6c] ss:$16 sps:$4 sm:$0xff]   ;;  %v3003_v29 = vld [vmem:[#allocation8 + $0x60] ss:$16 sps:$4 sm:$0xff]  }
 0x15e   :  { %1253 = vmatprep.subr.bf16.mxu0 %v2921_v30  ;;  %1339 = vmatprep.subr.bf16.mxu1 %v2924_v31  ;;  %v3011_v30 = vld [vmem:[#allocation8 + $0x84] ss:$16 sps:$4 sm:$0xff]   ;;  %v3014_v31 = vld [vmem:[#allocation8 + $0x8c] ss:$16 sps:$4 sm:$0xff]  }
 0x161   :  { %1254 = vmatpush1.bf16.msra.mxu0 %v2919_v32  ;;  %1340 = vmatpush1.bf16.msra.mxu1 %v2922_v33  ;;  %v3009_v32 = vld [vmem:[#allocation8 + $0x80] ss:$16 sps:$4 sm:$0xff]   ;;  %v3012_v33 = vld [vmem:[#allocation8 + $0x88] ss:$16 sps:$4 sm:$0xff]  }
 0x162   :  { %1255 = vmatprep.subr.bf16.mxu0 %v2927_v34  ;;  %1341 = vmatprep.subr.bf16.mxu1 %v2930_v35  ;;  %v3017_v34 = vld [vmem:[#allocation8 + $0xa4] ss:$16 sps:$4 sm:$0xff]   ;;  %v3020_v35 = vld [vmem:[#allocation8 + $0xac] ss:$16 sps:$4 sm:$0xff]  }
 0x165   :  { %1256 = vmatpush1.bf16.msra.mxu0 %v2925_v36  ;;  %1342 = vmatpush1.bf16.msra.mxu1 %v2928_v37  ;;  %v3015_v36 = vld [vmem:[#allocation8 + $0xa0] ss:$16 sps:$4 sm:$0xff]   ;;  %v3018_v37 = vld [vmem:[#allocation8 + $0xa8] ss:$16 sps:$4 sm:$0xff]  }
 0x166   :  { %1257 = vmatprep.subr.bf16.mxu0 %v2933_v38  ;;  %1343 = vmatprep.subr.bf16.mxu1 %v2936_v40  ;;  %v3023_v38 = vld [vmem:[#allocation8 + $0xc4] ss:$16 sps:$4 sm:$0xff]   ;;  %v3026_v40 = vld [vmem:[#allocation8 + $0xcc] ss:$16 sps:$4 sm:$0xff]  }
 0x169   :  { %1258 = vmatpush1.bf16.msra.mxu0 %v2931_v42  ;;  %1344 = vmatpush1.bf16.msra.mxu1 %v2934_v43  ;;  %v3021_v42 = vld [vmem:[#allocation8 + $0xc0] ss:$16 sps:$4 sm:$0xff]   ;;  %v3024_v43 = vld [vmem:[#allocation8 + $0xc8] ss:$16 sps:$4 sm:$0xff]  }
 0x16a   :  { %1259 = vmatprep.subr.bf16.mxu0 %v2939_v44  ;;  %1345 = vmatprep.subr.bf16.mxu1 %v2942_v45  ;;  %v3029_v44 = vld [vmem:[#allocation8 + $0xe4] ss:$16 sps:$4 sm:$0xff]   ;;  %v3032_v45 = vld [vmem:[#allocation8 + $0xec] ss:$16 sps:$4 sm:$0xff]  }
 0x16d   :  { %1260 = vmatpush1.bf16.msra.mxu0 %v2937_v46  ;;  %1346 = vmatpush1.bf16.msra.mxu1 %v2940_v47  ;;  %v3027_v46 = vld [vmem:[#allocation8 + $0xe0] ss:$16 sps:$4 sm:$0xff]   ;;  %v3030_v47 = vld [vmem:[#allocation8 + $0xe8] ss:$16 sps:$4 sm:$0xff]  }
 0x16e   :  { %1261 = vmatprep.subr.bf16.mxu0 %v2945_v48  ;;  %1347 = vmatprep.subr.bf16.mxu1 %v2948_v49  ;;  %v3035_v48 = vld [vmem:[#allocation8 + $0x104] ss:$16 sps:$4 sm:$0xff]   ;;  %v3038_v49 = vld [vmem:[#allocation8 + $0x10c] ss:$16 sps:$4 sm:$0xff]  }
 0x171   :  { %1262 = vmatpush1.bf16.msra.mxu0 %v2943_v50  ;;  %1348 = vmatpush1.bf16.msra.mxu1 %v2946_v51  ;;  %v3033_v50 = vld [vmem:[#allocation8 + $0x100] ss:$16 sps:$4 sm:$0xff]   ;;  %v3036_v51 = vld [vmem:[#allocation8 + $0x108] ss:$16 sps:$4 sm:$0xff]  }
 0x172   :  { %1263 = vmatprep.subr.bf16.mxu0 %v2951_v52  ;;  %1349 = vmatprep.subr.bf16.mxu1 %v2954_v53  ;;  %v3041_v52 = vld [vmem:[#allocation8 + $0x124] ss:$16 sps:$4 sm:$0xff]   ;;  %v3044_v53 = vld [vmem:[#allocation8 + $0x12c] ss:$16 sps:$4 sm:$0xff]  }
 0x175   :  { %1264 = vmatpush1.bf16.msra.mxu0 %v2949_v55  ;;  %1350 = vmatpush1.bf16.msra.mxu1 %v2952_v56  ;;  %v3039_v55 = vld [vmem:[#allocation8 + $0x120] ss:$16 sps:$4 sm:$0xff]   ;;  %v3042_v56 = vld [vmem:[#allocation8 + $0x128] ss:$16 sps:$4 sm:$0xff]  }
 0x176   :  { %1265 = vmatprep.subr.bf16.mxu0 %v2957_v58  ;;  %1351 = vmatprep.subr.bf16.mxu1 %v2960_v59  ;;  %v3047_v58 = vld [vmem:[#allocation8 + $0x144] ss:$16 sps:$4 sm:$0xff]   ;;  %v3050_v59 = vld [vmem:[#allocation8 + $0x14c] ss:$16 sps:$4 sm:$0xff]  }
 0x179   :  { %1266 = vmatpush1.bf16.msra.mxu0 %v2955_v60  ;;  %1352 = vmatpush1.bf16.msra.mxu1 %v2958_v61  ;;  %v3045_v60 = vld [vmem:[#allocation8 + $0x140] ss:$16 sps:$4 sm:$0xff]   ;;  %v3048_v61 = vld [vmem:[#allocation8 + $0x148] ss:$16 sps:$4 sm:$0xff]  }
 0x17a   :  { %1267 = vmatprep.subr.bf16.mxu0 %v2963_v62  ;;  %1353 = vmatprep.subr.bf16.mxu1 %v2966_v63  ;;  %v3053_v62 = vld [vmem:[#allocation8 + $0x164] ss:$16 sps:$4 sm:$0xff]   ;;  %v3056_v63 = vld [vmem:[#allocation8 + $0x16c] ss:$16 sps:$4 sm:$0xff]  }
 0x17d   :  { %1268 = vmatpush1.bf16.msra.mxu0 %v2961_v0  ;;  %1354 = vmatpush1.bf16.msra.mxu1 %v2964_v1  ;;  %v3051_v0 = vld [vmem:[#allocation8 + $0x160] ss:$16 sps:$4 sm:$0xff]   ;;  %v3054_v1 = vld [vmem:[#allocation8 + $0x168] ss:$16 sps:$4 sm:$0xff]  }
 0x17e   :  { %1269 = vmatprep.subr.bf16.mxu0 %v2969_v2  ;;  %1355 = vmatprep.subr.bf16.mxu1 %v2972_v3  ;;  %v3059_v2 = vld [vmem:[#allocation8 + $0x184] ss:$16 sps:$4 sm:$0xff]   ;;  %v3062_v3 = vld [vmem:[#allocation8 + $0x18c] ss:$16 sps:$4 sm:$0xff]  }
 0x181   :  { %1270 = vmatpush1.bf16.msra.mxu0 %v2967_v4  ;;  %1356 = vmatpush1.bf16.msra.mxu1 %v2970_v5  ;;  %v3057_v4 = vld [vmem:[#allocation8 + $0x180] ss:$16 sps:$4 sm:$0xff]   ;;  %v3060_v5 = vld [vmem:[#allocation8 + $0x188] ss:$16 sps:$4 sm:$0xff]  }
 0x182   :  { %1271 = vmatprep.subr.bf16.mxu0 %v2975_v6  ;;  %1357 = vmatprep.subr.bf16.mxu1 %v2978_v7  ;;  %v3065_v6 = vld [vmem:[#allocation8 + $0x1a4] ss:$16 sps:$4 sm:$0xff]   ;;  %v3068_v7 = vld [vmem:[#allocation8 + $0x1ac] ss:$16 sps:$4 sm:$0xff]  }
 0x185   :  { %1272 = vmatpush1.bf16.msra.mxu0 %v2973_v8  ;;  %1358 = vmatpush1.bf16.msra.mxu1 %v2976_v9  ;;  %v3063_v8 = vld [vmem:[#allocation8 + $0x1a0] ss:$16 sps:$4 sm:$0xff]   ;;  %v3066_v9 = vld [vmem:[#allocation8 + $0x1a8] ss:$16 sps:$4 sm:$0xff]  }
 0x186   :  { %1273 = vmatprep.subr.bf16.mxu0 %v2981_v10  ;;  %1359 = vmatprep.subr.bf16.mxu1 %v2984_v11  ;;  %v3071_v10 = vld [vmem:[#allocation8 + $0x1c4] ss:$16 sps:$4 sm:$0xff]   ;;  %v3074_v11 = vld [vmem:[#allocation8 + $0x1cc] ss:$16 sps:$4 sm:$0xff]  }
 0x189   :  { %1274 = vmatpush1.bf16.msra.mxu0 %v2979_v12  ;;  %1360 = vmatpush1.bf16.msra.mxu1 %v2982_v13  ;;  %v3069_v12 = vld [vmem:[#allocation8 + $0x1c0] ss:$16 sps:$4 sm:$0xff]   ;;  %v3072_v13 = vld [vmem:[#allocation8 + $0x1c8] ss:$16 sps:$4 sm:$0xff]  }
 0x18a   :  { %2174 = vmatprep.subr.bf16.mxu0 %v2987_v14  ;;  %2260 = vmatprep.subr.bf16.mxu1 %v2990_v15  ;;  %v3077_v14 = vld [vmem:[#allocation8 + $0x1e4] ss:$16 sps:$4 sm:$0xff]   ;;  %v3080_v15 = vld [vmem:[#allocation8 + $0x1ec] ss:$16 sps:$4 sm:$0xff]  }
 0x18c   :  { %1276 = vmatmul.mubr.bf16.vlgmr.msra.gmra.mrb[4].mxu0 %v3412_v22  ;;  %1362 = vmatmul.mubr.bf16.vlgmr.msra.gmra.mrb[4].mxu1 %v3412_v22  ;;  %v3006_v22 = vld [vmem:[#allocation8 + $0x68] ss:$16 sps:$4 sm:$0xff]  }
 0x18d   :  { %2175 = vmatpush1.bf16.msra.mxu0 %v2985_v16  ;;  %2261 = vmatpush1.bf16.msra.mxu1 %v2988_v17  ;;  %v3075_v16 = vld [vmem:[#allocation8 + $0x1e0] ss:$16 sps:$4 sm:$0xff]   ;;  %v3078_v17 = vld [vmem:[#allocation8 + $0x1e8] ss:$16 sps:$4 sm:$0xff]  }
 0x18e   :  { %2176 = vmatprep.subr.bf16.mxu0 %v2993_v18  ;;  %2262 = vmatprep.subr.bf16.mxu1 %v2996_v19  ;;  %v3083_v18 = vld [vmem:[#allocation8 + $0x204] ss:$16 sps:$4 sm:$0xff]   ;;  %v3086_v19 = vld [vmem:[#allocation8 + $0x20c] ss:$16 sps:$4 sm:$0xff]  }
 0x191   :  { %2177 = vmatpush1.bf16.msra.mxu0 %v2991_v20  ;;  %2263 = vmatpush1.bf16.msra.mxu1 %v2994_v21  ;;  %v538_v20 = vld [vmem:[%s3451_s4] sm:$0xf] }
 0x192   :  { %2178 = vmatprep.subr.bf16.mxu0 %v2999_v23  ;;  %2264 = vmatprep.subr.bf16.mxu1 %v3002_v24  ;;  %v543_v21 = vrot.slane %v538_v20, %v3397_v39  ;;  %v551_v23 = vrot.slane %v538_v20, %v3406_v54  ;;  %v547_v24 = vrot.slane %v538_v20, %v3402_v41 }
 0x195   :  { %2179 = vmatpush1.bf16.msra.mxu0 %v2997_v25  ;;  %2265 = vmatpush1.bf16.msra.mxu1 %v3000_v26  ;;  %v555_v25 = vrot.slane %v538_v20, %v3408_v57  ;;  %v3128_v20 = vld [vmem:[#allocation8 + $0x2ec] ss:$16 sps:$4 sm:$0xff]  }
 0x196   :  { %2180 = vmatprep.subr.bf16.mxu0 %v3005_v27  ;;  %2266 = vmatprep.subr.bf16.mxu1 %v3008_v28 }
 0x199   :  { %2181 = vmatpush1.bf16.msra.mxu0 %v3003_v29  ;;  %2267 = vmatpush1.bf16.msra.mxu1 %v3006_v22 }
 0x19a   :  { %2182 = vmatprep.subr.bf16.mxu0 %v3011_v30  ;;  %2268 = vmatprep.subr.bf16.mxu1 %v3014_v31 }
 0x19d   :  { %2183 = vmatpush1.bf16.msra.mxu0 %v3009_v32  ;;  %2269 = vmatpush1.bf16.msra.mxu1 %v3012_v33 }
 0x19e   :  { %2184 = vmatprep.subr.bf16.mxu0 %v3017_v34  ;;  %2270 = vmatprep.subr.bf16.mxu1 %v3020_v35 }
 0x1a1   :  { %2185 = vmatpush1.bf16.msra.mxu0 %v3015_v36  ;;  %2271 = vmatpush1.bf16.msra.mxu1 %v3018_v37 }
 0x1a2   :  { %2186 = vmatprep.subr.bf16.mxu0 %v3023_v38  ;;  %2272 = vmatprep.subr.bf16.mxu1 %v3026_v40 }
 0x1a5   :  { %2187 = vmatpush1.bf16.msra.mxu0 %v3021_v42  ;;  %2273 = vmatpush1.bf16.msra.mxu1 %v3024_v43 }
 0x1a6   :  { %2188 = vmatprep.subr.bf16.mxu0 %v3029_v44  ;;  %2274 = vmatprep.subr.bf16.mxu1 %v3032_v45 }
 0x1a9   :  { %2189 = vmatpush1.bf16.msra.mxu0 %v3027_v46  ;;  %2275 = vmatpush1.bf16.msra.mxu1 %v3030_v47 }
 0x1aa   :  { %2190 = vmatprep.subr.bf16.mxu0 %v3035_v48  ;;  %2276 = vmatprep.subr.bf16.mxu1 %v3038_v49 }
 0x1ad   :  { %2191 = vmatpush1.bf16.msra.mxu0 %v3033_v50  ;;  %2277 = vmatpush1.bf16.msra.mxu1 %v3036_v51 }
 0x1ae   :  { %2192 = vmatprep.subr.bf16.mxu0 %v3041_v52  ;;  %2278 = vmatprep.subr.bf16.mxu1 %v3044_v53 }
 0x1b1   :  { %2193 = vmatpush1.bf16.msra.mxu0 %v3039_v55  ;;  %2279 = vmatpush1.bf16.msra.mxu1 %v3042_v56  ;;  %v3081_v56 = vld [vmem:[#allocation8 + $0x200] ss:$16 sps:$4 sm:$0xff]  }
 0x1b2   :  { %2194 = vmatprep.subr.bf16.mxu0 %v3047_v58  ;;  %2280 = vmatprep.subr.bf16.mxu1 %v3050_v59  ;;  %v3084_v58 = vld [vmem:[#allocation8 + $0x208] ss:$16 sps:$4 sm:$0xff]   ;;  %v3089_v59 = vld [vmem:[#allocation8 + $0x224] ss:$16 sps:$4 sm:$0xff]  }
 0x1b5   :  { %2195 = vmatpush1.bf16.msra.mxu0 %v3045_v60  ;;  %2281 = vmatpush1.bf16.msra.mxu1 %v3048_v61  ;;  %v3092_v60 = vld [vmem:[#allocation8 + $0x22c] ss:$16 sps:$4 sm:$0xff]   ;;  %v3087_v61 = vld [vmem:[#allocation8 + $0x220] ss:$16 sps:$4 sm:$0xff]  }
 0x1b6   :  { %2196 = vmatprep.subr.bf16.mxu0 %v3053_v62  ;;  %2282 = vmatprep.subr.bf16.mxu1 %v3056_v63  ;;  %v3090_v62 = vld [vmem:[#allocation8 + $0x228] ss:$16 sps:$4 sm:$0xff]   ;;  %v3095_v63 = vld [vmem:[#allocation8 + $0x244] ss:$16 sps:$4 sm:$0xff]  }
 0x1b9   :  { %2197 = vmatpush1.bf16.msra.mxu0 %v3051_v0  ;;  %2283 = vmatpush1.bf16.msra.mxu1 %v3054_v1  ;;  %v3098_v0 = vld [vmem:[#allocation8 + $0x24c] ss:$16 sps:$4 sm:$0xff]   ;;  %v3093_v1 = vld [vmem:[#allocation8 + $0x240] ss:$16 sps:$4 sm:$0xff]  }
 0x1ba   :  { %2198 = vmatprep.subr.bf16.mxu0 %v3059_v2  ;;  %2284 = vmatprep.subr.bf16.mxu1 %v3062_v3  ;;  %v3096_v2 = vld [vmem:[#allocation8 + $0x248] ss:$16 sps:$4 sm:$0xff]   ;;  %v3101_v3 = vld [vmem:[#allocation8 + $0x264] ss:$16 sps:$4 sm:$0xff]  }
 0x1bd   :  { %2199 = vmatpush1.bf16.msra.mxu0 %v3057_v4  ;;  %2285 = vmatpush1.bf16.msra.mxu1 %v3060_v5  ;;  %v3104_v4 = vld [vmem:[#allocation8 + $0x26c] ss:$16 sps:$4 sm:$0xff]   ;;  %v3099_v5 = vld [vmem:[#allocation8 + $0x260] ss:$16 sps:$4 sm:$0xff]  }
 0x1be   :  { %2200 = vmatprep.subr.bf16.mxu0 %v3065_v6  ;;  %2286 = vmatprep.subr.bf16.mxu1 %v3068_v7  ;;  %v3102_v6 = vld [vmem:[#allocation8 + $0x268] ss:$16 sps:$4 sm:$0xff]   ;;  %v3107_v7 = vld [vmem:[#allocation8 + $0x284] ss:$16 sps:$4 sm:$0xff]  }
 0x1c1   :  { %2201 = vmatpush1.bf16.msra.mxu0 %v3063_v8  ;;  %2287 = vmatpush1.bf16.msra.mxu1 %v3066_v9  ;;  %v3110_v8 = vld [vmem:[#allocation8 + $0x28c] ss:$16 sps:$4 sm:$0xff]   ;;  %v3105_v9 = vld [vmem:[#allocation8 + $0x280] ss:$16 sps:$4 sm:$0xff]  }
 0x1c2   :  { %2202 = vmatprep.subr.bf16.mxu0 %v3071_v10  ;;  %2288 = vmatprep.subr.bf16.mxu1 %v3074_v11  ;;  %v3108_v10 = vld [vmem:[#allocation8 + $0x288] ss:$16 sps:$4 sm:$0xff]   ;;  %v3113_v11 = vld [vmem:[#allocation8 + $0x2a4] ss:$16 sps:$4 sm:$0xff]  }
 0x1c5   :  { %2203 = vmatpush1.bf16.msra.mxu0 %v3069_v12  ;;  %2289 = vmatpush1.bf16.msra.mxu1 %v3072_v13  ;;  %v3116_v12 = vld [vmem:[#allocation8 + $0x2ac] ss:$16 sps:$4 sm:$0xff]   ;;  %v3111_v13 = vld [vmem:[#allocation8 + $0x2a0] ss:$16 sps:$4 sm:$0xff]  }
 0x1c6   :  { %2204 = vmatprep.subr.bf16.mxu0 %v3077_v14  ;;  %2290 = vmatprep.subr.bf16.mxu1 %v3080_v15  ;;  %v3114_v14 = vld [vmem:[#allocation8 + $0x2a8] ss:$16 sps:$4 sm:$0xff]   ;;  %v3119_v15 = vld [vmem:[#allocation8 + $0x2c4] ss:$16 sps:$4 sm:$0xff]  }
 0x1c9   :  { %2205 = vmatpush1.bf16.msra.mxu0 %v3075_v16  ;;  %2291 = vmatpush1.bf16.msra.mxu1 %v3078_v17  ;;  %v3122_v16 = vld [vmem:[#allocation8 + $0x2cc] ss:$16 sps:$4 sm:$0xff]   ;;  %v3117_v17 = vld [vmem:[#allocation8 + $0x2c0] ss:$16 sps:$4 sm:$0xff]  }
 0x1ca   :  { %2217 = vmatprep.subr.bf16.mxu0 %v3083_v18  ;;  %2303 = vmatprep.subr.bf16.mxu1 %v3086_v19  ;;  %v3120_v18 = vld [vmem:[#allocation8 + $0x2c8] ss:$16 sps:$4 sm:$0xff]   ;;  %v3125_v19 = vld [vmem:[#allocation8 + $0x2e4] ss:$16 sps:$4 sm:$0xff]  }
 0x25f   :  { %v1277_v26 = vpop.f32.mrb[4].mxu0  ;;  %v1363_v27 = vpop.f32.mrb[4].mxu1 }
 0x260   :  { %v2703_v28 = vadd.f32 %v1277_v26, %v543_v21  ;;  %v2707_v29 = vadd.f32 %v1363_v27, %v551_v23  ;;  %v1279_v22 = vpop.f32.mrb[5].mxu0  ;;  %v1365_v30 = vpop.f32.mrb[5].mxu1  ;;  %v3129_v26 = vld [vmem:[#allocation8 + $0x300] ss:$16 sps:$4 sm:$0xff]   ;;  %v3132_v27 = vld [vmem:[#allocation8 + $0x308] ss:$16 sps:$4 sm:$0xff]  }
 0x261   :  { %v2704_v31 = vadd.f32 %v1279_v22, %v547_v24  ;;  %v2708_v32 = vadd.f32 %v1365_v30, %v555_v25  ;;  %v1281_v33 = vpop.f32.mrb[6].mxu0  ;;  %v1367_v34 = vpop.f32.mrb[6].mxu1  ;;  %v3135_v22 = vld [vmem:[#allocation8 + $0x320] ss:$16 sps:$4 sm:$0xff]   ;;  %v3138_v30 = vld [vmem:[#allocation8 + $0x328] ss:$16 sps:$4 sm:$0xff]  }
 0x262   :  { %v2705_v35 = vadd.f32 %v1281_v33, %v543_v21  ;;  %v2709_v36 = vadd.f32 %v1367_v34, %v551_v23  ;;  %v1283_v37 = vpop.f32.mrb[7].mxu0  ;;  %v1369_v38 = vpop.f32.mrb[7].mxu1  ;;  %v1372_v43 = vmax.f32 %v2703_v28, 0.0  ;;  %v1374_v44 = vmax.f32 %v2707_v29, 0.0  ;;  %v3123_v21 = vld [vmem:[#allocation8 + $0x2e0] ss:$16 sps:$4 sm:$0xff]  }
 0x263   :  { %v2706_v40 = vadd.f32 %v1283_v37, %v547_v24  ;;  %v2710_v42 = vadd.f32 %v1369_v38, %v555_v25  ;;  %v1373_v47 = vmax.f32 %v2704_v31, 0.0  ;;  %v1375_v48 = vmax.f32 %v2708_v32, 0.0  ;;  %v3126_v23 = vld [vmem:[#allocation8 + $0x2e8] ss:$16 sps:$4 sm:$0xff]   ;;  %v3131_v24 = vld [vmem:[#allocation8 + $0x304] ss:$16 sps:$4 sm:$0xff]  }
 0x264   :  { %v1376_v45 = vmax.f32 %v2705_v35, 0.0  ;;  %v1378_v46 = vmax.f32 %v2709_v36, 0.0  ;;  %v3134_v25 = vld [vmem:[#allocation8 + $0x30c] ss:$16 sps:$4 sm:$0xff]   ;;  %v3137_v28 = vld [vmem:[#allocation8 + $0x324] ss:$16 sps:$4 sm:$0xff]  }
 0x265   :  { %v1377_v49 = vmax.f32 %v2706_v40, 0.0  ;;  %v1379_v50 = vmax.f32 %v2710_v42, 0.0  ;;  %v3140_v29 = vld [vmem:[#allocation8 + $0x32c] ss:$16 sps:$4 sm:$0xff]   ;;  %v3143_v31 = vld [vmem:[#allocation8 + $0x344] ss:$16 sps:$4 sm:$0xff]  }
 0x266   :  { %v1380_v51 = vpack.c.bf16 %v1376_v45, %v1372_v43  ;;  %v3423_v52 = vpack.c.bf16 %v1378_v46, %v1374_v44  ;;  %v3146_v32 = vld [vmem:[#allocation8 + $0x34c] ss:$16 sps:$4 sm:$0xff]   ;;  %v3141_v33 = vld [vmem:[#allocation8 + $0x340] ss:$16 sps:$4 sm:$0xff]   ;;  %v3144_v34 = vld [vmem:[#allocation8 + $0x348] ss:$16 sps:$4 sm:$0xff]  }
 0x267   :  { %v1381_v53 = vpack.c.bf16 %v1377_v49, %v1373_v47  ;;  %v1383_v55 = vpack.c.bf16 %v1379_v50, %v1375_v48  ;;  %v3149_v35 = vld [vmem:[#allocation8 + $0x364] ss:$16 sps:$4 sm:$0xff]   ;;  %v3152_v36 = vld [vmem:[#allocation8 + $0x36c] ss:$16 sps:$4 sm:$0xff]   ;;  %v3147_v37 = vld [vmem:[#allocation8 + $0x360] ss:$16 sps:$4 sm:$0xff]  }
 0x268   :  { %v3150_v38 = vld [vmem:[#allocation8 + $0x368] ss:$16 sps:$4 sm:$0xff]   ;;  %v3155_v40 = vld [vmem:[#allocation8 + $0x384] ss:$16 sps:$4 sm:$0xff]   ;;  %v3158_v42 = vld [vmem:[#allocation8 + $0x38c] ss:$16 sps:$4 sm:$0xff]  }
 0x269   :  { %2206 = vmatprep.mubr.bf16.mxu0 %v1381_v53  ;;  %2292 = vmatprep.mubr.bf16.mxu1 %v1381_v53  ;;  %v3153_v43 = vld [vmem:[#allocation8 + $0x380] ss:$16 sps:$4 sm:$0xff]   ;;  %v3156_v44 = vld [vmem:[#allocation8 + $0x388] ss:$16 sps:$4 sm:$0xff]   ;;  %v3161_v45 = vld [vmem:[#allocation8 + $0x3a4] ss:$16 sps:$4 sm:$0xff]  }
 0x26a   :  { %2207 = vmatmul.mubr.bf16.vlgmr.msra.gmra.mrb[8].mxu0 %v1380_v51  ;;  %2293 = vmatmul.mubr.bf16.vlgmr.msra.gmra.mrb[8].mxu1 %v1380_v51  ;;  %v3164_v46 = vld [vmem:[#allocation8 + $0x3ac] ss:$16 sps:$4 sm:$0xff]   ;;  %v3159_v47 = vld [vmem:[#allocation8 + $0x3a0] ss:$16 sps:$4 sm:$0xff]   ;;  %v3162_v48 = vld [vmem:[#allocation8 + $0x3a8] ss:$16 sps:$4 sm:$0xff]  }
 0x26b   :  { %2218 = vmatpush1.bf16.msra.mxu0 %v3081_v56  ;;  %2304 = vmatpush1.bf16.msra.mxu1 %v3084_v58  ;;  %v3167_v49 = vld [vmem:[#allocation8 + $0x3c4] ss:$16 sps:$4 sm:$0xff]   ;;  %v3170_v50 = vld [vmem:[#allocation8 + $0x3cc] ss:$16 sps:$4 sm:$0xff]   ;;  %v3165_v51 = vld [vmem:[#allocation8 + $0x3c0] ss:$16 sps:$4 sm:$0xff]  }
 0x26c   :  { %2249 = vmatprep.mubr.bf16.mxu0 %v1383_v55  ;;  %2335 = vmatprep.mubr.bf16.mxu1 %v1383_v55  ;;  %v3168_v53 = vld [vmem:[#allocation8 + $0x3c8] ss:$16 sps:$4 sm:$0xff]   ;;  %v3173_v55 = vld [vmem:[#allocation8 + $0x3e4] ss:$16 sps:$4 sm:$0xff]   ;;  %v3176_v56 = vld [vmem:[#allocation8 + $0x3ec] ss:$16 sps:$4 sm:$0xff]  }
 0x26d   :  { %2219 = vmatprep.subr.bf16.mxu0 %v3089_v59  ;;  %2305 = vmatprep.subr.bf16.mxu1 %v3092_v60  ;;  %v3171_v58 = vld [vmem:[#allocation8 + $0x3e0] ss:$16 sps:$4 sm:$0xff]   ;;  %v3174_v59 = vld [vmem:[#allocation8 + $0x3e8] ss:$16 sps:$4 sm:$0xff]  }
 0x26e   :  { %v1512_v60 = vld [vmem:[%s3453_s6] sm:$0xf] }
 0x26f   :  { %2220 = vmatpush1.bf16.msra.mxu0 %v3087_v61  ;;  %2306 = vmatpush1.bf16.msra.mxu1 %v3090_v62  ;;  %v1517_v61 = vrot.slane %v1512_v60, %v3397_v39  ;;  %v1525_v62 = vrot.slane %v1512_v60, %v3406_v54 }
 0x270   :  { %2221 = vmatprep.subr.bf16.mxu0 %v3095_v63  ;;  %2307 = vmatprep.subr.bf16.mxu1 %v3098_v0  ;;  %v2354_v63 = vld [vmem:[%s3454_s7] sm:$0xf]  ;;  %v1521_v0 = vrot.slane %v1512_v60, %v3402_v41 }
 0x273   :  { %2222 = vmatpush1.bf16.msra.mxu0 %v3093_v1  ;;  %2308 = vmatpush1.bf16.msra.mxu1 %v3096_v2  ;;  %v1529_v1 = vrot.slane %v1512_v60, %v3408_v57 }
 0x274   :  { %2223 = vmatprep.subr.bf16.mxu0 %v3101_v3  ;;  %2309 = vmatprep.subr.bf16.mxu1 %v3104_v4 }
 0x277   :  { %2224 = vmatpush1.bf16.msra.mxu0 %v3099_v5  ;;  %2310 = vmatpush1.bf16.msra.mxu1 %v3102_v6 }
 0x278   :  { %2225 = vmatprep.subr.bf16.mxu0 %v3107_v7  ;;  %2311 = vmatprep.subr.bf16.mxu1 %v3110_v8 }
 0x27b   :  { %2226 = vmatpush1.bf16.msra.mxu0 %v3105_v9  ;;  %2312 = vmatpush1.bf16.msra.mxu1 %v3108_v10  ;;  %v2363_v9 = vrot.slane %v2354_v63, %v3402_v41 }
 0x27c   :  { %2227 = vmatprep.subr.bf16.mxu0 %v3113_v11  ;;  %2313 = vmatprep.subr.bf16.mxu1 %v3116_v12 }
 0x27f   :  { %2228 = vmatpush1.bf16.msra.mxu0 %v3111_v13  ;;  %2314 = vmatpush1.bf16.msra.mxu1 %v3114_v14  ;;  %v2367_v14 = vrot.slane %v2354_v63, %v3406_v54 }
 0x280   :  { %2229 = vmatprep.subr.bf16.mxu0 %v3119_v15  ;;  %2315 = vmatprep.subr.bf16.mxu1 %v3122_v16 }
 0x283   :  { %2230 = vmatpush1.bf16.msra.mxu0 %v3117_v17  ;;  %2316 = vmatpush1.bf16.msra.mxu1 %v3120_v18 }
 0x284   :  { %2231 = vmatprep.subr.bf16.mxu0 %v3125_v19  ;;  %2317 = vmatprep.subr.bf16.mxu1 %v3128_v20 }
 0x287   :  { %2232 = vmatpush1.bf16.msra.mxu0 %v3123_v21  ;;  %2318 = vmatpush1.bf16.msra.mxu1 %v3126_v23 }
 0x288   :  { %2233 = vmatprep.subr.bf16.mxu0 %v3131_v24  ;;  %2319 = vmatprep.subr.bf16.mxu1 %v3134_v25  ;;  %v2371_v25 = vrot.slane %v2354_v63, %v3408_v57  ;;  %v2702_v57 = vld [vmem:[#allocation2] ss:$0 sm:$0xff] }
 0x28b   :  { %2234 = vmatpush1.bf16.msra.mxu0 %v3129_v26  ;;  %2320 = vmatpush1.bf16.msra.mxu1 %v3132_v27 }
 0x28c   :  { %2235 = vmatprep.subr.bf16.mxu0 %v3137_v28  ;;  %2321 = vmatprep.subr.bf16.mxu1 %v3140_v29 }
 0x28f   :  { %2236 = vmatpush1.bf16.msra.mxu0 %v3135_v22  ;;  %2322 = vmatpush1.bf16.msra.mxu1 %v3138_v30 }
 0x290   :  { %2237 = vmatprep.subr.bf16.mxu0 %v3143_v31  ;;  %2323 = vmatprep.subr.bf16.mxu1 %v3146_v32 }
 0x293   :  { %2238 = vmatpush1.bf16.msra.mxu0 %v3141_v33  ;;  %2324 = vmatpush1.bf16.msra.mxu1 %v3144_v34 }
 0x294   :  { %2239 = vmatprep.subr.bf16.mxu0 %v3149_v35  ;;  %2325 = vmatprep.subr.bf16.mxu1 %v3152_v36 }
 0x297   :  { %2240 = vmatpush1.bf16.msra.mxu0 %v3147_v37  ;;  %2326 = vmatpush1.bf16.msra.mxu1 %v3150_v38 }
 0x298   :  { %2241 = vmatprep.subr.bf16.mxu0 %v3155_v40  ;;  %2327 = vmatprep.subr.bf16.mxu1 %v3158_v42 }
 0x29b   :  { %2242 = vmatpush1.bf16.msra.mxu0 %v3153_v43  ;;  %2328 = vmatpush1.bf16.msra.mxu1 %v3156_v44 }
 0x29c   :  { %2243 = vmatprep.subr.bf16.mxu0 %v3161_v45  ;;  %2329 = vmatprep.subr.bf16.mxu1 %v3164_v46 }
 0x29f   :  { %2244 = vmatpush1.bf16.msra.mxu0 %v3159_v47  ;;  %2330 = vmatpush1.bf16.msra.mxu1 %v3162_v48 }
 0x2a0   :  { %2245 = vmatprep.subr.bf16.mxu0 %v3167_v49  ;;  %2331 = vmatprep.subr.bf16.mxu1 %v3170_v50 }
 0x2a3   :  { %2246 = vmatpush1.bf16.msra.mxu0 %v3165_v51  ;;  %2332 = vmatpush1.bf16.msra.mxu1 %v3168_v53 }
 0x2a4   :  { %2247 = vmatprep.subr.bf16.mxu0 %v3173_v55  ;;  %2333 = vmatprep.subr.bf16.mxu1 %v3176_v56 }
 0x2a7   :  { %2248 = vmatpush1.bf16.msra.mxu0 %v3171_v58  ;;  %2334 = vmatpush1.bf16.msra.mxu1 %v3174_v59 }
 0x2aa   :  { %2250 = vmatmul.mubr.bf16.vlgmr.msra.gmra.mrb[8].mxu0 %v3423_v52  ;;  %2336 = vmatmul.mubr.bf16.vlgmr.msra.gmra.mrb[8].mxu1 %v3423_v52  ;;  %v2359_v52 = vrot.slane %v2354_v63, %v3397_v39 }
 0x37d   :  { %v2251_v2 = vpop.f32.mrb[8].mxu0  ;;  %v2337_v3 = vpop.f32.mrb[8].mxu1 }
 0x37e   :  { %v2711_v4 = vadd.f32 %v2251_v2, %v1517_v61  ;;  %v2715_v5 = vadd.f32 %v2337_v3, %v1525_v62  ;;  %v2253_v6 = vpop.f32.mrb[9].mxu0  ;;  %v2339_v7 = vpop.f32.mrb[9].mxu1 }
 0x37f   :  { %v2712_v8 = vadd.f32 %v2253_v6, %v1521_v0  ;;  %v2716_v10 = vadd.f32 %v2339_v7, %v1529_v1  ;;  %v2255_v11 = vpop.f32.mrb[10].mxu0  ;;  %v2341_v12 = vpop.f32.mrb[10].mxu1 }
 0x380   :  { %v2346_v13 = vmax.f32 %v2711_v4, 0.0  ;;  %v2713_v15 = vadd.f32 %v2255_v11, %v1517_v61  ;;  %v2717_v16 = vadd.f32 %v2341_v12, %v1525_v62  ;;  %v2257_v17 = vpop.f32.mrb[11].mxu0  ;;  %v2343_v18 = vpop.f32.mrb[11].mxu1  ;;  %v2348_v19 = vmax.f32 %v2715_v5, 0.0 }
 0x381   :  { %v2347_v20 = vmax.f32 %v2712_v8, 0.0  ;;  %v2714_v21 = vadd.f32 %v2257_v17, %v1521_v0  ;;  %v2718_v39 = vadd.f32 %v2343_v18, %v1529_v1  ;;  %v2349_v41 = vmax.f32 %v2716_v10, 0.0 }
 0x382   :  { %v2376_v23 = vmul.f32 %v2359_v52, %v2346_v13  ;;  %v2350_v24 = vmax.f32 %v2713_v15, 0.0  ;;  %v2352_v27 = vmax.f32 %v2717_v16, 0.0  ;;  %v2378_v22 = vmul.f32 %v2367_v14, %v2348_v19 }
 0x383   :  { %v2377_v26 = vmul.f32 %v2363_v9, %v2347_v20  ;;  %v2351_v28 = vmax.f32 %v2714_v21, 0.0  ;;  %v2353_v54 = vmax.f32 %v2718_v39, 0.0  ;;  %v2379_v34 = vmul.f32 %v2371_v25, %v2349_v41 }
 0x384   :  { %v2380_v29 = vmul.f32 %v2359_v52, %v2350_v24  ;;  %v2382_v32 = vmul.f32 %v2367_v14, %v2352_v27 }
 0x385   :  { %v2381_v30 = vmul.f32 %v2363_v9, %v2351_v28  ;;  %v2384_v31 = vadd.f32 %v2377_v26, %v2376_v23  ;;  %v2383_v36 = vmul.f32 %v2371_v25, %v2353_v54 }
 0x387   :  { %v2389_v33 = vadd.f32 %v2381_v30, %v2380_v29  ;;  %v2385_v35 = vadd.f32 %v2384_v31, %v2378_v22 }
 0x389   :  { %v2386_v37 = vadd.f32 %v2385_v35, %v2379_v34  ;;  %v2390_v38 = vadd.f32 %v2389_v33, %v2382_v32 }
 0x38b   :  { %2387 = vadd.xlane.f32.xlu0 %v2386_v37  ;;  %v2391_v40 = vadd.f32 %v2390_v38, %v2383_v36 }
 0x38f   :  { %2392 = vadd.xlane.f32.xlu0 %v2391_v40 }
 0x418   :  { %v2388_v42 = vpop.xlane.xlu0 %2387 }
 0x419   :  { %v2401_v43 = vadd.f32 %v2702_v57, %v2388_v42 }
 0x41b   :  { %2404 = vst.msk [vmem:[%s3456_s9] sm:$0xff] %vm2403_vm0, %v2401_v43 }
 0x41c   :  { %v2393_v44 = vpop.xlane.xlu0 %2392 }
 0x41d   :  { %v2402_v45 = vadd.f32 %v2702_v57, %v2393_v44 }
 0x41f   :  { %2405 = vst.msk [vmem:[%s3456_s9 + $0x8] sm:$0xff] %vm2403_vm0, %v2402_v45 }
 0x420   :  { %2410 = vsyncpa [#allocation4], 1 }
 0x421   :  { %2411 = vsyncpa [#allocation6], 1 }
 0x422   :  { %2412 = vsyncpa [#allocation9], 1 }

// kernel: tpu_custom_call.1
= control target key start
LH: loop header
LB: loop body
LE: loop exit
PB: predicated region body
PF: predicated region fallthrough
CT: control target
= control target key end

     0   :  { %s3447_s0 = inlined_call_operand.hbm [shape: bf16[16,128], index: 0, kind: input, shape index: {}]   ;;  %s3448_s1 = inlined_call_operand.hbm [shape: bf16[128,512], index: 1, kind: input, shape index: {}]   ;;  %s3449_s2 = inlined_call_operand.vmem [shape: f32[1,512], index: 2, kind: input, shape index: {}]   ;;  %s3450_s3 = inlined_call_operand.hbm [shape: bf16[512,512], index: 3, kind: input, shape index: {}]   ;;  %s3451_s4 = inlined_call_operand.vmem [shape: f32[1,512], index: 4, kind: input, shape index: {}]   ;;  %s3452_s5 = inlined_call_operand.hbm [shape: bf16[512,512], index: 5, kind: input, shape index: {}]   ;;  %s3453_s6 = inlined_call_operand.vmem [shape: f32[1,512], index: 6, kind: input, shape index: {}]   ;;  %s3454_s7 = inlined_call_operand.vmem [shape: f32[1,512], index: 7, kind: input, shape index: {}]   ;;  %s3455_s8 = inlined_call_operand.<no memory space> [shape: f32[1,1], index: 8, kind: input, shape index: {}]   ;;  %s3456_s9 = inlined_call_operand.vmem [shape: f32[16,1], index: 9, kind: output, shape index: {}]  }
   0x1   :  { %v14_v0 = vstv %s3455_s8 }
   0x2   :  { %15 = vst [vmem:[#allocation2] sm:$0x1] %v14_v0 }
   0x3   :  { %16 = vsyncpa [#allocation4], 0 }
   0x4   :  { %17 = vsyncpa [#allocation6], 0 }
   0x5   :  { %18 = vsyncpa [#allocation9], 0  ;;  %s3271_s11 = smov [#allocation5]   ;;  %s3177_s15 = scalar_lea.hbm %s3448_s1, 4096 }
   0x6   :  { %s36_s12 = sshll.u32 %s3271_s11, 4  ;;  %p3178_p0 = scmp.ne.s32.totalorder %s3448_s1, %s3177_s15  ;;  %s37_s12 = int_to_ptr.vmem [resolvable:$true] %s36_s12 }
   0x7   :  { %p3181_p1 = scmp.lt.u32.totalorder %s3177_s15, %s3448_s1 }
   0x9   :  { %p3183_p2 = pnand %p3181_p1, %p3178_p0 }
   0xb   :  { %3186 = shalt.err (!%p3183_p2)
}
   0xc   :  { %s3187_s8 = scalar_lea.vmem %s37_s12, 4096  ;;  %p3192_p4 = scmp.lt.s32.totalorder %s37_s12, %s37_s12 }
   0xd   :  { %p3188_p3 = scmp.ne.s32.totalorder %s37_s12, %s3187_s8  ;;  %p3193_p5 = scmp.lt.s32.totalorder %s3187_s8, %s3187_s8 }
   0xf   :  { %p3194_p6 = por %p3193_p5, %p3192_p4 }
  0x11   :  { %p3195_p7 = pnand %p3194_p6, %p3188_p3 }
  0x13   :  { %3198 = shalt.err (!%p3195_p7)
}
  0x14   :  { %s3272_s20 = smov 256   ;;  %s3273_s21 = smov 16  }
  0x15   :  { %42 = dma.hbm_to_vmem [thread:$0]  %s3448_s1, 4096, %s37_s12, [#allocation6], %s3272_s20, %s3272_s20, %s3273_s21  }
  0x16   :  { %s3274_s24 = smov [#allocation3]   ;;  %s3199_s28 = scalar_lea.hbm %s3447_s0, 128 }
  0x17   :  { %s24_s25 = sshll.u32 %s3274_s24, 4  ;;  %p3200_p8 = scmp.ne.s32.totalorder %s3447_s0, %s3199_s28  ;;  %s25_s25 = int_to_ptr.vmem [resolvable:$true] %s24_s25 }
  0x18   :  { %p3203_p9 = scmp.lt.u32.totalorder %s3199_s28, %s3447_s0 }
  0x1a   :  { %p3205_p10 = pnand %p3203_p9, %p3200_p8 }
  0x1c   :  { %3208 = shalt.err (!%p3205_p10)
}
  0x1d   :  { %s3209_s13 = scalar_lea.vmem %s25_s25, 128  ;;  %p3214_p12 = scmp.lt.s32.totalorder %s25_s25, %s25_s25 }
  0x1e   :  { %p3210_p11 = scmp.ne.s32.totalorder %s25_s25, %s3209_s13  ;;  %p3215_p13 = scmp.lt.s32.totalorder %s3209_s13, %s3209_s13 }
  0x20   :  { %p3216_p0 = por %p3215_p13, %p3214_p12 }
  0x22   :  { %p3217_p1 = pnand %p3216_p0, %p3210_p11 }
  0x24   :  { %3220 = shalt.err (!%p3217_p1)
}
  0x25   :  { %s3275_s1 = smov 64   ;;  %s3276_s12 = smov 4  }
  0x26   :  { %30 = dma.hbm_to_vmem [thread:$0]  %s3447_s0, 128, %s25_s25, [#allocation4], %s3275_s1, %s3275_s1, %s3276_s12  }
  0x27   :  { %s3277_s16 = smov [#allocation7]   ;;  %s3278_s18 = smov [#allocation8]  }
  0x28   :  { %s50_s17 = sshll.u32 %s3277_s16, 4  ;;  %s64_s19 = sshll.u32 %s3278_s18, 4  ;;  %s51_s17 = int_to_ptr.vmem [resolvable:$true] %s50_s17  ;;  %s3360_s19 = int_to_ptr.vmem [resolvable:$true] %s64_s19 }
  0x29   :  { %s3221_s23 = scalar_lea.hbm %s3450_s3, 16384 }
  0x2a   :  { %p3222_p2 = scmp.ne.s32.totalorder %s3450_s3, %s3221_s23  ;;  %p3225_p3 = scmp.lt.u32.totalorder %s3221_s23, %s3450_s3 }
  0x2c   :  { %p3227_p4 = pnand %p3225_p3, %p3222_p2 }
  0x2e   :  { %3230 = shalt.err (!%p3227_p4)
}
  0x2f   :  { %s3231_s0 = scalar_lea.vmem %s51_s17, 16384  ;;  %p3236_p6 = scmp.lt.s32.totalorder %s51_s17, %s51_s17 }
  0x30   :  { %p3232_p5 = scmp.ne.s32.totalorder %s51_s17, %s3231_s0  ;;  %p3237_p7 = scmp.lt.s32.totalorder %s3231_s0, %s3231_s0 }
  0x32   :  { %p3238_p8 = por %p3237_p7, %p3236_p6 }
  0x34   :  { %p3239_p9 = pnand %p3238_p8, %p3232_p5 }
  0x36   :  { %3242 = shalt.err (!%p3239_p9)
}
  0x37   :  { %56 = dma.hbm_to_vmem [thread:$0]  %s3450_s3, 16384, %s51_s17, [#allocation6], %s3272_s20, %s3272_s20, %s3273_s21  }
  0x38   :  { %s3243_s11 = scalar_lea.hbm %s3452_s5, 16384 }
  0x39   :  { %p3244_p10 = scmp.ne.s32.totalorder %s3452_s5, %s3243_s11  ;;  %p3247_p11 = scmp.lt.u32.totalorder %s3243_s11, %s3452_s5 }
  0x3b   :  { %p3249_p12 = pnand %p3247_p11, %p3244_p10 }
  0x3d   :  { %3252 = shalt.err (!%p3249_p12)
}
  0x3e   :  { %s3253_s15 = scalar_lea.vmem %s3360_s19, 16384  ;;  %p3258_p0 = scmp.lt.s32.totalorder %s3360_s19, %s3360_s19 }
  0x3f   :  { %p3254_p13 = scmp.ne.s32.totalorder %s3360_s19, %s3253_s15  ;;  %p3259_p1 = scmp.lt.s32.totalorder %s3253_s15, %s3253_s15 }
  0x41   :  { %p3260_p2 = por %p3259_p1, %p3258_p0 }
  0x43   :  { %p3261_p3 = pnand %p3260_p2, %p3254_p13 }
  0x45   :  { %3264 = shalt.err (!%p3261_p3)
}
  0x46   :  { %70 = dma.hbm_to_vmem [thread:$0]  %s3452_s5, 16384, %s3360_s19, [#allocation9], %s3272_s20, %s3272_s20, %s3273_s21  }
  0x47   :  { %3265 = dma.done.wait [#allocation4], 128  }
  0x48   :  { %3266 = vsyncadd [#allocation4], 4294967168 }
  0x49   :  { %3267 = dma.done.wait [#allocation6], 20480  }
  0x4a   :  { %3268 = vsyncadd [#allocation6], 4294946816 }
  0x4b   :  { %3269 = dma.done.wait [#allocation9], 16384  }
  0x4c   :  { %3270 = vsyncadd [#allocation9], 4294950912  ;;  %v3279_v1 = vmov 0   ;;  %v2744_v2 = vld [vmem:[#allocation5 + $0x4] ss:$16 sps:$4 sm:$0xff]   ;;  %v2768_v30 = vld [vmem:[#allocation3] sm:$0xff]  }
  0x4d   :  { %344 = vmatprep.mubr.bf16.mxu0 %v3279_v1  ;;  %387 = vmatprep.mubr.bf16.mxu1 %v3279_v1  ;;  %v2746_v3 = vld [vmem:[#allocation5] ss:$16 sps:$4 sm:$0xff]   ;;  %v2747_v4 = vld [vmem:[#allocation5 + $0x24] ss:$16 sps:$4 sm:$0xff]   ;;  %v2769_v11 = vld [vmem:[#allocation5 + $0xc] ss:$16 sps:$4 sm:$0xff]  }
  0x4e   :  { %312 = vmatprep.subr.bf16.mxu0 %v2744_v2  ;;  %v2749_v5 = vld [vmem:[#allocation5 + $0x20] ss:$16 sps:$4 sm:$0xff]   ;;  %v2750_v6 = vld [vmem:[#allocation5 + $0x44] ss:$16 sps:$4 sm:$0xff]   ;;  %v2771_v12 = vld [vmem:[#allocation5 + $0x8] ss:$16 sps:$4 sm:$0xff]   ;;  %355 = vmatprep.subr.bf16.mxu1 %v2769_v11 }
  0x4f   :  { %313 = vmatpush1.bf16.msra.mxu0 %v2746_v3  ;;  %v2752_v7 = vld [vmem:[#allocation5 + $0x40] ss:$16 sps:$4 sm:$0xff]   ;;  %v2753_v8 = vld [vmem:[#allocation5 + $0x64] ss:$16 sps:$4 sm:$0xff]   ;;  %v2772_v13 = vld [vmem:[#allocation5 + $0x2c] ss:$16 sps:$4 sm:$0xff]   ;;  %356 = vmatpush1.bf16.msra.mxu1 %v2771_v12 }
  0x50   :  { %314 = vmatprep.subr.bf16.mxu0 %v2747_v4  ;;  %v2755_v9 = vld [vmem:[#allocation5 + $0x60] ss:$16 sps:$4 sm:$0xff]   ;;  %v2756_v10 = vld [vmem:[#allocation5 + $0x84] ss:$16 sps:$4 sm:$0xff]   ;;  %v2774_v15 = vld [vmem:[#allocation5 + $0x28] ss:$16 sps:$4 sm:$0xff]   ;;  %357 = vmatprep.subr.bf16.mxu1 %v2772_v13 }
  0x51   :  { %v2758_v14 = vld [vmem:[#allocation5 + $0x80] ss:$16 sps:$4 sm:$0xff]   ;;  %v2759_v16 = vld [vmem:[#allocation5 + $0xa4] ss:$16 sps:$4 sm:$0xff]   ;;  %v2775_v17 = vld [vmem:[#allocation5 + $0x4c] ss:$16 sps:$4 sm:$0xff]  }
  0x52   :  { %v2761_v18 = vld [vmem:[#allocation5 + $0xa0] ss:$16 sps:$4 sm:$0xff]   ;;  %v2777_v19 = vld [vmem:[#allocation5 + $0x48] ss:$16 sps:$4 sm:$0xff]   ;;  %v2762_v20 = vld [vmem:[#allocation5 + $0xc4] ss:$16 sps:$4 sm:$0xff]  }
  0x53   :  { %315 = vmatpush1.bf16.msra.mxu0 %v2749_v5  ;;  %358 = vmatpush1.bf16.msra.mxu1 %v2774_v15  ;;  %v2778_v21 = vld [vmem:[#allocation5 + $0x6c] ss:$16 sps:$4 sm:$0xff]   ;;  %v2764_v22 = vld [vmem:[#allocation5 + $0xc0] ss:$16 sps:$4 sm:$0xff]   ;;  %v2780_v23 = vld [vmem:[#allocation5 + $0x68] ss:$16 sps:$4 sm:$0xff]  }
  0x54   :  { %316 = vmatprep.subr.bf16.mxu0 %v2750_v6  ;;  %359 = vmatprep.subr.bf16.mxu1 %v2775_v17  ;;  %v2765_v24 = vld [vmem:[#allocation5 + $0xe4] ss:$16 sps:$4 sm:$0xff]   ;;  %v2781_v25 = vld [vmem:[#allocation5 + $0x8c] ss:$16 sps:$4 sm:$0xff]   ;;  %v2767_v26 = vld [vmem:[#allocation5 + $0xe0] ss:$16 sps:$4 sm:$0xff]  }
  0x55   :  { %v2783_v27 = vld [vmem:[#allocation5 + $0x88] ss:$16 sps:$4 sm:$0xff]   ;;  %v2784_v28 = vld [vmem:[#allocation5 + $0xac] ss:$16 sps:$4 sm:$0xff]   ;;  %v2795_v29 = vld [vmem:[#allocation7 + $0x4] ss:$16 sps:$4 sm:$0xff]  }
  0x56   :  { %v2786_v31 = vld [vmem:[#allocation5 + $0xa8] ss:$16 sps:$4 sm:$0xff]   ;;  %v2793_v32 = vld [vmem:[#allocation7] ss:$16 sps:$4 sm:$0xff]   ;;  %v2787_v33 = vld [vmem:[#allocation5 + $0xcc] ss:$16 sps:$4 sm:$0xff]  }
  0x57   :  { %317 = vmatpush1.bf16.msra.mxu0 %v2752_v7  ;;  %360 = vmatpush1.bf16.msra.mxu1 %v2777_v19  ;;  %v2801_v34 = vld [vmem:[#allocation7 + $0x24] ss:$16 sps:$4 sm:$0xff]   ;;  %v2789_v35 = vld [vmem:[#allocation5 + $0xc8] ss:$16 sps:$4 sm:$0xff]   ;;  %v2799_v36 = vld [vmem:[#allocation7 + $0x20] ss:$16 sps:$4 sm:$0xff]  }
  0x58   :  { %318 = vmatprep.subr.bf16.mxu0 %v2753_v8  ;;  %361 = vmatprep.subr.bf16.mxu1 %v2778_v21  ;;  %v2790_v37 = vld [vmem:[#allocation5 + $0xec] ss:$16 sps:$4 sm:$0xff]   ;;  %v2807_v38 = vld [vmem:[#allocation7 + $0x44] ss:$16 sps:$4 sm:$0xff]   ;;  %v2792_v39 = vld [vmem:[#allocation5 + $0xe8] ss:$16 sps:$4 sm:$0xff]  }
  0x59   :  { %v2805_v40 = vld [vmem:[#allocation7 + $0x40] ss:$16 sps:$4 sm:$0xff]   ;;  %v2798_v41 = vld [vmem:[#allocation7 + $0xc] ss:$16 sps:$4 sm:$0xff]   ;;  %v2813_v42 = vld [vmem:[#allocation7 + $0x64] ss:$16 sps:$4 sm:$0xff]  }
  0x5a   :  { %v2796_v43 = vld [vmem:[#allocation7 + $0x8] ss:$16 sps:$4 sm:$0xff]   ;;  %v2811_v44 = vld [vmem:[#allocation7 + $0x60] ss:$16 sps:$4 sm:$0xff]   ;;  %v2804_v45 = vld [vmem:[#allocation7 + $0x2c] ss:$16 sps:$4 sm:$0xff]  }
  0x5b   :  { %319 = vmatpush1.bf16.msra.mxu0 %v2755_v9  ;;  %362 = vmatpush1.bf16.msra.mxu1 %v2780_v23  ;;  %v2819_v46 = vld [vmem:[#allocation7 + $0x84] ss:$16 sps:$4 sm:$0xff]   ;;  %v2802_v47 = vld [vmem:[#allocation7 + $0x28] ss:$16 sps:$4 sm:$0xff]   ;;  %v2817_v48 = vld [vmem:[#allocation7 + $0x80] ss:$16 sps:$4 sm:$0xff]  }
  0x5c   :  { %320 = vmatprep.subr.bf16.mxu0 %v2756_v10  ;;  %363 = vmatprep.subr.bf16.mxu1 %v2781_v25  ;;  %v2810_v49 = vld [vmem:[#allocation7 + $0x4c] ss:$16 sps:$4 sm:$0xff]   ;;  %v2825_v50 = vld [vmem:[#allocation7 + $0xa4] ss:$16 sps:$4 sm:$0xff]   ;;  %v2808_v51 = vld [vmem:[#allocation7 + $0x48] ss:$16 sps:$4 sm:$0xff]  }
  0x5d   :  { %v2823_v52 = vld [vmem:[#allocation7 + $0xa0] ss:$16 sps:$4 sm:$0xff]   ;;  %v2816_v53 = vld [vmem:[#allocation7 + $0x6c] ss:$16 sps:$4 sm:$0xff]   ;;  %v2831_v54 = vld [vmem:[#allocation7 + $0xc4] ss:$16 sps:$4 sm:$0xff]  }
  0x5e   :  { %v2814_v55 = vld [vmem:[#allocation7 + $0x68] ss:$16 sps:$4 sm:$0xff]   ;;  %v2829_v56 = vld [vmem:[#allocation7 + $0xc0] ss:$16 sps:$4 sm:$0xff]   ;;  %v2822_v57 = vld [vmem:[#allocation7 + $0x8c] ss:$16 sps:$4 sm:$0xff]  }
  0x5f   :  { %321 = vmatpush1.bf16.msra.mxu0 %v2758_v14  ;;  %364 = vmatpush1.bf16.msra.mxu1 %v2783_v27  ;;  %v2837_v58 = vld [vmem:[#allocation7 + $0xe4] ss:$16 sps:$4 sm:$0xff]   ;;  %v2820_v59 = vld [vmem:[#allocation7 + $0x88] ss:$16 sps:$4 sm:$0xff]   ;;  %v2828_v60 = vld [vmem:[#allocation7 + $0xac] ss:$16 sps:$4 sm:$0xff]  }
  0x60   :  { %322 = vmatprep.subr.bf16.mxu0 %v2759_v16  ;;  %365 = vmatprep.subr.bf16.mxu1 %v2784_v28  ;;  %v2835_v61 = vld [vmem:[#allocation7 + $0xe0] ss:$16 sps:$4 sm:$0xff]   ;;  %v2843_v62 = vld [vmem:[#allocation7 + $0x104] ss:$16 sps:$4 sm:$0xff]   ;;  %v2826_v63 = vld [vmem:[#allocation7 + $0xa8] ss:$16 sps:$4 sm:$0xff]  }
  0x61   :  { %v2841_v0 = vld [vmem:[#allocation7 + $0x100] ss:$16 sps:$4 sm:$0xff]   ;;  %v2834_v1 = vld [vmem:[#allocation7 + $0xcc] ss:$16 sps:$4 sm:$0xff]   ;;  %v2849_v2 = vld [vmem:[#allocation7 + $0x124] ss:$16 sps:$4 sm:$0xff]  }
  0x62   :  { %v2832_v3 = vld [vmem:[#allocation7 + $0xc8] ss:$16 sps:$4 sm:$0xff]   ;;  %v2847_v4 = vld [vmem:[#allocation7 + $0x120] ss:$16 sps:$4 sm:$0xff]   ;;  %v2840_v5 = vld [vmem:[#allocation7 + $0xec] ss:$16 sps:$4 sm:$0xff]  }
  0x63   :  { %323 = vmatpush1.bf16.msra.mxu0 %v2761_v18  ;;  %366 = vmatpush1.bf16.msra.mxu1 %v2786_v31  ;;  %v2855_v6 = vld [vmem:[#allocation7 + $0x144] ss:$16 sps:$4 sm:$0xff]   ;;  %v2838_v7 = vld [vmem:[#allocation7 + $0xe8] ss:$16 sps:$4 sm:$0xff]   ;;  %v2853_v8 = vld [vmem:[#allocation7 + $0x140] ss:$16 sps:$4 sm:$0xff]  }
  0x64   :  { %324 = vmatprep.subr.bf16.mxu0 %v2762_v20  ;;  %367 = vmatprep.subr.bf16.mxu1 %v2787_v33  ;;  %v2846_v9 = vld [vmem:[#allocation7 + $0x10c] ss:$16 sps:$4 sm:$0xff]   ;;  %v2861_v10 = vld [vmem:[#allocation7 + $0x164] ss:$16 sps:$4 sm:$0xff]   ;;  %v2844_v11 = vld [vmem:[#allocation7 + $0x108] ss:$16 sps:$4 sm:$0xff]  }
  0x65   :  { %v2859_v12 = vld [vmem:[#allocation7 + $0x160] ss:$16 sps:$4 sm:$0xff]   ;;  %v2852_v13 = vld [vmem:[#allocation7 + $0x12c] ss:$16 sps:$4 sm:$0xff]   ;;  %v2867_v14 = vld [vmem:[#allocation7 + $0x184] ss:$16 sps:$4 sm:$0xff]  }
  0x66   :  { %v2850_v15 = vld [vmem:[#allocation7 + $0x128] ss:$16 sps:$4 sm:$0xff]   ;;  %v2865_v16 = vld [vmem:[#allocation7 + $0x180] ss:$16 sps:$4 sm:$0xff]   ;;  %v2858_v17 = vld [vmem:[#allocation7 + $0x14c] ss:$16 sps:$4 sm:$0xff]  }
  0x67   :  { %325 = vmatpush1.bf16.msra.mxu0 %v2764_v22  ;;  %368 = vmatpush1.bf16.msra.mxu1 %v2789_v35  ;;  %v2873_v18 = vld [vmem:[#allocation7 + $0x1a4] ss:$16 sps:$4 sm:$0xff]   ;;  %v2856_v19 = vld [vmem:[#allocation7 + $0x148] ss:$16 sps:$4 sm:$0xff]   ;;  %v2871_v20 = vld [vmem:[#allocation7 + $0x1a0] ss:$16 sps:$4 sm:$0xff]  }
  0x68   :  { %326 = vmatprep.subr.bf16.mxu0 %v2765_v24  ;;  %369 = vmatprep.subr.bf16.mxu1 %v2790_v37  ;;  %v2864_v21 = vld [vmem:[#allocation7 + $0x16c] ss:$16 sps:$4 sm:$0xff]   ;;  %v2862_v22 = vld [vmem:[#allocation7 + $0x168] ss:$16 sps:$4 sm:$0xff]   ;;  %v2879_v27 = vld [vmem:[#allocation7 + $0x1c4] ss:$16 sps:$4 sm:$0xff]   ;;  %v126_v37 = vlaneseq }
  0x69   :  { %v2870_v23 = vld [vmem:[#allocation7 + $0x18c] ss:$16 sps:$4 sm:$0xff]   ;;  %v2868_v24 = vld [vmem:[#allocation7 + $0x188] ss:$16 sps:$4 sm:$0xff]   ;;  %v2885_v31 = vld [vmem:[#allocation7 + $0x1e4] ss:$16 sps:$4 sm:$0xff]  }
  0x6a   :  { %v2876_v25 = vld [vmem:[#allocation7 + $0x1ac] ss:$16 sps:$4 sm:$0xff]   ;;  %v2883_v33 = vld [vmem:[#allocation7 + $0x1e0] ss:$16 sps:$4 sm:$0xff]   ;;  %v2891_v35 = vld [vmem:[#allocation7 + $0x204] ss:$16 sps:$4 sm:$0xff]  }
  0x6b   :  { %327 = vmatpush1.bf16.msra.mxu0 %v2767_v26  ;;  %370 = vmatpush1.bf16.msra.mxu1 %v2792_v39  ;;  %v2874_v26 = vld [vmem:[#allocation7 + $0x1a8] ss:$16 sps:$4 sm:$0xff]   ;;  %v2882_v28 = vld [vmem:[#allocation7 + $0x1cc] ss:$16 sps:$4 sm:$0xff]   ;;  %vm2403_vm0 = vcmask 7168  }
  0x6c   :  { %1200 = vmatprep.subr.bf16.mxu0 %v2795_v29  ;;  %1286 = vmatprep.subr.bf16.mxu1 %v2798_v41  ;;  %v2877_v29 = vld [vmem:[#allocation7 + $0x1c0] ss:$16 sps:$4 sm:$0xff]  }
  0x6e   :  { %345 = vmatmul.mubr.bf16.vlgmr.msra.gmra.mrb[0].mxu0 %v2768_v30  ;;  %388 = vmatmul.mubr.bf16.vlgmr.msra.gmra.mrb[0].mxu1 %v2768_v30  ;;  %v2880_v30 = vld [vmem:[#allocation7 + $0x1c8] ss:$16 sps:$4 sm:$0xff]  }
  0x6f   :  { %1201 = vmatpush1.bf16.msra.mxu0 %v2793_v32  ;;  %1287 = vmatpush1.bf16.msra.mxu1 %v2796_v43  ;;  %v2888_v32 = vld [vmem:[#allocation7 + $0x1ec] ss:$16 sps:$4 sm:$0xff]  }
  0x70   :  { %1202 = vmatprep.subr.bf16.mxu0 %v2801_v34  ;;  %1288 = vmatprep.subr.bf16.mxu1 %v2804_v45  ;;  %v2886_v34 = vld [vmem:[#allocation7 + $0x1e8] ss:$16 sps:$4 sm:$0xff]  }
  0x73   :  { %1203 = vmatpush1.bf16.msra.mxu0 %v2799_v36  ;;  %1289 = vmatpush1.bf16.msra.mxu1 %v2802_v47  ;;  %v2894_v36 = vld [vmem:[#allocation7 + $0x20c] ss:$16 sps:$4 sm:$0xff]  }
  0x74   :  { %1204 = vmatprep.subr.bf16.mxu0 %v2807_v38  ;;  %1290 = vmatprep.subr.bf16.mxu1 %v2810_v49  ;;  %v127_v38 = vshrl.u32 %v126_v37, 7  ;;  %v2928_v37 = vld [vmem:[#allocation7 + $0x2c8] ss:$16 sps:$4 sm:$0xff]  }
  0x76   :  { %v3397_v39 = vsub.s32 0, %v127_v38  ;;  %v3402_v41 = vsub.s32 1, %v127_v38 }
  0x77   :  { %1205 = vmatpush1.bf16.msra.mxu0 %v2805_v40  ;;  %1291 = vmatpush1.bf16.msra.mxu1 %v2808_v51  ;;  %v124_v40 = vld [vmem:[%s3449_s2] sm:$0xf] }
  0x78   :  { %1206 = vmatprep.subr.bf16.mxu0 %v2813_v42  ;;  %1292 = vmatprep.subr.bf16.mxu1 %v2816_v53  ;;  %v129_v42 = vrot.slane %v124_v40, %v3397_v39  ;;  %v133_v43 = vrot.slane %v124_v40, %v3402_v41 }
  0x7b   :  { %1207 = vmatpush1.bf16.msra.mxu0 %v2811_v44  ;;  %1293 = vmatpush1.bf16.msra.mxu1 %v2814_v55 }
  0x7c   :  { %1208 = vmatprep.subr.bf16.mxu0 %v2819_v46  ;;  %1294 = vmatprep.subr.bf16.mxu1 %v2822_v57  ;;  %v3408_v57 = vsub.s32 3, %v127_v38 }
  0x7f   :  { %1209 = vmatpush1.bf16.msra.mxu0 %v2817_v48  ;;  %1295 = vmatpush1.bf16.msra.mxu1 %v2820_v59 }
  0x80   :  { %1210 = vmatprep.subr.bf16.mxu0 %v2825_v50  ;;  %1296 = vmatprep.subr.bf16.mxu1 %v2828_v60  ;;  %v2889_v60 = vld [vmem:[#allocation7 + $0x200] ss:$16 sps:$4 sm:$0xff]  }
  0x83   :  { %1211 = vmatpush1.bf16.msra.mxu0 %v2823_v52  ;;  %1297 = vmatpush1.bf16.msra.mxu1 %v2826_v63  ;;  %v2900_v63 = vld [vmem:[#allocation7 + $0x22c] ss:$16 sps:$4 sm:$0xff]  }
  0x84   :  { %1212 = vmatprep.subr.bf16.mxu0 %v2831_v54  ;;  %1298 = vmatprep.subr.bf16.mxu1 %v2834_v1  ;;  %v3406_v54 = vsub.s32 2, %v127_v38  ;;  %v141_v1 = vrot.slane %v124_v40, %v3408_v57  ;;  %v2933_v38 = vld [vmem:[#allocation7 + $0x2e4] ss:$16 sps:$4 sm:$0xff]  }
  0x87   :  { %1213 = vmatpush1.bf16.msra.mxu0 %v2829_v56  ;;  %1299 = vmatpush1.bf16.msra.mxu1 %v2832_v3  ;;  %v2898_v3 = vld [vmem:[#allocation7 + $0x228] ss:$16 sps:$4 sm:$0xff]  }
  0x88   :  { %1214 = vmatprep.subr.bf16.mxu0 %v2837_v58  ;;  %1300 = vmatprep.subr.bf16.mxu1 %v2840_v5  ;;  %v2903_v5 = vld [vmem:[#allocation7 + $0x244] ss:$16 sps:$4 sm:$0xff]  }
  0x8b   :  { %1215 = vmatpush1.bf16.msra.mxu0 %v2835_v61  ;;  %1301 = vmatpush1.bf16.msra.mxu1 %v2838_v7  ;;  %v2892_v61 = vld [vmem:[#allocation7 + $0x208] ss:$16 sps:$4 sm:$0xff]  }
  0x8c   :  { %1216 = vmatprep.subr.bf16.mxu0 %v2843_v62  ;;  %1302 = vmatprep.subr.bf16.mxu1 %v2846_v9  ;;  %v2897_v62 = vld [vmem:[#allocation7 + $0x224] ss:$16 sps:$4 sm:$0xff]  }
  0x8f   :  { %1217 = vmatpush1.bf16.msra.mxu0 %v2841_v0  ;;  %1303 = vmatpush1.bf16.msra.mxu1 %v2844_v11  ;;  %v137_v0 = vrot.slane %v124_v40, %v3406_v54  ;;  %v2936_v40 = vld [vmem:[#allocation7 + $0x2ec] ss:$16 sps:$4 sm:$0xff]  }
  0x90   :  { %1218 = vmatprep.subr.bf16.mxu0 %v2849_v2  ;;  %1304 = vmatprep.subr.bf16.mxu1 %v2852_v13  ;;  %v2895_v2 = vld [vmem:[#allocation7 + $0x220] ss:$16 sps:$4 sm:$0xff]  }
  0x93   :  { %1219 = vmatpush1.bf16.msra.mxu0 %v2847_v4  ;;  %1305 = vmatpush1.bf16.msra.mxu1 %v2850_v15  ;;  %v2904_v15 = vld [vmem:[#allocation7 + $0x248] ss:$16 sps:$4 sm:$0xff]  }
  0x94   :  { %1220 = vmatprep.subr.bf16.mxu0 %v2855_v6  ;;  %1306 = vmatprep.subr.bf16.mxu1 %v2858_v17  ;;  %v2906_v6 = vld [vmem:[#allocation7 + $0x24c] ss:$16 sps:$4 sm:$0xff]  }
  0x97   :  { %1221 = vmatpush1.bf16.msra.mxu0 %v2853_v8  ;;  %1307 = vmatpush1.bf16.msra.mxu1 %v2856_v19  ;;  %v2912_v19 = vld [vmem:[#allocation7 + $0x26c] ss:$16 sps:$4 sm:$0xff]  }
  0x98   :  { %1222 = vmatprep.subr.bf16.mxu0 %v2861_v10  ;;  %1308 = vmatprep.subr.bf16.mxu1 %v2864_v21 }
  0x9b   :  { %1223 = vmatpush1.bf16.msra.mxu0 %v2859_v12  ;;  %1309 = vmatpush1.bf16.msra.mxu1 %v2862_v22 }
  0x9c   :  { %1224 = vmatprep.subr.bf16.mxu0 %v2867_v14  ;;  %1310 = vmatprep.subr.bf16.mxu1 %v2870_v23  ;;  %v2901_v14 = vld [vmem:[#allocation7 + $0x240] ss:$16 sps:$4 sm:$0xff]  }
  0x9d   :  { %v2907_v23 = vld [vmem:[#allocation7 + $0x260] ss:$16 sps:$4 sm:$0xff]  }
  0x9f   :  { %1225 = vmatpush1.bf16.msra.mxu0 %v2865_v16  ;;  %1311 = vmatpush1.bf16.msra.mxu1 %v2868_v24  ;;  %v2910_v24 = vld [vmem:[#allocation7 + $0x268] ss:$16 sps:$4 sm:$0xff]  }
  0xa0   :  { %1226 = vmatprep.subr.bf16.mxu0 %v2873_v18  ;;  %1312 = vmatprep.subr.bf16.mxu1 %v2876_v25  ;;  %v2909_v18 = vld [vmem:[#allocation7 + $0x264] ss:$16 sps:$4 sm:$0xff]  }
  0xa3   :  { %1227 = vmatpush1.bf16.msra.mxu0 %v2871_v20  ;;  %1313 = vmatpush1.bf16.msra.mxu1 %v2874_v26  ;;  %v2915_v26 = vld [vmem:[#allocation7 + $0x284] ss:$16 sps:$4 sm:$0xff]  }
  0xa4   :  { %1228 = vmatprep.subr.bf16.mxu0 %v2879_v27  ;;  %1314 = vmatprep.subr.bf16.mxu1 %v2882_v28  ;;  %v2918_v27 = vld [vmem:[#allocation7 + $0x28c] ss:$16 sps:$4 sm:$0xff]   ;;  %v2913_v28 = vld [vmem:[#allocation7 + $0x280] ss:$16 sps:$4 sm:$0xff]  }
  0xa7   :  { %1229 = vmatpush1.bf16.msra.mxu0 %v2877_v29  ;;  %1315 = vmatpush1.bf16.msra.mxu1 %v2880_v30  ;;  %v2916_v29 = vld [vmem:[#allocation7 + $0x288] ss:$16 sps:$4 sm:$0xff]   ;;  %v2921_v30 = vld [vmem:[#allocation7 + $0x2a4] ss:$16 sps:$4 sm:$0xff]  }
  0xa8   :  { %1230 = vmatprep.subr.bf16.mxu0 %v2885_v31  ;;  %1316 = vmatprep.subr.bf16.mxu1 %v2888_v32  ;;  %v2924_v31 = vld [vmem:[#allocation7 + $0x2ac] ss:$16 sps:$4 sm:$0xff]   ;;  %v2919_v32 = vld [vmem:[#allocation7 + $0x2a0] ss:$16 sps:$4 sm:$0xff]  }
  0xab   :  { %1231 = vmatpush1.bf16.msra.mxu0 %v2883_v33  ;;  %1317 = vmatpush1.bf16.msra.mxu1 %v2886_v34  ;;  %v2922_v33 = vld [vmem:[#allocation7 + $0x2a8] ss:$16 sps:$4 sm:$0xff]   ;;  %v2927_v34 = vld [vmem:[#allocation7 + $0x2c4] ss:$16 sps:$4 sm:$0xff]  }
  0xac   :  { %1243 = vmatprep.subr.bf16.mxu0 %v2891_v35  ;;  %1329 = vmatprep.subr.bf16.mxu1 %v2894_v36  ;;  %v2930_v35 = vld [vmem:[#allocation7 + $0x2cc] ss:$16 sps:$4 sm:$0xff]   ;;  %v2925_v36 = vld [vmem:[#allocation7 + $0x2c0] ss:$16 sps:$4 sm:$0xff]  }
 0x141   :  { %v346_v44 = vpop.f32.mrb[0].mxu0  ;;  %v389_v4 = vpop.f32.mrb[0].mxu1 }
 0x142   :  { %v347_v45 = vadd.f32 %v346_v44, %v129_v42  ;;  %v348_v46 = vpop.f32.mrb[1].mxu0  ;;  %v390_v7 = vadd.f32 %v389_v4, %v137_v0  ;;  %v391_v8 = vpop.f32.mrb[1].mxu1  ;;  %v2939_v44 = vld [vmem:[#allocation7 + $0x304] ss:$16 sps:$4 sm:$0xff]   ;;  %v2967_v4 = vld [vmem:[#allocation7 + $0x3a0] ss:$16 sps:$4 sm:$0xff]  }
 0x143   :  { %v349_v47 = vadd.f32 %v348_v46, %v133_v43  ;;  %v350_v48 = vpop.f32.mrb[2].mxu0  ;;  %v392_v9 = vadd.f32 %v391_v8, %v141_v1  ;;  %v393_v10 = vpop.f32.mrb[2].mxu1  ;;  %v2937_v46 = vld [vmem:[#allocation7 + $0x300] ss:$16 sps:$4 sm:$0xff]  }
 0x144   :  { %v351_v49 = vadd.f32 %v350_v48, %v129_v42  ;;  %v352_v50 = vpop.f32.mrb[3].mxu0  ;;  %v398_v52 = vmax.f32 %v347_v45, 0.0  ;;  %v400_v11 = vmax.f32 %v390_v7, 0.0  ;;  %v394_v12 = vadd.f32 %v393_v10, %v137_v0  ;;  %v395_v13 = vpop.f32.mrb[3].mxu1  ;;  %v2931_v42 = vld [vmem:[#allocation7 + $0x2e0] ss:$16 sps:$4 sm:$0xff]  }
 0x145   :  { %v353_v51 = vadd.f32 %v352_v50, %v133_v43  ;;  %v399_v55 = vmax.f32 %v349_v47, 0.0  ;;  %v401_v16 = vmax.f32 %v392_v9, 0.0  ;;  %v396_v17 = vadd.f32 %v395_v13, %v141_v1  ;;  %v2934_v43 = vld [vmem:[#allocation7 + $0x2e8] ss:$16 sps:$4 sm:$0xff]   ;;  %v2942_v45 = vld [vmem:[#allocation7 + $0x30c] ss:$16 sps:$4 sm:$0xff]  }
 0x146   :  { %v402_v53 = vmax.f32 %v351_v49, 0.0  ;;  %v404_v20 = vmax.f32 %v394_v12, 0.0  ;;  %v2940_v47 = vld [vmem:[#allocation7 + $0x308] ss:$16 sps:$4 sm:$0xff]   ;;  %v2945_v48 = vld [vmem:[#allocation7 + $0x324] ss:$16 sps:$4 sm:$0xff]  }
 0x147   :  { %v403_v56 = vmax.f32 %v353_v51, 0.0  ;;  %v405_v21 = vmax.f32 %v396_v17, 0.0  ;;  %v2948_v49 = vld [vmem:[#allocation7 + $0x32c] ss:$16 sps:$4 sm:$0xff]   ;;  %v2943_v50 = vld [vmem:[#allocation7 + $0x320] ss:$16 sps:$4 sm:$0xff]  }
 0x148   :  { %v406_v58 = vpack.c.bf16 %v402_v53, %v398_v52  ;;  %v3412_v22 = vpack.c.bf16 %v404_v20, %v400_v11  ;;  %v2946_v51 = vld [vmem:[#allocation7 + $0x328] ss:$16 sps:$4 sm:$0xff]   ;;  %v2951_v52 = vld [vmem:[#allocation7 + $0x344] ss:$16 sps:$4 sm:$0xff]   ;;  %v2954_v53 = vld [vmem:[#allocation7 + $0x34c] ss:$16 sps:$4 sm:$0xff]  }
 0x149   :  { %v407_v59 = vpack.c.bf16 %v403_v56, %v399_v55  ;;  %v409_v25 = vpack.c.bf16 %v405_v21, %v401_v16  ;;  %v2949_v55 = vld [vmem:[#allocation7 + $0x340] ss:$16 sps:$4 sm:$0xff]   ;;  %v2952_v56 = vld [vmem:[#allocation7 + $0x348] ss:$16 sps:$4 sm:$0xff]   ;;  %v2978_v7 = vld [vmem:[#allocation7 + $0x3cc] ss:$16 sps:$4 sm:$0xff]  }
 0x14a   :  { %v2961_v0 = vld [vmem:[#allocation7 + $0x380] ss:$16 sps:$4 sm:$0xff]   ;;  %v2964_v1 = vld [vmem:[#allocation7 + $0x388] ss:$16 sps:$4 sm:$0xff]   ;;  %v2981_v10 = vld [vmem:[#allocation7 + $0x3e4] ss:$16 sps:$4 sm:$0xff]  }
 0x14b   :  { %1232 = vmatprep.mubr.bf16.mxu0 %v407_v59  ;;  %1318 = vmatprep.mubr.bf16.mxu1 %v407_v59  ;;  %v2960_v59 = vld [vmem:[#allocation7 + $0x36c] ss:$16 sps:$4 sm:$0xff]   ;;  %v2973_v8 = vld [vmem:[#allocation7 + $0x3c0] ss:$16 sps:$4 sm:$0xff]   ;;  %v2976_v9 = vld [vmem:[#allocation7 + $0x3c8] ss:$16 sps:$4 sm:$0xff]  }
 0x14c   :  { %1233 = vmatmul.mubr.bf16.vlgmr.msra.gmra.mrb[4].mxu0 %v406_v58  ;;  %1319 = vmatmul.mubr.bf16.vlgmr.msra.gmra.mrb[4].mxu1 %v406_v58  ;;  %v2957_v58 = vld [vmem:[#allocation7 + $0x364] ss:$16 sps:$4 sm:$0xff]   ;;  %v2984_v11 = vld [vmem:[#allocation7 + $0x3ec] ss:$16 sps:$4 sm:$0xff]   ;;  %v2979_v12 = vld [vmem:[#allocation7 + $0x3e0] ss:$16 sps:$4 sm:$0xff]  }
 0x14d   :  { %1244 = vmatpush1.bf16.msra.mxu0 %v2889_v60  ;;  %1330 = vmatpush1.bf16.msra.mxu1 %v2892_v61  ;;  %v2955_v60 = vld [vmem:[#allocation7 + $0x360] ss:$16 sps:$4 sm:$0xff]   ;;  %v2958_v61 = vld [vmem:[#allocation7 + $0x368] ss:$16 sps:$4 sm:$0xff]  }
 0x14e   :  { %1245 = vmatprep.subr.bf16.mxu0 %v2897_v62  ;;  %1331 = vmatprep.subr.bf16.mxu1 %v2900_v63  ;;  %v2963_v62 = vld [vmem:[#allocation7 + $0x384] ss:$16 sps:$4 sm:$0xff]   ;;  %v2966_v63 = vld [vmem:[#allocation7 + $0x38c] ss:$16 sps:$4 sm:$0xff]   ;;  %v2982_v13 = vld [vmem:[#allocation7 + $0x3e8] ss:$16 sps:$4 sm:$0xff]  }
 0x14f   :  { %1275 = vmatprep.mubr.bf16.mxu0 %v409_v25  ;;  %1361 = vmatprep.mubr.bf16.mxu1 %v409_v25  ;;  %v2985_v16 = vld [vmem:[#allocation8] ss:$16 sps:$4 sm:$0xff]   ;;  %v2988_v17 = vld [vmem:[#allocation8 + $0x8] ss:$16 sps:$4 sm:$0xff]  }
 0x150   :  { %v2991_v20 = vld [vmem:[#allocation8 + $0x20] ss:$16 sps:$4 sm:$0xff]   ;;  %v2994_v21 = vld [vmem:[#allocation8 + $0x28] ss:$16 sps:$4 sm:$0xff]  }
 0x151   :  { %1246 = vmatpush1.bf16.msra.mxu0 %v2895_v2  ;;  %1332 = vmatpush1.bf16.msra.mxu1 %v2898_v3  ;;  %v2969_v2 = vld [vmem:[#allocation7 + $0x3a4] ss:$16 sps:$4 sm:$0xff]   ;;  %v2972_v3 = vld [vmem:[#allocation7 + $0x3ac] ss:$16 sps:$4 sm:$0xff]   ;;  %v2997_v25 = vld [vmem:[#allocation8 + $0x40] ss:$16 sps:$4 sm:$0xff]  }
 0x152   :  { %1247 = vmatprep.subr.bf16.mxu0 %v2903_v5  ;;  %1333 = vmatprep.subr.bf16.mxu1 %v2906_v6  ;;  %v2970_v5 = vld [vmem:[#allocation7 + $0x3a8] ss:$16 sps:$4 sm:$0xff]   ;;  %v2975_v6 = vld [vmem:[#allocation7 + $0x3c4] ss:$16 sps:$4 sm:$0xff]  }
 0x155   :  { %1248 = vmatpush1.bf16.msra.mxu0 %v2901_v14  ;;  %1334 = vmatpush1.bf16.msra.mxu1 %v2904_v15  ;;  %v2987_v14 = vld [vmem:[#allocation8 + $0x4] ss:$16 sps:$4 sm:$0xff]   ;;  %v2990_v15 = vld [vmem:[#allocation8 + $0xc] ss:$16 sps:$4 sm:$0xff]  }
 0x156   :  { %1249 = vmatprep.subr.bf16.mxu0 %v2909_v18  ;;  %1335 = vmatprep.subr.bf16.mxu1 %v2912_v19  ;;  %v2993_v18 = vld [vmem:[#allocation8 + $0x24] ss:$16 sps:$4 sm:$0xff]   ;;  %v2996_v19 = vld [vmem:[#allocation8 + $0x2c] ss:$16 sps:$4 sm:$0xff]  }
 0x159   :  { %1250 = vmatpush1.bf16.msra.mxu0 %v2907_v23  ;;  %1336 = vmatpush1.bf16.msra.mxu1 %v2910_v24  ;;  %v2999_v23 = vld [vmem:[#allocation8 + $0x44] ss:$16 sps:$4 sm:$0xff]   ;;  %v3002_v24 = vld [vmem:[#allocation8 + $0x4c] ss:$16 sps:$4 sm:$0xff]  }
 0x15a   :  { %1251 = vmatprep.subr.bf16.mxu0 %v2915_v26  ;;  %1337 = vmatprep.subr.bf16.mxu1 %v2918_v27  ;;  %v3000_v26 = vld [vmem:[#allocation8 + $0x48] ss:$16 sps:$4 sm:$0xff]   ;;  %v3005_v27 = vld [vmem:[#allocation8 + $0x64] ss:$16 sps:$4 sm:$0xff]  }
 0x15d   :  { %1252 = vmatpush1.bf16.msra.mxu0 %v2913_v28  ;;  %1338 = vmatpush1.bf16.msra.mxu1 %v2916_v29  ;;  %v3008_v28 = vld [vmem:[#allocation8 + $0x6c] ss:$16 sps:$4 sm:$0xff]   ;;  %v3003_v29 = vld [vmem:[#allocation8 + $0x60] ss:$16 sps:$4 sm:$0xff]  }
 0x15e   :  { %1253 = vmatprep.subr.bf16.mxu0 %v2921_v30  ;;  %1339 = vmatprep.subr.bf16.mxu1 %v2924_v31  ;;  %v3011_v30 = vld [vmem:[#allocation8 + $0x84] ss:$16 sps:$4 sm:$0xff]   ;;  %v3014_v31 = vld [vmem:[#allocation8 + $0x8c] ss:$16 sps:$4 sm:$0xff]  }
 0x161   :  { %1254 = vmatpush1.bf16.msra.mxu0 %v2919_v32  ;;  %1340 = vmatpush1.bf16.msra.mxu1 %v2922_v33  ;;  %v3009_v32 = vld [vmem:[#allocation8 + $0x80] ss:$16 sps:$4 sm:$0xff]   ;;  %v3012_v33 = vld [vmem:[#allocation8 + $0x88] ss:$16 sps:$4 sm:$0xff]  }
 0x162   :  { %1255 = vmatprep.subr.bf16.mxu0 %v2927_v34  ;;  %1341 = vmatprep.subr.bf16.mxu1 %v2930_v35  ;;  %v3017_v34 = vld [vmem:[#allocation8 + $0xa4] ss:$16 sps:$4 sm:$0xff]   ;;  %v3020_v35 = vld [vmem:[#allocation8 + $0xac] ss:$16 sps:$4 sm:$0xff]  }
 0x165   :  { %1256 = vmatpush1.bf16.msra.mxu0 %v2925_v36  ;;  %1342 = vmatpush1.bf16.msra.mxu1 %v2928_v37  ;;  %v3015_v36 = vld [vmem:[#allocation8 + $0xa0] ss:$16 sps:$4 sm:$0xff]   ;;  %v3018_v37 = vld [vmem:[#allocation8 + $0xa8] ss:$16 sps:$4 sm:$0xff]  }
 0x166   :  { %1257 = vmatprep.subr.bf16.mxu0 %v2933_v38  ;;  %1343 = vmatprep.subr.bf16.mxu1 %v2936_v40  ;;  %v3023_v38 = vld [vmem:[#allocation8 + $0xc4] ss:$16 sps:$4 sm:$0xff]   ;;  %v3026_v40 = vld [vmem:[#allocation8 + $0xcc] ss:$16 sps:$4 sm:$0xff]  }
 0x169   :  { %1258 = vmatpush1.bf16.msra.mxu0 %v2931_v42  ;;  %1344 = vmatpush1.bf16.msra.mxu1 %v2934_v43  ;;  %v3021_v42 = vld [vmem:[#allocation8 + $0xc0] ss:$16 sps:$4 sm:$0xff]   ;;  %v3024_v43 = vld [vmem:[#allocation8 + $0xc8] ss:$16 sps:$4 sm:$0xff]  }
 0x16a   :  { %1259 = vmatprep.subr.bf16.mxu0 %v2939_v44  ;;  %1345 = vmatprep.subr.bf16.mxu1 %v2942_v45  ;;  %v3029_v44 = vld [vmem:[#allocation8 + $0xe4] ss:$16 sps:$4 sm:$0xff]   ;;  %v3032_v45 = vld [vmem:[#allocation8 + $0xec] ss:$16 sps:$4 sm:$0xff]  }
 0x16d   :  { %1260 = vmatpush1.bf16.msra.mxu0 %v2937_v46  ;;  %1346 = vmatpush1.bf16.msra.mxu1 %v2940_v47  ;;  %v3027_v46 = vld [vmem:[#allocation8 + $0xe0] ss:$16 sps:$4 sm:$0xff]   ;;  %v3030_v47 = vld [vmem:[#allocation8 + $0xe8] ss:$16 sps:$4 sm:$0xff]  }
 0x16e   :  { %1261 = vmatprep.subr.bf16.mxu0 %v2945_v48  ;;  %1347 = vmatprep.subr.bf16.mxu1 %v2948_v49  ;;  %v3035_v48 = vld [vmem:[#allocation8 + $0x104] ss:$16 sps:$4 sm:$0xff]   ;;  %v3038_v49 = vld [vmem:[#allocation8 + $0x10c] ss:$16 sps:$4 sm:$0xff]  }
 0x171   :  { %1262 = vmatpush1.bf16.msra.mxu0 %v2943_v50  ;;  %1348 = vmatpush1.bf16.msra.mxu1 %v2946_v51  ;;  %v3033_v50 = vld [vmem:[#allocation8 + $0x100] ss:$16 sps:$4 sm:$0xff]   ;;  %v3036_v51 = vld [vmem:[#allocation8 + $0x108] ss:$16 sps:$4 sm:$0xff]  }
 0x172   :  { %1263 = vmatprep.subr.bf16.mxu0 %v2951_v52  ;;  %1349 = vmatprep.subr.bf16.mxu1 %v2954_v53  ;;  %v3041_v52 = vld [vmem:[#allocation8 + $0x124] ss:$16 sps:$4 sm:$0xff]   ;;  %v3044_v53 = vld [vmem:[#allocation8 + $0x12c] ss:$16 sps:$4 sm:$0xff]  }
 0x175   :  { %1264 = vmatpush1.bf16.msra.mxu0 %v2949_v55  ;;  %1350 = vmatpush1.bf16.msra.mxu1 %v2952_v56  ;;  %v3039_v55 = vld [vmem:[#allocation8 + $0x120] ss:$16 sps:$4 sm:$0xff]   ;;  %v3042_v56 = vld [vmem:[#allocation8 + $0x128] ss:$16 sps:$4 sm:$0xff]  }
 0x176   :  { %1265 = vmatprep.subr.bf16.mxu0 %v2957_v58  ;;  %1351 = vmatprep.subr.bf16.mxu1 %v2960_v59  ;;  %v3047_v58 = vld [vmem:[#allocation8 + $0x144] ss:$16 sps:$4 sm:$0xff]   ;;  %v3050_v59 = vld [vmem:[#allocation8 + $0x14c] ss:$16 sps:$4 sm:$0xff]  }
 0x179   :  { %1266 = vmatpush1.bf16.msra.mxu0 %v2955_v60  ;;  %1352 = vmatpush1.bf16.msra.mxu1 %v2958_v61  ;;  %v3045_v60 = vld [vmem:[#allocation8 + $0x140] ss:$16 sps:$4 sm:$0xff]   ;;  %v3048_v61 = vld [vmem:[#allocation8 + $0x148] ss:$16 sps:$4 sm:$0xff]  }
 0x17a   :  { %1267 = vmatprep.subr.bf16.mxu0 %v2963_v62  ;;  %1353 = vmatprep.subr.bf16.mxu1 %v2966_v63  ;;  %v3053_v62 = vld [vmem:[#allocation8 + $0x164] ss:$16 sps:$4 sm:$0xff]   ;;  %v3056_v63 = vld [vmem:[#allocation8 + $0x16c] ss:$16 sps:$4 sm:$0xff]  }
 0x17d   :  { %1268 = vmatpush1.bf16.msra.mxu0 %v2961_v0  ;;  %1354 = vmatpush1.bf16.msra.mxu1 %v2964_v1  ;;  %v3051_v0 = vld [vmem:[#allocation8 + $0x160] ss:$16 sps:$4 sm:$0xff]   ;;  %v3054_v1 = vld [vmem:[#allocation8 + $0x168] ss:$16 sps:$4 sm:$0xff]  }
 0x17e   :  { %1269 = vmatprep.subr.bf16.mxu0 %v2969_v2  ;;  %1355 = vmatprep.subr.bf16.mxu1 %v2972_v3  ;;  %v3059_v2 = vld [vmem:[#allocation8 + $0x184] ss:$16 sps:$4 sm:$0xff]   ;;  %v3062_v3 = vld [vmem:[#allocation8 + $0x18c] ss:$16 sps:$4 sm:$0xff]  }
 0x181   :  { %1270 = vmatpush1.bf16.msra.mxu0 %v2967_v4  ;;  %1356 = vmatpush1.bf16.msra.mxu1 %v2970_v5  ;;  %v3057_v4 = vld [vmem:[#allocation8 + $0x180] ss:$16 sps:$4 sm:$0xff]   ;;  %v3060_v5 = vld [vmem:[#allocation8 + $0x188] ss:$16 sps:$4 sm:$0xff]  }
 0x182   :  { %1271 = vmatprep.subr.bf16.mxu0 %v2975_v6  ;;  %1357 = vmatprep.subr.bf16.mxu1 %v2978_v7  ;;  %v3065_v6 = vld [vmem:[#allocation8 + $0x1a4] ss:$16 sps:$4 sm:$0xff]   ;;  %v3068_v7 = vld [vmem:[#allocation8 + $0x1ac] ss:$16 sps:$4 sm:$0xff]  }
 0x185   :  { %1272 = vmatpush1.bf16.msra.mxu0 %v2973_v8  ;;  %1358 = vmatpush1.bf16.msra.mxu1 %v2976_v9  ;;  %v3063_v8 = vld [vmem:[#allocation8 + $0x1a0] ss:$16 sps:$4 sm:$0xff]   ;;  %v3066_v9 = vld [vmem:[#allocation8 + $0x1a8] ss:$16 sps:$4 sm:$0xff]  }
 0x186   :  { %1273 = vmatprep.subr.bf16.mxu0 %v2981_v10  ;;  %1359 = vmatprep.subr.bf16.mxu1 %v2984_v11  ;;  %v3071_v10 = vld [vmem:[#allocation8 + $0x1c4] ss:$16 sps:$4 sm:$0xff]   ;;  %v3074_v11 = vld [vmem:[#allocation8 + $0x1cc] ss:$16 sps:$4 sm:$0xff]  }
 0x189   :  { %1274 = vmatpush1.bf16.msra.mxu0 %v2979_v12  ;;  %1360 = vmatpush1.bf16.msra.mxu1 %v2982_v13  ;;  %v3069_v12 = vld [vmem:[#allocation8 + $0x1c0] ss:$16 sps:$4 sm:$0xff]   ;;  %v3072_v13 = vld [vmem:[#allocation8 + $0x1c8] ss:$16 sps:$4 sm:$0xff]  }
 0x18a   :  { %2174 = vmatprep.subr.bf16.mxu0 %v2987_v14  ;;  %2260 = vmatprep.subr.bf16.mxu1 %v2990_v15  ;;  %v3077_v14 = vld [vmem:[#allocation8 + $0x1e4] ss:$16 sps:$4 sm:$0xff]   ;;  %v3080_v15 = vld [vmem:[#allocation8 + $0x1ec] ss:$16 sps:$4 sm:$0xff]  }
 0x18c   :  { %1276 = vmatmul.mubr.bf16.vlgmr.msra.gmra.mrb[4].mxu0 %v3412_v22  ;;  %1362 = vmatmul.mubr.bf16.vlgmr.msra.gmra.mrb[4].mxu1 %v3412_v22  ;;  %v3006_v22 = vld [vmem:[#allocation8 + $0x68] ss:$16 sps:$4 sm:$0xff]  }
 0x18d   :  { %2175 = vmatpush1.bf16.msra.mxu0 %v2985_v16  ;;  %2261 = vmatpush1.bf16.msra.mxu1 %v2988_v17  ;;  %v3075_v16 = vld [vmem:[#allocation8 + $0x1e0] ss:$16 sps:$4 sm:$0xff]   ;;  %v3078_v17 = vld [vmem:[#allocation8 + $0x1e8] ss:$16 sps:$4 sm:$0xff]  }
 0x18e   :  { %2176 = vmatprep.subr.bf16.mxu0 %v2993_v18  ;;  %2262 = vmatprep.subr.bf16.mxu1 %v2996_v19  ;;  %v3083_v18 = vld [vmem:[#allocation8 + $0x204] ss:$16 sps:$4 sm:$0xff]   ;;  %v3086_v19 = vld [vmem:[#allocation8 + $0x20c] ss:$16 sps:$4 sm:$0xff]  }
 0x191   :  { %2177 = vmatpush1.bf16.msra.mxu0 %v2991_v20  ;;  %2263 = vmatpush1.bf16.msra.mxu1 %v2994_v21  ;;  %v538_v20 = vld [vmem:[%s3451_s4] sm:$0xf] }
 0x192   :  { %2178 = vmatprep.subr.bf16.mxu0 %v2999_v23  ;;  %2264 = vmatprep.subr.bf16.mxu1 %v3002_v24  ;;  %v543_v21 = vrot.slane %v538_v20, %v3397_v39  ;;  %v551_v23 = vrot.slane %v538_v20, %v3406_v54  ;;  %v547_v24 = vrot.slane %v538_v20, %v3402_v41 }
 0x195   :  { %2179 = vmatpush1.bf16.msra.mxu0 %v2997_v25  ;;  %2265 = vmatpush1.bf16.msra.mxu1 %v3000_v26  ;;  %v555_v25 = vrot.slane %v538_v20, %v3408_v57  ;;  %v3128_v20 = vld [vmem:[#allocation8 + $0x2ec] ss:$16 sps:$4 sm:$0xff]  }
 0x196   :  { %2180 = vmatprep.subr.bf16.mxu0 %v3005_v27  ;;  %2266 = vmatprep.subr.bf16.mxu1 %v3008_v28 }
 0x199   :  { %2181 = vmatpush1.bf16.msra.mxu0 %v3003_v29  ;;  %2267 = vmatpush1.bf16.msra.mxu1 %v3006_v22 }
 0x19a   :  { %2182 = vmatprep.subr.bf16.mxu0 %v3011_v30  ;;  %2268 = vmatprep.subr.bf16.mxu1 %v3014_v31 }
 0x19d   :  { %2183 = vmatpush1.bf16.msra.mxu0 %v3009_v32  ;;  %2269 = vmatpush1.bf16.msra.mxu1 %v3012_v33 }
 0x19e   :  { %2184 = vmatprep.subr.bf16.mxu0 %v3017_v34  ;;  %2270 = vmatprep.subr.bf16.mxu1 %v3020_v35 }
 0x1a1   :  { %2185 = vmatpush1.bf16.msra.mxu0 %v3015_v36  ;;  %2271 = vmatpush1.bf16.msra.mxu1 %v3018_v37 }
 0x1a2   :  { %2186 = vmatprep.subr.bf16.mxu0 %v3023_v38  ;;  %2272 = vmatprep.subr.bf16.mxu1 %v3026_v40 }
 0x1a5   :  { %2187 = vmatpush1.bf16.msra.mxu0 %v3021_v42  ;;  %2273 = vmatpush1.bf16.msra.mxu1 %v3024_v43 }
 0x1a6   :  { %2188 = vmatprep.subr.bf16.mxu0 %v3029_v44  ;;  %2274 = vmatprep.subr.bf16.mxu1 %v3032_v45 }
 0x1a9   :  { %2189 = vmatpush1.bf16.msra.mxu0 %v3027_v46  ;;  %2275 = vmatpush1.bf16.msra.mxu1 %v3030_v47 }
 0x1aa   :  { %2190 = vmatprep.subr.bf16.mxu0 %v3035_v48  ;;  %2276 = vmatprep.subr.bf16.mxu1 %v3038_v49 }
 0x1ad   :  { %2191 = vmatpush1.bf16.msra.mxu0 %v3033_v50  ;;  %2277 = vmatpush1.bf16.msra.mxu1 %v3036_v51 }
 0x1ae   :  { %2192 = vmatprep.subr.bf16.mxu0 %v3041_v52  ;;  %2278 = vmatprep.subr.bf16.mxu1 %v3044_v53 }
 0x1b1   :  { %2193 = vmatpush1.bf16.msra.mxu0 %v3039_v55  ;;  %2279 = vmatpush1.bf16.msra.mxu1 %v3042_v56  ;;  %v3081_v56 = vld [vmem:[#allocation8 + $0x200] ss:$16 sps:$4 sm:$0xff]  }
 0x1b2   :  { %2194 = vmatprep.subr.bf16.mxu0 %v3047_v58  ;;  %2280 = vmatprep.subr.bf16.mxu1 %v3050_v59  ;;  %v3084_v58 = vld [vmem:[#allocation8 + $0x208] ss:$16 sps:$4 sm:$0xff]   ;;  %v3089_v59 = vld [vmem:[#allocation8 + $0x224] ss:$16 sps:$4 sm:$0xff]  }
 0x1b5   :  { %2195 = vmatpush1.bf16.msra.mxu0 %v3045_v60  ;;  %2281 = vmatpush1.bf16.msra.mxu1 %v3048_v61  ;;  %v3092_v60 = vld [vmem:[#allocation8 + $0x22c] ss:$16 sps:$4 sm:$0xff]   ;;  %v3087_v61 = vld [vmem:[#allocation8 + $0x220] ss:$16 sps:$4 sm:$0xff]  }
 0x1b6   :  { %2196 = vmatprep.subr.bf16.mxu0 %v3053_v62  ;;  %2282 = vmatprep.subr.bf16.mxu1 %v3056_v63  ;;  %v3090_v62 = vld [vmem:[#allocation8 + $0x228] ss:$16 sps:$4 sm:$0xff]   ;;  %v3095_v63 = vld [vmem:[#allocation8 + $0x244] ss:$16 sps:$4 sm:$0xff]  }
 0x1b9   :  { %2197 = vmatpush1.bf16.msra.mxu0 %v3051_v0  ;;  %2283 = vmatpush1.bf16.msra.mxu1 %v3054_v1  ;;  %v3098_v0 = vld [vmem:[#allocation8 + $0x24c] ss:$16 sps:$4 sm:$0xff]   ;;  %v3093_v1 = vld [vmem:[#allocation8 + $0x240] ss:$16 sps:$4 sm:$0xff]  }
 0x1ba   :  { %2198 = vmatprep.subr.bf16.mxu0 %v3059_v2  ;;  %2284 = vmatprep.subr.bf16.mxu1 %v3062_v3  ;;  %v3096_v2 = vld [vmem:[#allocation8 + $0x248] ss:$16 sps:$4 sm:$0xff]   ;;  %v3101_v3 = vld [vmem:[#allocation8 + $0x264] ss:$16 sps:$4 sm:$0xff]  }
 0x1bd   :  { %2199 = vmatpush1.bf16.msra.mxu0 %v3057_v4  ;;  %2285 = vmatpush1.bf16.msra.mxu1 %v3060_v5  ;;  %v3104_v4 = vld [vmem:[#allocation8 + $0x26c] ss:$16 sps:$4 sm:$0xff]   ;;  %v3099_v5 = vld [vmem:[#allocation8 + $0x260] ss:$16 sps:$4 sm:$0xff]  }
 0x1be   :  { %2200 = vmatprep.subr.bf16.mxu0 %v3065_v6  ;;  %2286 = vmatprep.subr.bf16.mxu1 %v3068_v7  ;;  %v3102_v6 = vld [vmem:[#allocation8 + $0x268] ss:$16 sps:$4 sm:$0xff]   ;;  %v3107_v7 = vld [vmem:[#allocation8 + $0x284] ss:$16 sps:$4 sm:$0xff]  }
 0x1c1   :  { %2201 = vmatpush1.bf16.msra.mxu0 %v3063_v8  ;;  %2287 = vmatpush1.bf16.msra.mxu1 %v3066_v9  ;;  %v3110_v8 = vld [vmem:[#allocation8 + $0x28c] ss:$16 sps:$4 sm:$0xff]   ;;  %v3105_v9 = vld [vmem:[#allocation8 + $0x280] ss:$16 sps:$4 sm:$0xff]  }
 0x1c2   :  { %2202 = vmatprep.subr.bf16.mxu0 %v3071_v10  ;;  %2288 = vmatprep.subr.bf16.mxu1 %v3074_v11  ;;  %v3108_v10 = vld [vmem:[#allocation8 + $0x288] ss:$16 sps:$4 sm:$0xff]   ;;  %v3113_v11 = vld [vmem:[#allocation8 + $0x2a4] ss:$16 sps:$4 sm:$0xff]  }
 0x1c5   :  { %2203 = vmatpush1.bf16.msra.mxu0 %v3069_v12  ;;  %2289 = vmatpush1.bf16.msra.mxu1 %v3072_v13  ;;  %v3116_v12 = vld [vmem:[#allocation8 + $0x2ac] ss:$16 sps:$4 sm:$0xff]   ;;  %v3111_v13 = vld [vmem:[#allocation8 + $0x2a0] ss:$16 sps:$4 sm:$0xff]  }
 0x1c6   :  { %2204 = vmatprep.subr.bf16.mxu0 %v3077_v14  ;;  %2290 = vmatprep.subr.bf16.mxu1 %v3080_v15  ;;  %v3114_v14 = vld [vmem:[#allocation8 + $0x2a8] ss:$16 sps:$4 sm:$0xff]   ;;  %v3119_v15 = vld [vmem:[#allocation8 + $0x2c4] ss:$16 sps:$4 sm:$0xff]  }
 0x1c9   :  { %2205 = vmatpush1.bf16.msra.mxu0 %v3075_v16  ;;  %2291 = vmatpush1.bf16.msra.mxu1 %v3078_v17  ;;  %v3122_v16 = vld [vmem:[#allocation8 + $0x2cc] ss:$16 sps:$4 sm:$0xff]   ;;  %v3117_v17 = vld [vmem:[#allocation8 + $0x2c0] ss:$16 sps:$4 sm:$0xff]  }
 0x1ca   :  { %2217 = vmatprep.subr.bf16.mxu0 %v3083_v18  ;;  %2303 = vmatprep.subr.bf16.mxu1 %v3086_v19  ;;  %v3120_v18 = vld [vmem:[#allocation8 + $0x2c8] ss:$16 sps:$4 sm:$0xff]   ;;  %v3125_v19 = vld [vmem:[#allocation8 + $0x2e4] ss:$16 sps:$4 sm:$0xff]  }
 0x25f   :  { %v1277_v26 = vpop.f32.mrb[4].mxu0  ;;  %v1363_v27 = vpop.f32.mrb[4].mxu1 }
 0x260   :  { %v2703_v28 = vadd.f32 %v1277_v26, %v543_v21  ;;  %v2707_v29 = vadd.f32 %v1363_v27, %v551_v23  ;;  %v1279_v22 = vpop.f32.mrb[5].mxu0  ;;  %v1365_v30 = vpop.f32.mrb[5].mxu1  ;;  %v3129_v26 = vld [vmem:[#allocation8 + $0x300] ss:$16 sps:$4 sm:$0xff]   ;;  %v3132_v27 = vld [vmem:[#allocation8 + $0x308] ss:$16 sps:$4 sm:$0xff]  }
 0x261   :  { %v2704_v31 = vadd.f32 %v1279_v22, %v547_v24  ;;  %v2708_v32 = vadd.f32 %v1365_v30, %v555_v25  ;;  %v1281_v33 = vpop.f32.mrb[6].mxu0  ;;  %v1367_v34 = vpop.f32.mrb[6].mxu1  ;;  %v3135_v22 = vld [vmem:[#allocation8 + $0x320] ss:$16 sps:$4 sm:$0xff]   ;;  %v3138_v30 = vld [vmem:[#allocation8 + $0x328] ss:$16 sps:$4 sm:$0xff]  }
 0x262   :  { %v2705_v35 = vadd.f32 %v1281_v33, %v543_v21  ;;  %v2709_v36 = vadd.f32 %v1367_v34, %v551_v23  ;;  %v1283_v37 = vpop.f32.mrb[7].mxu0  ;;  %v1369_v38 = vpop.f32.mrb[7].mxu1  ;;  %v1372_v43 = vmax.f32 %v2703_v28, 0.0  ;;  %v1374_v44 = vmax.f32 %v2707_v29, 0.0  ;;  %v3123_v21 = vld [vmem:[#allocation8 + $0x2e0] ss:$16 sps:$4 sm:$0xff]  }
 0x263   :  { %v2706_v40 = vadd.f32 %v1283_v37, %v547_v24  ;;  %v2710_v42 = vadd.f32 %v1369_v38, %v555_v25  ;;  %v1373_v47 = vmax.f32 %v2704_v31, 0.0  ;;  %v1375_v48 = vmax.f32 %v2708_v32, 0.0  ;;  %v3126_v23 = vld [vmem:[#allocation8 + $0x2e8] ss:$16 sps:$4 sm:$0xff]   ;;  %v3131_v24 = vld [vmem:[#allocation8 + $0x304] ss:$16 sps:$4 sm:$0xff]  }
 0x264   :  { %v1376_v45 = vmax.f32 %v2705_v35, 0.0  ;;  %v1378_v46 = vmax.f32 %v2709_v36, 0.0  ;;  %v3134_v25 = vld [vmem:[#allocation8 + $0x30c] ss:$16 sps:$4 sm:$0xff]   ;;  %v3137_v28 = vld [vmem:[#allocation8 + $0x324] ss:$16 sps:$4 sm:$0xff]  }
 0x265   :  { %v1377_v49 = vmax.f32 %v2706_v40, 0.0  ;;  %v1379_v50 = vmax.f32 %v2710_v42, 0.0  ;;  %v3140_v29 = vld [vmem:[#allocation8 + $0x32c] ss:$16 sps:$4 sm:$0xff]   ;;  %v3143_v31 = vld [vmem:[#allocation8 + $0x344] ss:$16 sps:$4 sm:$0xff]  }
 0x266   :  { %v1380_v51 = vpack.c.bf16 %v1376_v45, %v1372_v43  ;;  %v3423_v52 = vpack.c.bf16 %v1378_v46, %v1374_v44  ;;  %v3146_v32 = vld [vmem:[#allocation8 + $0x34c] ss:$16 sps:$4 sm:$0xff]   ;;  %v3141_v33 = vld [vmem:[#allocation8 + $0x340] ss:$16 sps:$4 sm:$0xff]   ;;  %v3144_v34 = vld [vmem:[#allocation8 + $0x348] ss:$16 sps:$4 sm:$0xff]  }
 0x267   :  { %v1381_v53 = vpack.c.bf16 %v1377_v49, %v1373_v47  ;;  %v1383_v55 = vpack.c.bf16 %v1379_v50, %v1375_v48  ;;  %v3149_v35 = vld [vmem:[#allocation8 + $0x364] ss:$16 sps:$4 sm:$0xff]   ;;  %v3152_v36 = vld [vmem:[#allocation8 + $0x36c] ss:$16 sps:$4 sm:$0xff]   ;;  %v3147_v37 = vld [vmem:[#allocation8 + $0x360] ss:$16 sps:$4 sm:$0xff]  }
 0x268   :  { %v3150_v38 = vld [vmem:[#allocation8 + $0x368] ss:$16 sps:$4 sm:$0xff]   ;;  %v3155_v40 = vld [vmem:[#allocation8 + $0x384] ss:$16 sps:$4 sm:$0xff]   ;;  %v3158_v42 = vld [vmem:[#allocation8 + $0x38c] ss:$16 sps:$4 sm:$0xff]  }
 0x269   :  { %2206 = vmatprep.mubr.bf16.mxu0 %v1381_v53  ;;  %2292 = vmatprep.mubr.bf16.mxu1 %v1381_v53  ;;  %v3153_v43 = vld [vmem:[#allocation8 + $0x380] ss:$16 sps:$4 sm:$0xff]   ;;  %v3156_v44 = vld [vmem:[#allocation8 + $0x388] ss:$16 sps:$4 sm:$0xff]   ;;  %v3161_v45 = vld [vmem:[#allocation8 + $0x3a4] ss:$16 sps:$4 sm:$0xff]  }
 0x26a   :  { %2207 = vmatmul.mubr.bf16.vlgmr.msra.gmra.mrb[8].mxu0 %v1380_v51  ;;  %2293 = vmatmul.mubr.bf16.vlgmr.msra.gmra.mrb[8].mxu1 %v1380_v51  ;;  %v3164_v46 = vld [vmem:[#allocation8 + $0x3ac] ss:$16 sps:$4 sm:$0xff]   ;;  %v3159_v47 = vld [vmem:[#allocation8 + $0x3a0] ss:$16 sps:$4 sm:$0xff]   ;;  %v3162_v48 = vld [vmem:[#allocation8 + $0x3a8] ss:$16 sps:$4 sm:$0xff]  }
 0x26b   :  { %2218 = vmatpush1.bf16.msra.mxu0 %v3081_v56  ;;  %2304 = vmatpush1.bf16.msra.mxu1 %v3084_v58  ;;  %v3167_v49 = vld [vmem:[#allocation8 + $0x3c4] ss:$16 sps:$4 sm:$0xff]   ;;  %v3170_v50 = vld [vmem:[#allocation8 + $0x3cc] ss:$16 sps:$4 sm:$0xff]   ;;  %v3165_v51 = vld [vmem:[#allocation8 + $0x3c0] ss:$16 sps:$4 sm:$0xff]  }
 0x26c   :  { %2249 = vmatprep.mubr.bf16.mxu0 %v1383_v55  ;;  %2335 = vmatprep.mubr.bf16.mxu1 %v1383_v55  ;;  %v3168_v53 = vld [vmem:[#allocation8 + $0x3c8] ss:$16 sps:$4 sm:$0xff]   ;;  %v3173_v55 = vld [vmem:[#allocation8 + $0x3e4] ss:$16 sps:$4 sm:$0xff]   ;;  %v3176_v56 = vld [vmem:[#allocation8 + $0x3ec] ss:$16 sps:$4 sm:$0xff]  }
 0x26d   :  { %2219 = vmatprep.subr.bf16.mxu0 %v3089_v59  ;;  %2305 = vmatprep.subr.bf16.mxu1 %v3092_v60  ;;  %v3171_v58 = vld [vmem:[#allocation8 + $0x3e0] ss:$16 sps:$4 sm:$0xff]   ;;  %v3174_v59 = vld [vmem:[#allocation8 + $0x3e8] ss:$16 sps:$4 sm:$0xff]  }
 0x26e   :  { %v1512_v60 = vld [vmem:[%s3453_s6] sm:$0xf] }
 0x26f   :  { %2220 = vmatpush1.bf16.msra.mxu0 %v3087_v61  ;;  %2306 = vmatpush1.bf16.msra.mxu1 %v3090_v62  ;;  %v1517_v61 = vrot.slane %v1512_v60, %v3397_v39  ;;  %v1525_v62 = vrot.slane %v1512_v60, %v3406_v54 }
 0x270   :  { %2221 = vmatprep.subr.bf16.mxu0 %v3095_v63  ;;  %2307 = vmatprep.subr.bf16.mxu1 %v3098_v0  ;;  %v2354_v63 = vld [vmem:[%s3454_s7] sm:$0xf]  ;;  %v1521_v0 = vrot.slane %v1512_v60, %v3402_v41 }
 0x273   :  { %2222 = vmatpush1.bf16.msra.mxu0 %v3093_v1  ;;  %2308 = vmatpush1.bf16.msra.mxu1 %v3096_v2  ;;  %v1529_v1 = vrot.slane %v1512_v60, %v3408_v57 }
 0x274   :  { %2223 = vmatprep.subr.bf16.mxu0 %v3101_v3  ;;  %2309 = vmatprep.subr.bf16.mxu1 %v3104_v4 }
 0x277   :  { %2224 = vmatpush1.bf16.msra.mxu0 %v3099_v5  ;;  %2310 = vmatpush1.bf16.msra.mxu1 %v3102_v6 }
 0x278   :  { %2225 = vmatprep.subr.bf16.mxu0 %v3107_v7  ;;  %2311 = vmatprep.subr.bf16.mxu1 %v3110_v8 }
 0x27b   :  { %2226 = vmatpush1.bf16.msra.mxu0 %v3105_v9  ;;  %2312 = vmatpush1.bf16.msra.mxu1 %v3108_v10  ;;  %v2363_v9 = vrot.slane %v2354_v63, %v3402_v41 }
 0x27c   :  { %2227 = vmatprep.subr.bf16.mxu0 %v3113_v11  ;;  %2313 = vmatprep.subr.bf16.mxu1 %v3116_v12 }
 0x27f   :  { %2228 = vmatpush1.bf16.msra.mxu0 %v3111_v13  ;;  %2314 = vmatpush1.bf16.msra.mxu1 %v3114_v14  ;;  %v2367_v14 = vrot.slane %v2354_v63, %v3406_v54 }
 0x280   :  { %2229 = vmatprep.subr.bf16.mxu0 %v3119_v15  ;;  %2315 = vmatprep.subr.bf16.mxu1 %v3122_v16 }
 0x283   :  { %2230 = vmatpush1.bf16.msra.mxu0 %v3117_v17  ;;  %2316 = vmatpush1.bf16.msra.mxu1 %v3120_v18 }
 0x284   :  { %2231 = vmatprep.subr.bf16.mxu0 %v3125_v19  ;;  %2317 = vmatprep.subr.bf16.mxu1 %v3128_v20 }
 0x287   :  { %2232 = vmatpush1.bf16.msra.mxu0 %v3123_v21  ;;  %2318 = vmatpush1.bf16.msra.mxu1 %v3126_v23 }
 0x288   :  { %2233 = vmatprep.subr.bf16.mxu0 %v3131_v24  ;;  %2319 = vmatprep.subr.bf16.mxu1 %v3134_v25  ;;  %v2371_v25 = vrot.slane %v2354_v63, %v3408_v57  ;;  %v2702_v57 = vld [vmem:[#allocation2] ss:$0 sm:$0xff] }
 0x28b   :  { %2234 = vmatpush1.bf16.msra.mxu0 %v3129_v26  ;;  %2320 = vmatpush1.bf16.msra.mxu1 %v3132_v27 }
 0x28c   :  { %2235 = vmatprep.subr.bf16.mxu0 %v3137_v28  ;;  %2321 = vmatprep.subr.bf16.mxu1 %v3140_v29 }
 0x28f   :  { %2236 = vmatpush1.bf16.msra.mxu0 %v3135_v22  ;;  %2322 = vmatpush1.bf16.msra.mxu1 %v3138_v30 }
 0x290   :  { %2237 = vmatprep.subr.bf16.mxu0 %v3143_v31  ;;  %2323 = vmatprep.subr.bf16.mxu1 %v3146_v32 }
 0x293   :  { %2238 = vmatpush1.bf16.msra.mxu0 %v3141_v33  ;;  %2324 = vmatpush1.bf16.msra.mxu1 %v3144_v34 }
 0x294   :  { %2239 = vmatprep.subr.bf16.mxu0 %v3149_v35  ;;  %2325 = vmatprep.subr.bf16.mxu1 %v3152_v36 }
 0x297   :  { %2240 = vmatpush1.bf16.msra.mxu0 %v3147_v37  ;;  %2326 = vmatpush1.bf16.msra.mxu1 %v3150_v38 }
 0x298   :  { %2241 = vmatprep.subr.bf16.mxu0 %v3155_v40  ;;  %2327 = vmatprep.subr.bf16.mxu1 %v3158_v42 }
 0x29b   :  { %2242 = vmatpush1.bf16.msra.mxu0 %v3153_v43  ;;  %2328 = vmatpush1.bf16.msra.mxu1 %v3156_v44 }
 0x29c   :  { %2243 = vmatprep.subr.bf16.mxu0 %v3161_v45  ;;  %2329 = vmatprep.subr.bf16.mxu1 %v3164_v46 }
 0x29f   :  { %2244 = vmatpush1.bf16.msra.mxu0 %v3159_v47  ;;  %2330 = vmatpush1.bf16.msra.mxu1 %v3162_v48 }
 0x2a0   :  { %2245 = vmatprep.subr.bf16.mxu0 %v3167_v49  ;;  %2331 = vmatprep.subr.bf16.mxu1 %v3170_v50 }
 0x2a3   :  { %2246 = vmatpush1.bf16.msra.mxu0 %v3165_v51  ;;  %2332 = vmatpush1.bf16.msra.mxu1 %v3168_v53 }
 0x2a4   :  { %2247 = vmatprep.subr.bf16.mxu0 %v3173_v55  ;;  %2333 = vmatprep.subr.bf16.mxu1 %v3176_v56 }
 0x2a7   :  { %2248 = vmatpush1.bf16.msra.mxu0 %v3171_v58  ;;  %2334 = vmatpush1.bf16.msra.mxu1 %v3174_v59 }
 0x2aa   :  { %2250 = vmatmul.mubr.bf16.vlgmr.msra.gmra.mrb[8].mxu0 %v3423_v52  ;;  %2336 = vmatmul.mubr.bf16.vlgmr.msra.gmra.mrb[8].mxu1 %v3423_v52  ;;  %v2359_v52 = vrot.slane %v2354_v63, %v3397_v39 }
 0x37d   :  { %v2251_v2 = vpop.f32.mrb[8].mxu0  ;;  %v2337_v3 = vpop.f32.mrb[8].mxu1 }
 0x37e   :  { %v2711_v4 = vadd.f32 %v2251_v2, %v1517_v61  ;;  %v2715_v5 = vadd.f32 %v2337_v3, %v1525_v62  ;;  %v2253_v6 = vpop.f32.mrb[9].mxu0  ;;  %v2339_v7 = vpop.f32.mrb[9].mxu1 }
 0x37f   :  { %v2712_v8 = vadd.f32 %v2253_v6, %v1521_v0  ;;  %v2716_v10 = vadd.f32 %v2339_v7, %v1529_v1  ;;  %v2255_v11 = vpop.f32.mrb[10].mxu0  ;;  %v2341_v12 = vpop.f32.mrb[10].mxu1 }
 0x380   :  { %v2346_v13 = vmax.f32 %v2711_v4, 0.0  ;;  %v2713_v15 = vadd.f32 %v2255_v11, %v1517_v61  ;;  %v2717_v16 = vadd.f32 %v2341_v12, %v1525_v62  ;;  %v2257_v17 = vpop.f32.mrb[11].mxu0  ;;  %v2343_v18 = vpop.f32.mrb[11].mxu1  ;;  %v2348_v19 = vmax.f32 %v2715_v5, 0.0 }
 0x381   :  { %v2347_v20 = vmax.f32 %v2712_v8, 0.0  ;;  %v2714_v21 = vadd.f32 %v2257_v17, %v1521_v0  ;;  %v2718_v39 = vadd.f32 %v2343_v18, %v1529_v1  ;;  %v2349_v41 = vmax.f32 %v2716_v10, 0.0 }
 0x382   :  { %v2376_v23 = vmul.f32 %v2359_v52, %v2346_v13  ;;  %v2350_v24 = vmax.f32 %v2713_v15, 0.0  ;;  %v2352_v27 = vmax.f32 %v2717_v16, 0.0  ;;  %v2378_v22 = vmul.f32 %v2367_v14, %v2348_v19 }
 0x383   :  { %v2377_v26 = vmul.f32 %v2363_v9, %v2347_v20  ;;  %v2351_v28 = vmax.f32 %v2714_v21, 0.0  ;;  %v2353_v54 = vmax.f32 %v2718_v39, 0.0  ;;  %v2379_v34 = vmul.f32 %v2371_v25, %v2349_v41 }
 0x384   :  { %v2380_v29 = vmul.f32 %v2359_v52, %v2350_v24  ;;  %v2382_v32 = vmul.f32 %v2367_v14, %v2352_v27 }
 0x385   :  { %v2381_v30 = vmul.f32 %v2363_v9, %v2351_v28  ;;  %v2384_v31 = vadd.f32 %v2377_v26, %v2376_v23  ;;  %v2383_v36 = vmul.f32 %v2371_v25, %v2353_v54 }
 0x387   :  { %v2389_v33 = vadd.f32 %v2381_v30, %v2380_v29  ;;  %v2385_v35 = vadd.f32 %v2384_v31, %v2378_v22 }
 0x389   :  { %v2386_v37 = vadd.f32 %v2385_v35, %v2379_v34  ;;  %v2390_v38 = vadd.f32 %v2389_v33, %v2382_v32 }
 0x38b   :  { %2387 = vadd.xlane.f32.xlu0 %v2386_v37  ;;  %v2391_v40 = vadd.f32 %v2390_v38, %v2383_v36 }
 0x38f   :  { %2392 = vadd.xlane.f32.xlu0 %v2391_v40 }
 0x418   :  { %v2388_v42 = vpop.xlane.xlu0 %2387 }
 0x419   :  { %v2401_v43 = vadd.f32 %v2702_v57, %v2388_v42 }
 0x41b   :  { %2404 = vst.msk [vmem:[%s3456_s9] sm:$0xff] %vm2403_vm0, %v2401_v43 }
 0x41c   :  { %v2393_v44 = vpop.xlane.xlu0 %2392 }
 0x41d   :  { %v2402_v45 = vadd.f32 %v2702_v57, %v2393_v44 }
 0x41f   :  { %2405 = vst.msk [vmem:[%s3456_s9 + $0x8] sm:$0xff] %vm2403_vm0, %v2402_v45 }
 0x420   :  { %2410 = vsyncpa [#allocation4], 1 }
 0x421   :  { %2411 = vsyncpa [#allocation6], 1 }
 0x422   :  { %2412 = vsyncpa [#allocation9], 1 }

</bundles_post_ra>
